<compile_context>
chip_gen: v5e
topology: v5e:2x2
jax: 0.10.0
libtpu: 0.0.40
codegen_flags: <defaults>
</compile_context>

<pallas_src>
import jax
import jax.numpy as jnp
import numpy as np
from jax import lax
from jax.experimental import pallas as pl
from jax.experimental.pallas import tpu as pltpu


def lstm_fc_kernel(x_ref, w_ih_ref, w_hh_ref, b_ref, w_fc_ref, b_fc_ref,
                   out_ref, hall_ref):
    """Fused LSTM recurrence + Linear head, single invocation (no grid).

    x_ref    : (B, T, I)   batch-first input (same layout as PyTorch)
    w_ih_ref : (I, 4H)     input->gates weights (i, f, g, o column blocks)
    w_hh_ref : (4, H, H)   hidden->gate weights, pre-split & pre-transposed
    b_ref    : (1, 4H)     b_ih + b_hh combined
    w_fc_ref : (H, O)      fc weight (transposed)
    b_fc_ref : (1, O)      fc bias
    out_ref  : (B, T, O)   fc(lstm_out), batch-first
    hall_ref : (B, T, H)   VMEM scratch holding every h_t for the batched FC
    """
    B, T, I = x_ref.shape
    H = w_hh_ref.shape[-1]
    O = w_fc_ref.shape[-1]

    # ---- Hoisted input projection: ONE big matmul, off the recurrent path.
    x2d = x_ref[...].reshape(B * T, I)                       # layout no-op
    xp = (jnp.dot(x2d, w_ih_ref[...], preferred_element_type=jnp.float32)
          + b_ref[...])                                      # (B*T, 4H)

    # Split once into per-gate slabs so the loop never slices 16-lane windows.
    xp_i = xp[:, 0 * H:1 * H].reshape(B, T, H)
    xp_f = xp[:, 1 * H:2 * H].reshape(B, T, H)
    xp_g = xp[:, 2 * H:3 * H].reshape(B, T, H)
    xp_o = xp[:, 3 * H:4 * H].reshape(B, T, H)

    # Per-gate recurrent weights, loaded once outside the loop.
    w_i = w_hh_ref[0]
    w_f = w_hh_ref[1]
    w_g = w_hh_ref[2]
    w_o = w_hh_ref[3]

    # Recurrent state lives in registers (loop-carried values), not VMEM.
    h = jnp.zeros((B, H), jnp.float32)
    c = jnp.zeros((B, H), jnp.float32)

    # ---- Fully-unrolled recurrence (T static, small): only h @ W_hh + the
    # elementwise gate math sit on the sequential critical path.
    for t in range(T):
        zi = xp_i[:, t, :] + jnp.dot(h, w_i, preferred_element_type=jnp.float32)
        zf = xp_f[:, t, :] + jnp.dot(h, w_f, preferred_element_type=jnp.float32)
        zg = xp_g[:, t, :] + jnp.dot(h, w_g, preferred_element_type=jnp.float32)
        zo = xp_o[:, t, :] + jnp.dot(h, w_o, preferred_element_type=jnp.float32)

        i_t = jax.nn.sigmoid(zi)
        f_t = jax.nn.sigmoid(zf)
        g_t = jnp.tanh(zg)
        o_t = jax.nn.sigmoid(zo)

        c = f_t * c + i_t * g_t
        h = o_t * jnp.tanh(c)

        # Spill h_t for the batched FC; static slice store, not on the
        # recurrent dependency chain so the scheduler can defer it.
        hall_ref[:, t:t + 1, :] = h.reshape(B, 1, H)

    # ---- FC head hoisted out of the loop: one (B*T,H)@(H,O) matmul and a
    # single contiguous store of the batch-first output.
    hs = hall_ref[...].reshape(B * T, H)
    out = (jnp.dot(hs, w_fc_ref[...], preferred_element_type=jnp.float32)
           + b_fc_ref[...])                                  # (B*T, O)
    out_ref[...] = out.reshape(B, T, O)


def main_model_forward(x, params):
    """x: (B, T, I) float32, batch-first like PyTorch. Returns (B, T, O)."""
    B, T, I = x.shape
    H = params["w_hh"].shape[-1]
    O = params["w_fc"].shape[-1]

    # NOTE: whole problem fits comfortably in VMEM at these sizes, so the
    # kernel runs as a single invocation with everything VMEM-resident.
    # For larger T/B (esp. v7x's 64 MiB VMEM / 2 TensorCores) this should get
    # a T grid for streaming x/out and a "parallel" batch grid axis.
    return pl.pallas_call(
        lstm_fc_kernel,
        out_shape=jax.ShapeDtypeStruct((B, T, O), jnp.float32),
        in_specs=[pl.BlockSpec(memory_space=pltpu.MemorySpace.VMEM)] * 6,
        out_specs=pl.BlockSpec(memory_space=pltpu.MemorySpace.VMEM),
        scratch_shapes=[pltpu.VMEM((B, T, H), jnp.float32)],   # h_t history
    )(x.astype(jnp.float32), params["w_ih"], params["w_hh"], params["b"],
      params["w_fc"], params["b_fc"])


def init_params(key, orig_dim=1, embed_dim=16):
    """Deterministic init mimicking PyTorch's U(-1/sqrt(H), 1/sqrt(H))."""
    H, I, O = embed_dim, orig_dim, orig_dim
    bound = 1.0 / np.sqrt(H)
    ks = jax.random.split(key, 6)
    u = lambda k, s: jax.random.uniform(k, s, jnp.float32, -bound, bound)
    w_ih = u(ks[0], (4 * H, I))      # PyTorch weight_ih_l0 (i,f,g,o rows)
    w_hh = u(ks[1], (4 * H, H))      # PyTorch weight_hh_l0
    b_ih = u(ks[2], (4 * H,))
    b_hh = u(ks[3], (4 * H,))
    w_fc = u(ks[4], (O, H))          # PyTorch fc.weight
    b_fc = u(ks[5], (O,))
    return {
        "w_ih": w_ih.T,                                            # (I, 4H)
        # per-gate, pre-transposed for h @ W_g:  (4, H, H)
        "w_hh": jnp.transpose(w_hh.reshape(4, H, H), (0, 2, 1)),
        "b": (b_ih + b_hh).reshape(1, 4 * H),                      # (1, 4H)
        "w_fc": w_fc.T,                                            # (H, O)
        "b_fc": b_fc.reshape(1, O),                                # (1, O)
    }


def reference_forward(x, params):
    """Pure-JAX reference of nn.LSTM(batch_first=True) + nn.Linear."""
    B, T, I = x.shape
    H = params["w_hh"].shape[-1]
    w_ih, w_hh, b = params["w_ih"], params["w_hh"], params["b"]

    def cell(carry, x_t):
        h, c = carry
        xp = x_t @ w_ih + b                                  # (B, 4H)
        i_t = jax.nn.sigmoid(xp[:, 0 * H:1 * H] + h @ w_hh[0])
        f_t = jax.nn.sigmoid(xp[:, 1 * H:2 * H] + h @ w_hh[1])
        g_t = jnp.tanh(xp[:, 2 * H:3 * H] + h @ w_hh[2])
        o_t = jax.nn.sigmoid(xp[:, 3 * H:4 * H] + h @ w_hh[3])
        c_new = f_t * c + i_t * g_t
        h_new = o_t * jnp.tanh(c_new)
        return (h_new, c_new), h_new

    h0 = jnp.zeros((B, H), jnp.float32)
    c0 = jnp.zeros((B, H), jnp.float32)
    _, hs = lax.scan(cell, (h0, c0), jnp.transpose(x, (1, 0, 2)))  # (T, B, H)
    lstm_out = jnp.transpose(hs, (1, 0, 2))                        # (B, T, H)
    return lstm_out @ params["w_fc"] + params["b_fc"]


if __name__ == "__main__":
    B, T, I, H = 2, 8, 1, 16   # batch=2, seq=8, orig_dim=1, embed_dim=16

    key = jax.random.PRNGKey(0)
    k_x, k_p = jax.random.split(key)
    x = jax.random.normal(k_x, (B, T, I), jnp.float32)
    params = init_params(k_p, orig_dim=I, embed_dim=H)

    out = jax.block_until_ready(main_model_forward(x, params))
    ref = jax.block_until_ready(reference_forward(x, params))

    assert out.shape == (B, T, I)
    np.testing.assert_allclose(np.asarray(out), np.asarray(ref),
                               rtol=1e-5, atol=1e-5)
    print("KERNEL_OK")
</pallas_src>

<mosaic_0001>
module attributes {stable_mosaic.version = 11 : i64} {
  func.func @lstm_fc_kernel(%arg0: memref<2x8x1xf32, #tpu.memory_space<vmem>>, %arg1: memref<1x64xf32, #tpu.memory_space<vmem>>, %arg2: memref<4x16x16xf32, #tpu.memory_space<vmem>>, %arg3: memref<1x64xf32, #tpu.memory_space<vmem>>, %arg4: memref<16x1xf32, #tpu.memory_space<vmem>>, %arg5: memref<1x1xf32, #tpu.memory_space<vmem>>, %arg6: memref<2x8x1xf32, #tpu.memory_space<vmem>>, %arg7: memref<2x8x16xf32, #tpu.memory_space<vmem>>) attributes {dimension_semantics = [], scalar_prefetch = 0 : i64, scratch_operands = 1 : i64, tpu.core_type = #tpu.core_type<tc>} {
    %c0 = arith.constant 0 : index
    %c0_0 = arith.constant 0 : index
    %c0_1 = arith.constant 0 : index
    %0 = vector.load %arg0[%c0, %c0_0, %c0_1] : memref<2x8x1xf32, #tpu.memory_space<vmem>>, vector<2x8x1xf32>
    %1 = vector.shape_cast %0 : vector<2x8x1xf32> to vector<16x1xf32>
    %c0_2 = arith.constant 0 : index
    %c0_3 = arith.constant 0 : index
    %2 = vector.load %arg1[%c0_2, %c0_3] : memref<1x64xf32, #tpu.memory_space<vmem>>, vector<1x64xf32>
    %cst = arith.constant dense<0.000000e+00> : vector<16x64xf32>
    %3 = tpu.matmul %1, %2, %cst {dimension_numbers = #tpu.dot_dimension_numbers<[1], [0], [0], [1], [0, 0, 1, 1], [], []>} : vector<16x1xf32>, vector<1x64xf32>, vector<16x64xf32> -> vector<16x64xf32>
    %c0_4 = arith.constant 0 : index
    %c0_5 = arith.constant 0 : index
    %4 = vector.load %arg3[%c0_4, %c0_5] : memref<1x64xf32, #tpu.memory_space<vmem>>, vector<1x64xf32>
    %5 = vector.broadcast %4 : vector<1x64xf32> to vector<16x64xf32>
    %6 = arith.addf %3, %5 : vector<16x64xf32>
    %7 = vector.extract_strided_slice %6 {offsets = [0, 0], sizes = [16, 16], strides = [1, 1]} : vector<16x64xf32> to vector<16x16xf32>
    %8 = vector.shape_cast %7 : vector<16x16xf32> to vector<2x8x16xf32>
    %9 = vector.extract_strided_slice %6 {offsets = [0, 16], sizes = [16, 16], strides = [1, 1]} : vector<16x64xf32> to vector<16x16xf32>
    %10 = vector.shape_cast %9 : vector<16x16xf32> to vector<2x8x16xf32>
    %11 = vector.extract_strided_slice %6 {offsets = [0, 32], sizes = [16, 16], strides = [1, 1]} : vector<16x64xf32> to vector<16x16xf32>
    %12 = vector.shape_cast %11 : vector<16x16xf32> to vector<2x8x16xf32>
    %13 = vector.extract_strided_slice %6 {offsets = [0, 48], sizes = [16, 16], strides = [1, 1]} : vector<16x64xf32> to vector<16x16xf32>
    %14 = vector.shape_cast %13 : vector<16x16xf32> to vector<2x8x16xf32>
    %c0_6 = arith.constant 0 : index
    %c0_7 = arith.constant 0 : index
    %c0_8 = arith.constant 0 : index
    %15 = vector.load %arg2[%c0_6, %c0_7, %c0_8] : memref<4x16x16xf32, #tpu.memory_space<vmem>>, vector<1x16x16xf32>
    %16 = vector.shape_cast %15 : vector<1x16x16xf32> to vector<16x16xf32>
    %c1 = arith.constant 1 : index
    %c0_9 = arith.constant 0 : index
    %c0_10 = arith.constant 0 : index
    %17 = vector.load %arg2[%c1, %c0_9, %c0_10] : memref<4x16x16xf32, #tpu.memory_space<vmem>>, vector<1x16x16xf32>
    %18 = vector.shape_cast %17 : vector<1x16x16xf32> to vector<16x16xf32>
    %c2 = arith.constant 2 : index
    %c0_11 = arith.constant 0 : index
    %c0_12 = arith.constant 0 : index
    %19 = vector.load %arg2[%c2, %c0_11, %c0_12] : memref<4x16x16xf32, #tpu.memory_space<vmem>>, vector<1x16x16xf32>
    %20 = vector.shape_cast %19 : vector<1x16x16xf32> to vector<16x16xf32>
    %c3 = arith.constant 3 : index
    %c0_13 = arith.constant 0 : index
    %c0_14 = arith.constant 0 : index
    %21 = vector.load %arg2[%c3, %c0_13, %c0_14] : memref<4x16x16xf32, #tpu.memory_space<vmem>>, vector<1x16x16xf32>
    %22 = vector.shape_cast %21 : vector<1x16x16xf32> to vector<16x16xf32>
    %cst_15 = arith.constant 0.000000e+00 : f32
    %23 = vector.broadcast %cst_15 : f32 to vector<2x16xf32>
    %cst_16 = arith.constant 0.000000e+00 : f32
    %24 = vector.broadcast %cst_16 : f32 to vector<2x16xf32>
    %25 = vector.extract_strided_slice %8 {offsets = [0, 0, 0], sizes = [2, 1, 16], strides = [1, 1, 1]} : vector<2x8x16xf32> to vector<2x1x16xf32>
    %26 = vector.shape_cast %25 : vector<2x1x16xf32> to vector<2x16xf32>
    %cst_17 = arith.constant dense<0.000000e+00> : vector<2x16xf32>
    %27 = tpu.matmul %23, %16, %cst_17 {dimension_numbers = #tpu.dot_dimension_numbers<[1], [0], [0], [1], [0, 0, 1, 1], [], []>} : vector<2x16xf32>, vector<16x16xf32>, vector<2x16xf32> -> vector<2x16xf32>
    %28 = arith.addf %26, %27 : vector<2x16xf32>
    %29 = vector.extract_strided_slice %10 {offsets = [0, 0, 0], sizes = [2, 1, 16], strides = [1, 1, 1]} : vector<2x8x16xf32> to vector<2x1x16xf32>
    %30 = vector.shape_cast %29 : vector<2x1x16xf32> to vector<2x16xf32>
    %cst_18 = arith.constant dense<0.000000e+00> : vector<2x16xf32>
    %31 = tpu.matmul %23, %18, %cst_18 {dimension_numbers = #tpu.dot_dimension_numbers<[1], [0], [0], [1], [0, 0, 1, 1], [], []>} : vector<2x16xf32>, vector<16x16xf32>, vector<2x16xf32> -> vector<2x16xf32>
    %32 = arith.addf %30, %31 : vector<2x16xf32>
    %33 = vector.extract_strided_slice %12 {offsets = [0, 0, 0], sizes = [2, 1, 16], strides = [1, 1, 1]} : vector<2x8x16xf32> to vector<2x1x16xf32>
    %34 = vector.shape_cast %33 : vector<2x1x16xf32> to vector<2x16xf32>
    %cst_19 = arith.constant dense<0.000000e+00> : vector<2x16xf32>
    %35 = tpu.matmul %23, %20, %cst_19 {dimension_numbers = #tpu.dot_dimension_numbers<[1], [0], [0], [1], [0, 0, 1, 1], [], []>} : vector<2x16xf32>, vector<16x16xf32>, vector<2x16xf32> -> vector<2x16xf32>
    %36 = arith.addf %34, %35 : vector<2x16xf32>
    %37 = vector.extract_strided_slice %14 {offsets = [0, 0, 0], sizes = [2, 1, 16], strides = [1, 1, 1]} : vector<2x8x16xf32> to vector<2x1x16xf32>
    %38 = vector.shape_cast %37 : vector<2x1x16xf32> to vector<2x16xf32>
    %cst_20 = arith.constant dense<0.000000e+00> : vector<2x16xf32>
    %39 = tpu.matmul %23, %22, %cst_20 {dimension_numbers = #tpu.dot_dimension_numbers<[1], [0], [0], [1], [0, 0, 1, 1], [], []>} : vector<2x16xf32>, vector<16x16xf32>, vector<2x16xf32> -> vector<2x16xf32>
    %40 = arith.addf %38, %39 : vector<2x16xf32>
    %41 = arith.negf %28 : vector<2x16xf32>
    %42 = math.exp %41 : vector<2x16xf32>
    %cst_21 = arith.constant 1.000000e+00 : f32
    %43 = vector.broadcast %cst_21 : f32 to vector<2x16xf32>
    %44 = arith.addf %43, %42 : vector<2x16xf32>
    %45 = arith.divf %43, %44 : vector<2x16xf32>
    %46 = arith.negf %32 : vector<2x16xf32>
    %47 = math.exp %46 : vector<2x16xf32>
    %cst_22 = arith.constant 1.000000e+00 : f32
    %48 = vector.broadcast %cst_22 : f32 to vector<2x16xf32>
    %49 = arith.addf %48, %47 : vector<2x16xf32>
    %50 = arith.divf %48, %49 : vector<2x16xf32>
    %51 = math.tanh %36 : vector<2x16xf32>
    %52 = arith.negf %40 : vector<2x16xf32>
    %53 = math.exp %52 : vector<2x16xf32>
    %cst_23 = arith.constant 1.000000e+00 : f32
    %54 = vector.broadcast %cst_23 : f32 to vector<2x16xf32>
    %55 = arith.addf %54, %53 : vector<2x16xf32>
    %56 = arith.divf %54, %55 : vector<2x16xf32>
    %57 = arith.mulf %50, %24 : vector<2x16xf32>
    %58 = arith.mulf %45, %51 : vector<2x16xf32>
    %59 = arith.addf %57, %58 : vector<2x16xf32>
    %60 = math.tanh %59 : vector<2x16xf32>
    %61 = arith.mulf %56, %60 : vector<2x16xf32>
    %62 = vector.shape_cast %61 : vector<2x16xf32> to vector<2x1x16xf32>
    %c0_24 = arith.constant 0 : index
    %c0_25 = arith.constant 0 : index
    %c0_26 = arith.constant 0 : index
    %63 = vector.load %arg7[%c0_24, %c0_25, %c0_26] : memref<2x8x16xf32, #tpu.memory_space<vmem>>, vector<2x1x16xf32>
    tpu.vector_store %arg7[%c0_24, %c0_25, %c0_26], %62 {strides = array<i32>} : memref<2x8x16xf32, #tpu.memory_space<vmem>>, vector<2x1x16xf32>,
    %64 = vector.extract_strided_slice %8 {offsets = [0, 1, 0], sizes = [2, 1, 16], strides = [1, 1, 1]} : vector<2x8x16xf32> to vector<2x1x16xf32>
    %65 = vector.shape_cast %64 : vector<2x1x16xf32> to vector<2x16xf32>
    %cst_27 = arith.constant dense<0.000000e+00> : vector<2x16xf32>
    %66 = tpu.matmul %61, %16, %cst_27 {dimension_numbers = #tpu.dot_dimension_numbers<[1], [0], [0], [1], [0, 0, 1, 1], [], []>} : vector<2x16xf32>, vector<16x16xf32>, vector<2x16xf32> -> vector<2x16xf32>
    %67 = arith.addf %65, %66 : vector<2x16xf32>
    %68 = vector.extract_strided_slice %10 {offsets = [0, 1, 0], sizes = [2, 1, 16], strides = [1, 1, 1]} : vector<2x8x16xf32> to vector<2x1x16xf32>
    %69 = vector.shape_cast %68 : vector<2x1x16xf32> to vector<2x16xf32>
    %cst_28 = arith.constant dense<0.000000e+00> : vector<2x16xf32>
    %70 = tpu.matmul %61, %18, %cst_28 {dimension_numbers = #tpu.dot_dimension_numbers<[1], [0], [0], [1], [0, 0, 1, 1], [], []>} : vector<2x16xf32>, vector<16x16xf32>, vector<2x16xf32> -> vector<2x16xf32>
    %71 = arith.addf %69, %70 : vector<2x16xf32>
    %72 = vector.extract_strided_slice %12 {offsets = [0, 1, 0], sizes = [2, 1, 16], strides = [1, 1, 1]} : vector<2x8x16xf32> to vector<2x1x16xf32>
    %73 = vector.shape_cast %72 : vector<2x1x16xf32> to vector<2x16xf32>
    %cst_29 = arith.constant dense<0.000000e+00> : vector<2x16xf32>
    %74 = tpu.matmul %61, %20, %cst_29 {dimension_numbers = #tpu.dot_dimension_numbers<[1], [0], [0], [1], [0, 0, 1, 1], [], []>} : vector<2x16xf32>, vector<16x16xf32>, vector<2x16xf32> -> vector<2x16xf32>
    %75 = arith.addf %73, %74 : vector<2x16xf32>
    %76 = vector.extract_strided_slice %14 {offsets = [0, 1, 0], sizes = [2, 1, 16], strides = [1, 1, 1]} : vector<2x8x16xf32> to vector<2x1x16xf32>
    %77 = vector.shape_cast %76 : vector<2x1x16xf32> to vector<2x16xf32>
    %cst_30 = arith.constant dense<0.000000e+00> : vector<2x16xf32>
    %78 = tpu.matmul %61, %22, %cst_30 {dimension_numbers = #tpu.dot_dimension_numbers<[1], [0], [0], [1], [0, 0, 1, 1], [], []>} : vector<2x16xf32>, vector<16x16xf32>, vector<2x16xf32> -> vector<2x16xf32>
    %79 = arith.addf %77, %78 : vector<2x16xf32>
    %80 = arith.negf %67 : vector<2x16xf32>
    %81 = math.exp %80 : vector<2x16xf32>
    %cst_31 = arith.constant 1.000000e+00 : f32
    %82 = vector.broadcast %cst_31 : f32 to vector<2x16xf32>
    %83 = arith.addf %82, %81 : vector<2x16xf32>
    %84 = arith.divf %82, %83 : vector<2x16xf32>
    %85 = arith.negf %71 : vector<2x16xf32>
    %86 = math.exp %85 : vector<2x16xf32>
    %cst_32 = arith.constant 1.000000e+00 : f32
    %87 = vector.broadcast %cst_32 : f32 to vector<2x16xf32>
    %88 = arith.addf %87, %86 : vector<2x16xf32>
    %89 = arith.divf %87, %88 : vector<2x16xf32>
    %90 = math.tanh %75 : vector<2x16xf32>
    %91 = arith.negf %79 : vector<2x16xf32>
    %92 = math.exp %91 : vector<2x16xf32>
    %cst_33 = arith.constant 1.000000e+00 : f32
    %93 = vector.broadcast %cst_33 : f32 to vector<2x16xf32>
    %94 = arith.addf %93, %92 : vector<2x16xf32>
    %95 = arith.divf %93, %94 : vector<2x16xf32>
    %96 = arith.mulf %89, %59 : vector<2x16xf32>
    %97 = arith.mulf %84, %90 : vector<2x16xf32>
    %98 = arith.addf %96, %97 : vector<2x16xf32>
    %99 = math.tanh %98 : vector<2x16xf32>
    %100 = arith.mulf %95, %99 : vector<2x16xf32>
    %101 = vector.shape_cast %100 : vector<2x16xf32> to vector<2x1x16xf32>
    %c0_34 = arith.constant 0 : index
    %c1_35 = arith.constant 1 : index
    %c0_36 = arith.constant 0 : index
    %102 = vector.load %arg7[%c0_34, %c1_35, %c0_36] : memref<2x8x16xf32, #tpu.memory_space<vmem>>, vector<2x1x16xf32>
    tpu.vector_store %arg7[%c0_34, %c1_35, %c0_36], %101 {strides = array<i32>} : memref<2x8x16xf32, #tpu.memory_space<vmem>>, vector<2x1x16xf32>,
    %103 = vector.extract_strided_slice %8 {offsets = [0, 2, 0], sizes = [2, 1, 16], strides = [1, 1, 1]} : vector<2x8x16xf32> to vector<2x1x16xf32>
    %104 = vector.shape_cast %103 : vector<2x1x16xf32> to vector<2x16xf32>
    %cst_37 = arith.constant dense<0.000000e+00> : vector<2x16xf32>
    %105 = tpu.matmul %100, %16, %cst_37 {dimension_numbers = #tpu.dot_dimension_numbers<[1], [0], [0], [1], [0, 0, 1, 1], [], []>} : vector<2x16xf32>, vector<16x16xf32>, vector<2x16xf32> -> vector<2x16xf32>
    %106 = arith.addf %104, %105 : vector<2x16xf32>
    %107 = vector.extract_strided_slice %10 {offsets = [0, 2, 0], sizes = [2, 1, 16], strides = [1, 1, 1]} : vector<2x8x16xf32> to vector<2x1x16xf32>
    %108 = vector.shape_cast %107 : vector<2x1x16xf32> to vector<2x16xf32>
    %cst_38 = arith.constant dense<0.000000e+00> : vector<2x16xf32>
    %109 = tpu.matmul %100, %18, %cst_38 {dimension_numbers = #tpu.dot_dimension_numbers<[1], [0], [0], [1], [0, 0, 1, 1], [], []>} : vector<2x16xf32>, vector<16x16xf32>, vector<2x16xf32> -> vector<2x16xf32>
    %110 = arith.addf %108, %109 : vector<2x16xf32>
    %111 = vector.extract_strided_slice %12 {offsets = [0, 2, 0], sizes = [2, 1, 16], strides = [1, 1, 1]} : vector<2x8x16xf32> to vector<2x1x16xf32>
    %112 = vector.shape_cast %111 : vector<2x1x16xf32> to vector<2x16xf32>
    %cst_39 = arith.constant dense<0.000000e+00> : vector<2x16xf32>
    %113 = tpu.matmul %100, %20, %cst_39 {dimension_numbers = #tpu.dot_dimension_numbers<[1], [0], [0], [1], [0, 0, 1, 1], [], []>} : vector<2x16xf32>, vector<16x16xf32>, vector<2x16xf32> -> vector<2x16xf32>
    %114 = arith.addf %112, %113 : vector<2x16xf32>
    %115 = vector.extract_strided_slice %14 {offsets = [0, 2, 0], sizes = [2, 1, 16], strides = [1, 1, 1]} : vector<2x8x16xf32> to vector<2x1x16xf32>
    %116 = vector.shape_cast %115 : vector<2x1x16xf32> to vector<2x16xf32>
    %cst_40 = arith.constant dense<0.000000e+00> : vector<2x16xf32>
    %117 = tpu.matmul %100, %22, %cst_40 {dimension_numbers = #tpu.dot_dimension_numbers<[1], [0], [0], [1], [0, 0, 1, 1], [], []>} : vector<2x16xf32>, vector<16x16xf32>, vector<2x16xf32> -> vector<2x16xf32>
    %118 = arith.addf %116, %117 : vector<2x16xf32>
    %119 = arith.negf %106 : vector<2x16xf32>
    %120 = math.exp %119 : vector<2x16xf32>
    %cst_41 = arith.constant 1.000000e+00 : f32
    %121 = vector.broadcast %cst_41 : f32 to vector<2x16xf32>
    %122 = arith.addf %121, %120 : vector<2x16xf32>
    %123 = arith.divf %121, %122 : vector<2x16xf32>
    %124 = arith.negf %110 : vector<2x16xf32>
    %125 = math.exp %124 : vector<2x16xf32>
    %cst_42 = arith.constant 1.000000e+00 : f32
    %126 = vector.broadcast %cst_42 : f32 to vector<2x16xf32>
    %127 = arith.addf %126, %125 : vector<2x16xf32>
    %128 = arith.divf %126, %127 : vector<2x16xf32>
    %129 = math.tanh %114 : vector<2x16xf32>
    %130 = arith.negf %118 : vector<2x16xf32>
    %131 = math.exp %130 : vector<2x16xf32>
    %cst_43 = arith.constant 1.000000e+00 : f32
    %132 = vector.broadcast %cst_43 : f32 to vector<2x16xf32>
    %133 = arith.addf %132, %131 : vector<2x16xf32>
    %134 = arith.divf %132, %133 : vector<2x16xf32>
    %135 = arith.mulf %128, %98 : vector<2x16xf32>
    %136 = arith.mulf %123, %129 : vector<2x16xf32>
    %137 = arith.addf %135, %136 : vector<2x16xf32>
    %138 = math.tanh %137 : vector<2x16xf32>
    %139 = arith.mulf %134, %138 : vector<2x16xf32>
    %140 = vector.shape_cast %139 : vector<2x16xf32> to vector<2x1x16xf32>
    %c0_44 = arith.constant 0 : index
    %c2_45 = arith.constant 2 : index
    %c0_46 = arith.constant 0 : index
    %141 = vector.load %arg7[%c0_44, %c2_45, %c0_46] : memref<2x8x16xf32, #tpu.memory_space<vmem>>, vector<2x1x16xf32>
    tpu.vector_store %arg7[%c0_44, %c2_45, %c0_46], %140 {strides = array<i32>} : memref<2x8x16xf32, #tpu.memory_space<vmem>>, vector<2x1x16xf32>,
    %142 = vector.extract_strided_slice %8 {offsets = [0, 3, 0], sizes = [2, 1, 16], strides = [1, 1, 1]} : vector<2x8x16xf32> to vector<2x1x16xf32>
    %143 = vector.shape_cast %142 : vector<2x1x16xf32> to vector<2x16xf32>
    %cst_47 = arith.constant dense<0.000000e+00> : vector<2x16xf32>
    %144 = tpu.matmul %139, %16, %cst_47 {dimension_numbers = #tpu.dot_dimension_numbers<[1], [0], [0], [1], [0, 0, 1, 1], [], []>} : vector<2x16xf32>, vector<16x16xf32>, vector<2x16xf32> -> vector<2x16xf32>
    %145 = arith.addf %143, %144 : vector<2x16xf32>
    %146 = vector.extract_strided_slice %10 {offsets = [0, 3, 0], sizes = [2, 1, 16], strides = [1, 1, 1]} : vector<2x8x16xf32> to vector<2x1x16xf32>
    %147 = vector.shape_cast %146 : vector<2x1x16xf32> to vector<2x16xf32>
    %cst_48 = arith.constant dense<0.000000e+00> : vector<2x16xf32>
    %148 = tpu.matmul %139, %18, %cst_48 {dimension_numbers = #tpu.dot_dimension_numbers<[1], [0], [0], [1], [0, 0, 1, 1], [], []>} : vector<2x16xf32>, vector<16x16xf32>, vector<2x16xf32> -> vector<2x16xf32>
    %149 = arith.addf %147, %148 : vector<2x16xf32>
    %150 = vector.extract_strided_slice %12 {offsets = [0, 3, 0], sizes = [2, 1, 16], strides = [1, 1, 1]} : vector<2x8x16xf32> to vector<2x1x16xf32>
    %151 = vector.shape_cast %150 : vector<2x1x16xf32> to vector<2x16xf32>
    %cst_49 = arith.constant dense<0.000000e+00> : vector<2x16xf32>
    %152 = tpu.matmul %139, %20, %cst_49 {dimension_numbers = #tpu.dot_dimension_numbers<[1], [0], [0], [1], [0, 0, 1, 1], [], []>} : vector<2x16xf32>, vector<16x16xf32>, vector<2x16xf32> -> vector<2x16xf32>
    %153 = arith.addf %151, %152 : vector<2x16xf32>
    %154 = vector.extract_strided_slice %14 {offsets = [0, 3, 0], sizes = [2, 1, 16], strides = [1, 1, 1]} : vector<2x8x16xf32> to vector<2x1x16xf32>
    %155 = vector.shape_cast %154 : vector<2x1x16xf32> to vector<2x16xf32>
    %cst_50 = arith.constant dense<0.000000e+00> : vector<2x16xf32>
    %156 = tpu.matmul %139, %22, %cst_50 {dimension_numbers = #tpu.dot_dimension_numbers<[1], [0], [0], [1], [0, 0, 1, 1], [], []>} : vector<2x16xf32>, vector<16x16xf32>, vector<2x16xf32> -> vector<2x16xf32>
    %157 = arith.addf %155, %156 : vector<2x16xf32>
    %158 = arith.negf %145 : vector<2x16xf32>
    %159 = math.exp %158 : vector<2x16xf32>
    %cst_51 = arith.constant 1.000000e+00 : f32
    %160 = vector.broadcast %cst_51 : f32 to vector<2x16xf32>
    %161 = arith.addf %160, %159 : vector<2x16xf32>
    %162 = arith.divf %160, %161 : vector<2x16xf32>
    %163 = arith.negf %149 : vector<2x16xf32>
    %164 = math.exp %163 : vector<2x16xf32>
    %cst_52 = arith.constant 1.000000e+00 : f32
    %165 = vector.broadcast %cst_52 : f32 to vector<2x16xf32>
    %166 = arith.addf %165, %164 : vector<2x16xf32>
    %167 = arith.divf %165, %166 : vector<2x16xf32>
    %168 = math.tanh %153 : vector<2x16xf32>
    %169 = arith.negf %157 : vector<2x16xf32>
    %170 = math.exp %169 : vector<2x16xf32>
    %cst_53 = arith.constant 1.000000e+00 : f32
    %171 = vector.broadcast %cst_53 : f32 to vector<2x16xf32>
    %172 = arith.addf %171, %170 : vector<2x16xf32>
    %173 = arith.divf %171, %172 : vector<2x16xf32>
    %174 = arith.mulf %167, %137 : vector<2x16xf32>
    %175 = arith.mulf %162, %168 : vector<2x16xf32>
    %176 = arith.addf %174, %175 : vector<2x16xf32>
    %177 = math.tanh %176 : vector<2x16xf32>
    %178 = arith.mulf %173, %177 : vector<2x16xf32>
    %179 = vector.shape_cast %178 : vector<2x16xf32> to vector<2x1x16xf32>
    %c0_54 = arith.constant 0 : index
    %c3_55 = arith.constant 3 : index
    %c0_56 = arith.constant 0 : index
    %180 = vector.load %arg7[%c0_54, %c3_55, %c0_56] : memref<2x8x16xf32, #tpu.memory_space<vmem>>, vector<2x1x16xf32>
    tpu.vector_store %arg7[%c0_54, %c3_55, %c0_56], %179 {strides = array<i32>} : memref<2x8x16xf32, #tpu.memory_space<vmem>>, vector<2x1x16xf32>,
    %181 = vector.extract_strided_slice %8 {offsets = [0, 4, 0], sizes = [2, 1, 16], strides = [1, 1, 1]} : vector<2x8x16xf32> to vector<2x1x16xf32>
    %182 = vector.shape_cast %181 : vector<2x1x16xf32> to vector<2x16xf32>
    %cst_57 = arith.constant dense<0.000000e+00> : vector<2x16xf32>
    %183 = tpu.matmul %178, %16, %cst_57 {dimension_numbers = #tpu.dot_dimension_numbers<[1], [0], [0], [1], [0, 0, 1, 1], [], []>} : vector<2x16xf32>, vector<16x16xf32>, vector<2x16xf32> -> vector<2x16xf32>
    %184 = arith.addf %182, %183 : vector<2x16xf32>
    %185 = vector.extract_strided_slice %10 {offsets = [0, 4, 0], sizes = [2, 1, 16], strides = [1, 1, 1]} : vector<2x8x16xf32> to vector<2x1x16xf32>
    %186 = vector.shape_cast %185 : vector<2x1x16xf32> to vector<2x16xf32>
    %cst_58 = arith.constant dense<0.000000e+00> : vector<2x16xf32>
    %187 = tpu.matmul %178, %18, %cst_58 {dimension_numbers = #tpu.dot_dimension_numbers<[1], [0], [0], [1], [0, 0, 1, 1], [], []>} : vector<2x16xf32>, vector<16x16xf32>, vector<2x16xf32> -> vector<2x16xf32>
    %188 = arith.addf %186, %187 : vector<2x16xf32>
    %189 = vector.extract_strided_slice %12 {offsets = [0, 4, 0], sizes = [2, 1, 16], strides = [1, 1, 1]} : vector<2x8x16xf32> to vector<2x1x16xf32>
    %190 = vector.shape_cast %189 : vector<2x1x16xf32> to vector<2x16xf32>
    %cst_59 = arith.constant dense<0.000000e+00> : vector<2x16xf32>
    %191 = tpu.matmul %178, %20, %cst_59 {dimension_numbers = #tpu.dot_dimension_numbers<[1], [0], [0], [1], [0, 0, 1, 1], [], []>} : vector<2x16xf32>, vector<16x16xf32>, vector<2x16xf32> -> vector<2x16xf32>
    %192 = arith.addf %190, %191 : vector<2x16xf32>
    %193 = vector.extract_strided_slice %14 {offsets = [0, 4, 0], sizes = [2, 1, 16], strides = [1, 1, 1]} : vector<2x8x16xf32> to vector<2x1x16xf32>
    %194 = vector.shape_cast %193 : vector<2x1x16xf32> to vector<2x16xf32>
    %cst_60 = arith.constant dense<0.000000e+00> : vector<2x16xf32>
    %195 = tpu.matmul %178, %22, %cst_60 {dimension_numbers = #tpu.dot_dimension_numbers<[1], [0], [0], [1], [0, 0, 1, 1], [], []>} : vector<2x16xf32>, vector<16x16xf32>, vector<2x16xf32> -> vector<2x16xf32>
    %196 = arith.addf %194, %195 : vector<2x16xf32>
    %197 = arith.negf %184 : vector<2x16xf32>
    %198 = math.exp %197 : vector<2x16xf32>
    %cst_61 = arith.constant 1.000000e+00 : f32
    %199 = vector.broadcast %cst_61 : f32 to vector<2x16xf32>
    %200 = arith.addf %199, %198 : vector<2x16xf32>
    %201 = arith.divf %199, %200 : vector<2x16xf32>
    %202 = arith.negf %188 : vector<2x16xf32>
    %203 = math.exp %202 : vector<2x16xf32>
    %cst_62 = arith.constant 1.000000e+00 : f32
    %204 = vector.broadcast %cst_62 : f32 to vector<2x16xf32>
    %205 = arith.addf %204, %203 : vector<2x16xf32>
    %206 = arith.divf %204, %205 : vector<2x16xf32>
    %207 = math.tanh %192 : vector<2x16xf32>
    %208 = arith.negf %196 : vector<2x16xf32>
    %209 = math.exp %208 : vector<2x16xf32>
    %cst_63 = arith.constant 1.000000e+00 : f32
    %210 = vector.broadcast %cst_63 : f32 to vector<2x16xf32>
    %211 = arith.addf %210, %209 : vector<2x16xf32>
    %212 = arith.divf %210, %211 : vector<2x16xf32>
    %213 = arith.mulf %206, %176 : vector<2x16xf32>
    %214 = arith.mulf %201, %207 : vector<2x16xf32>
    %215 = arith.addf %213, %214 : vector<2x16xf32>
    %216 = math.tanh %215 : vector<2x16xf32>
    %217 = arith.mulf %212, %216 : vector<2x16xf32>
    %218 = vector.shape_cast %217 : vector<2x16xf32> to vector<2x1x16xf32>
    %c0_64 = arith.constant 0 : index
    %c4 = arith.constant 4 : index
    %c0_65 = arith.constant 0 : index
    %219 = vector.load %arg7[%c0_64, %c4, %c0_65] : memref<2x8x16xf32, #tpu.memory_space<vmem>>, vector<2x1x16xf32>
    tpu.vector_store %arg7[%c0_64, %c4, %c0_65], %218 {strides = array<i32>} : memref<2x8x16xf32, #tpu.memory_space<vmem>>, vector<2x1x16xf32>,
    %220 = vector.extract_strided_slice %8 {offsets = [0, 5, 0], sizes = [2, 1, 16], strides = [1, 1, 1]} : vector<2x8x16xf32> to vector<2x1x16xf32>
    %221 = vector.shape_cast %220 : vector<2x1x16xf32> to vector<2x16xf32>
    %cst_66 = arith.constant dense<0.000000e+00> : vector<2x16xf32>
    %222 = tpu.matmul %217, %16, %cst_66 {dimension_numbers = #tpu.dot_dimension_numbers<[1], [0], [0], [1], [0, 0, 1, 1], [], []>} : vector<2x16xf32>, vector<16x16xf32>, vector<2x16xf32> -> vector<2x16xf32>
    %223 = arith.addf %221, %222 : vector<2x16xf32>
    %224 = vector.extract_strided_slice %10 {offsets = [0, 5, 0], sizes = [2, 1, 16], strides = [1, 1, 1]} : vector<2x8x16xf32> to vector<2x1x16xf32>
    %225 = vector.shape_cast %224 : vector<2x1x16xf32> to vector<2x16xf32>
    %cst_67 = arith.constant dense<0.000000e+00> : vector<2x16xf32>
    %226 = tpu.matmul %217, %18, %cst_67 {dimension_numbers = #tpu.dot_dimension_numbers<[1], [0], [0], [1], [0, 0, 1, 1], [], []>} : vector<2x16xf32>, vector<16x16xf32>, vector<2x16xf32> -> vector<2x16xf32>
    %227 = arith.addf %225, %226 : vector<2x16xf32>
    %228 = vector.extract_strided_slice %12 {offsets = [0, 5, 0], sizes = [2, 1, 16], strides = [1, 1, 1]} : vector<2x8x16xf32> to vector<2x1x16xf32>
    %229 = vector.shape_cast %228 : vector<2x1x16xf32> to vector<2x16xf32>
    %cst_68 = arith.constant dense<0.000000e+00> : vector<2x16xf32>
    %230 = tpu.matmul %217, %20, %cst_68 {dimension_numbers = #tpu.dot_dimension_numbers<[1], [0], [0], [1], [0, 0, 1, 1], [], []>} : vector<2x16xf32>, vector<16x16xf32>, vector<2x16xf32> -> vector<2x16xf32>
    %231 = arith.addf %229, %230 : vector<2x16xf32>
    %232 = vector.extract_strided_slice %14 {offsets = [0, 5, 0], sizes = [2, 1, 16], strides = [1, 1, 1]} : vector<2x8x16xf32> to vector<2x1x16xf32>
    %233 = vector.shape_cast %232 : vector<2x1x16xf32> to vector<2x16xf32>
    %cst_69 = arith.constant dense<0.000000e+00> : vector<2x16xf32>
    %234 = tpu.matmul %217, %22, %cst_69 {dimension_numbers = #tpu.dot_dimension_numbers<[1], [0], [0], [1], [0, 0, 1, 1], [], []>} : vector<2x16xf32>, vector<16x16xf32>, vector<2x16xf32> -> vector<2x16xf32>
    %235 = arith.addf %233, %234 : vector<2x16xf32>
    %236 = arith.negf %223 : vector<2x16xf32>
    %237 = math.exp %236 : vector<2x16xf32>
    %cst_70 = arith.constant 1.000000e+00 : f32
    %238 = vector.broadcast %cst_70 : f32 to vector<2x16xf32>
    %239 = arith.addf %238, %237 : vector<2x16xf32>
    %240 = arith.divf %238, %239 : vector<2x16xf32>
    %241 = arith.negf %227 : vector<2x16xf32>
    %242 = math.exp %241 : vector<2x16xf32>
    %cst_71 = arith.constant 1.000000e+00 : f32
    %243 = vector.broadcast %cst_71 : f32 to vector<2x16xf32>
    %244 = arith.addf %243, %242 : vector<2x16xf32>
    %245 = arith.divf %243, %244 : vector<2x16xf32>
    %246 = math.tanh %231 : vector<2x16xf32>
    %247 = arith.negf %235 : vector<2x16xf32>
    %248 = math.exp %247 : vector<2x16xf32>
    %cst_72 = arith.constant 1.000000e+00 : f32
    %249 = vector.broadcast %cst_72 : f32 to vector<2x16xf32>
    %250 = arith.addf %249, %248 : vector<2x16xf32>
    %251 = arith.divf %249, %250 : vector<2x16xf32>
    %252 = arith.mulf %245, %215 : vector<2x16xf32>
    %253 = arith.mulf %240, %246 : vector<2x16xf32>
    %254 = arith.addf %252, %253 : vector<2x16xf32>
    %255 = math.tanh %254 : vector<2x16xf32>
    %256 = arith.mulf %251, %255 : vector<2x16xf32>
    %257 = vector.shape_cast %256 : vector<2x16xf32> to vector<2x1x16xf32>
    %c0_73 = arith.constant 0 : index
    %c5 = arith.constant 5 : index
    %c0_74 = arith.constant 0 : index
    %258 = vector.load %arg7[%c0_73, %c5, %c0_74] : memref<2x8x16xf32, #tpu.memory_space<vmem>>, vector<2x1x16xf32>
    tpu.vector_store %arg7[%c0_73, %c5, %c0_74], %257 {strides = array<i32>} : memref<2x8x16xf32, #tpu.memory_space<vmem>>, vector<2x1x16xf32>,
    %259 = vector.extract_strided_slice %8 {offsets = [0, 6, 0], sizes = [2, 1, 16], strides = [1, 1, 1]} : vector<2x8x16xf32> to vector<2x1x16xf32>
    %260 = vector.shape_cast %259 : vector<2x1x16xf32> to vector<2x16xf32>
    %cst_75 = arith.constant dense<0.000000e+00> : vector<2x16xf32>
    %261 = tpu.matmul %256, %16, %cst_75 {dimension_numbers = #tpu.dot_dimension_numbers<[1], [0], [0], [1], [0, 0, 1, 1], [], []>} : vector<2x16xf32>, vector<16x16xf32>, vector<2x16xf32> -> vector<2x16xf32>
    %262 = arith.addf %260, %261 : vector<2x16xf32>
    %263 = vector.extract_strided_slice %10 {offsets = [0, 6, 0], sizes = [2, 1, 16], strides = [1, 1, 1]} : vector<2x8x16xf32> to vector<2x1x16xf32>
    %264 = vector.shape_cast %263 : vector<2x1x16xf32> to vector<2x16xf32>
    %cst_76 = arith.constant dense<0.000000e+00> : vector<2x16xf32>
    %265 = tpu.matmul %256, %18, %cst_76 {dimension_numbers = #tpu.dot_dimension_numbers<[1], [0], [0], [1], [0, 0, 1, 1], [], []>} : vector<2x16xf32>, vector<16x16xf32>, vector<2x16xf32> -> vector<2x16xf32>
    %266 = arith.addf %264, %265 : vector<2x16xf32>
    %267 = vector.extract_strided_slice %12 {offsets = [0, 6, 0], sizes = [2, 1, 16], strides = [1, 1, 1]} : vector<2x8x16xf32> to vector<2x1x16xf32>
    %268 = vector.shape_cast %267 : vector<2x1x16xf32> to vector<2x16xf32>
    %cst_77 = arith.constant dense<0.000000e+00> : vector<2x16xf32>
    %269 = tpu.matmul %256, %20, %cst_77 {dimension_numbers = #tpu.dot_dimension_numbers<[1], [0], [0], [1], [0, 0, 1, 1], [], []>} : vector<2x16xf32>, vector<16x16xf32>, vector<2x16xf32> -> vector<2x16xf32>
    %270 = arith.addf %268, %269 : vector<2x16xf32>
    %271 = vector.extract_strided_slice %14 {offsets = [0, 6, 0], sizes = [2, 1, 16], strides = [1, 1, 1]} : vector<2x8x16xf32> to vector<2x1x16xf32>
    %272 = vector.shape_cast %271 : vector<2x1x16xf32> to vector<2x16xf32>
    %cst_78 = arith.constant dense<0.000000e+00> : vector<2x16xf32>
    %273 = tpu.matmul %256, %22, %cst_78 {dimension_numbers = #tpu.dot_dimension_numbers<[1], [0], [0], [1], [0, 0, 1, 1], [], []>} : vector<2x16xf32>, vector<16x16xf32>, vector<2x16xf32> -> vector<2x16xf32>
    %274 = arith.addf %272, %273 : vector<2x16xf32>
    %275 = arith.negf %262 : vector<2x16xf32>
    %276 = math.exp %275 : vector<2x16xf32>
    %cst_79 = arith.constant 1.000000e+00 : f32
    %277 = vector.broadcast %cst_79 : f32 to vector<2x16xf32>
    %278 = arith.addf %277, %276 : vector<2x16xf32>
    %279 = arith.divf %277, %278 : vector<2x16xf32>
    %280 = arith.negf %266 : vector<2x16xf32>
    %281 = math.exp %280 : vector<2x16xf32>
    %cst_80 = arith.constant 1.000000e+00 : f32
    %282 = vector.broadcast %cst_80 : f32 to vector<2x16xf32>
    %283 = arith.addf %282, %281 : vector<2x16xf32>
    %284 = arith.divf %282, %283 : vector<2x16xf32>
    %285 = math.tanh %270 : vector<2x16xf32>
    %286 = arith.negf %274 : vector<2x16xf32>
    %287 = math.exp %286 : vector<2x16xf32>
    %cst_81 = arith.constant 1.000000e+00 : f32
    %288 = vector.broadcast %cst_81 : f32 to vector<2x16xf32>
    %289 = arith.addf %288, %287 : vector<2x16xf32>
    %290 = arith.divf %288, %289 : vector<2x16xf32>
    %291 = arith.mulf %284, %254 : vector<2x16xf32>
    %292 = arith.mulf %279, %285 : vector<2x16xf32>
    %293 = arith.addf %291, %292 : vector<2x16xf32>
    %294 = math.tanh %293 : vector<2x16xf32>
    %295 = arith.mulf %290, %294 : vector<2x16xf32>
    %296 = vector.shape_cast %295 : vector<2x16xf32> to vector<2x1x16xf32>
    %c0_82 = arith.constant 0 : index
    %c6 = arith.constant 6 : index
    %c0_83 = arith.constant 0 : index
    %297 = vector.load %arg7[%c0_82, %c6, %c0_83] : memref<2x8x16xf32, #tpu.memory_space<vmem>>, vector<2x1x16xf32>
    tpu.vector_store %arg7[%c0_82, %c6, %c0_83], %296 {strides = array<i32>} : memref<2x8x16xf32, #tpu.memory_space<vmem>>, vector<2x1x16xf32>,
    %298 = vector.extract_strided_slice %8 {offsets = [0, 7, 0], sizes = [2, 1, 16], strides = [1, 1, 1]} : vector<2x8x16xf32> to vector<2x1x16xf32>
    %299 = vector.shape_cast %298 : vector<2x1x16xf32> to vector<2x16xf32>
    %cst_84 = arith.constant dense<0.000000e+00> : vector<2x16xf32>
    %300 = tpu.matmul %295, %16, %cst_84 {dimension_numbers = #tpu.dot_dimension_numbers<[1], [0], [0], [1], [0, 0, 1, 1], [], []>} : vector<2x16xf32>, vector<16x16xf32>, vector<2x16xf32> -> vector<2x16xf32>
    %301 = arith.addf %299, %300 : vector<2x16xf32>
    %302 = vector.extract_strided_slice %10 {offsets = [0, 7, 0], sizes = [2, 1, 16], strides = [1, 1, 1]} : vector<2x8x16xf32> to vector<2x1x16xf32>
    %303 = vector.shape_cast %302 : vector<2x1x16xf32> to vector<2x16xf32>
    %cst_85 = arith.constant dense<0.000000e+00> : vector<2x16xf32>
    %304 = tpu.matmul %295, %18, %cst_85 {dimension_numbers = #tpu.dot_dimension_numbers<[1], [0], [0], [1], [0, 0, 1, 1], [], []>} : vector<2x16xf32>, vector<16x16xf32>, vector<2x16xf32> -> vector<2x16xf32>
    %305 = arith.addf %303, %304 : vector<2x16xf32>
    %306 = vector.extract_strided_slice %12 {offsets = [0, 7, 0], sizes = [2, 1, 16], strides = [1, 1, 1]} : vector<2x8x16xf32> to vector<2x1x16xf32>
    %307 = vector.shape_cast %306 : vector<2x1x16xf32> to vector<2x16xf32>
    %cst_86 = arith.constant dense<0.000000e+00> : vector<2x16xf32>
    %308 = tpu.matmul %295, %20, %cst_86 {dimension_numbers = #tpu.dot_dimension_numbers<[1], [0], [0], [1], [0, 0, 1, 1], [], []>} : vector<2x16xf32>, vector<16x16xf32>, vector<2x16xf32> -> vector<2x16xf32>
    %309 = arith.addf %307, %308 : vector<2x16xf32>
    %310 = vector.extract_strided_slice %14 {offsets = [0, 7, 0], sizes = [2, 1, 16], strides = [1, 1, 1]} : vector<2x8x16xf32> to vector<2x1x16xf32>
    %311 = vector.shape_cast %310 : vector<2x1x16xf32> to vector<2x16xf32>
    %cst_87 = arith.constant dense<0.000000e+00> : vector<2x16xf32>
    %312 = tpu.matmul %295, %22, %cst_87 {dimension_numbers = #tpu.dot_dimension_numbers<[1], [0], [0], [1], [0, 0, 1, 1], [], []>} : vector<2x16xf32>, vector<16x16xf32>, vector<2x16xf32> -> vector<2x16xf32>
    %313 = arith.addf %311, %312 : vector<2x16xf32>
    %314 = arith.negf %301 : vector<2x16xf32>
    %315 = math.exp %314 : vector<2x16xf32>
    %cst_88 = arith.constant 1.000000e+00 : f32
    %316 = vector.broadcast %cst_88 : f32 to vector<2x16xf32>
    %317 = arith.addf %316, %315 : vector<2x16xf32>
    %318 = arith.divf %316, %317 : vector<2x16xf32>
    %319 = arith.negf %305 : vector<2x16xf32>
    %320 = math.exp %319 : vector<2x16xf32>
    %cst_89 = arith.constant 1.000000e+00 : f32
    %321 = vector.broadcast %cst_89 : f32 to vector<2x16xf32>
    %322 = arith.addf %321, %320 : vector<2x16xf32>
    %323 = arith.divf %321, %322 : vector<2x16xf32>
    %324 = math.tanh %309 : vector<2x16xf32>
    %325 = arith.negf %313 : vector<2x16xf32>
    %326 = math.exp %325 : vector<2x16xf32>
    %cst_90 = arith.constant 1.000000e+00 : f32
    %327 = vector.broadcast %cst_90 : f32 to vector<2x16xf32>
    %328 = arith.addf %327, %326 : vector<2x16xf32>
    %329 = arith.divf %327, %328 : vector<2x16xf32>
    %330 = arith.mulf %323, %293 : vector<2x16xf32>
    %331 = arith.mulf %318, %324 : vector<2x16xf32>
    %332 = arith.addf %330, %331 : vector<2x16xf32>
    %333 = math.tanh %332 : vector<2x16xf32>
    %334 = arith.mulf %329, %333 : vector<2x16xf32>
    %335 = vector.shape_cast %334 : vector<2x16xf32> to vector<2x1x16xf32>
    %c0_91 = arith.constant 0 : index
    %c7 = arith.constant 7 : index
    %c0_92 = arith.constant 0 : index
    %336 = vector.load %arg7[%c0_91, %c7, %c0_92] : memref<2x8x16xf32, #tpu.memory_space<vmem>>, vector<2x1x16xf32>
    tpu.vector_store %arg7[%c0_91, %c7, %c0_92], %335 {strides = array<i32>} : memref<2x8x16xf32, #tpu.memory_space<vmem>>, vector<2x1x16xf32>,
    %c0_93 = arith.constant 0 : index
    %c0_94 = arith.constant 0 : index
    %c0_95 = arith.constant 0 : index
    %337 = vector.load %arg7[%c0_93, %c0_94, %c0_95] : memref<2x8x16xf32, #tpu.memory_space<vmem>>, vector<2x8x16xf32>
    %338 = vector.shape_cast %337 : vector<2x8x16xf32> to vector<16x16xf32>
    %c0_96 = arith.constant 0 : index
    %c0_97 = arith.constant 0 : index
    %339 = vector.load %arg4[%c0_96, %c0_97] : memref<16x1xf32, #tpu.memory_space<vmem>>, vector<16x1xf32>
    %cst_98 = arith.constant dense<0.000000e+00> : vector<16x1xf32>
    %340 = tpu.matmul %338, %339, %cst_98 {dimension_numbers = #tpu.dot_dimension_numbers<[1], [0], [0], [1], [0, 0, 1, 1], [], []>} : vector<16x16xf32>, vector<16x1xf32>, vector<16x1xf32> -> vector<16x1xf32>
    %c0_99 = arith.constant 0 : index
    %c0_100 = arith.constant 0 : index
    %341 = vector.load %arg5[%c0_99, %c0_100] : memref<1x1xf32, #tpu.memory_space<vmem>>, vector<1x1xf32>
    %342 = vector.broadcast %341 : vector<1x1xf32> to vector<16x1xf32>
    %343 = arith.addf %340, %342 : vector<16x1xf32>
    %344 = vector.shape_cast %343 : vector<16x1xf32> to vector<2x8x1xf32>
    %c0_101 = arith.constant 0 : index
    %c0_102 = arith.constant 0 : index
    %c0_103 = arith.constant 0 : index
    %345 = vector.load %arg6[%c0_101, %c0_102, %c0_103] : memref<2x8x1xf32, #tpu.memory_space<vmem>>, vector<2x8x1xf32>
    tpu.vector_store %arg6[%c0_101, %c0_102, %c0_103], %344 {strides = array<i32>} : memref<2x8x1xf32, #tpu.memory_space<vmem>>, vector<2x8x1xf32>,
    return
  }
}

</mosaic_0001>

<bundles_post_ra>
// kernel: tpu_custom_call.1
= control target key start
LH: loop header
LB: loop body
LE: loop exit
PB: predicated region body
PF: predicated region fallthrough
CT: control target
= control target key end

     0   :  { %s3381_s0 = inlined_call_operand.vmem [shape: f32[2,8,1], index: 0, kind: input, shape index: {}]   ;;  %s3382_s1 = inlined_call_operand.vmem [shape: f32[1,64], index: 1, kind: input, shape index: {}]   ;;  %s3383_s2 = inlined_call_operand.hbm [shape: f32[4,16,16], index: 2, kind: input, shape index: {}]   ;;  %s3384_s3 = inlined_call_operand.vmem [shape: f32[1,64], index: 3, kind: input, shape index: {}]   ;;  %s3385_s4 = inlined_call_operand.vmem [shape: f32[16,1], index: 4, kind: input, shape index: {}]   ;;  %s3386_s5 = inlined_call_operand.<no memory space> [shape: f32[1,1], index: 5, kind: input, shape index: {}]   ;;  %s3387_s6 = inlined_call_operand.vmem [shape: f32[2,8,1], index: 6, kind: output, shape index: {}]  }
   0x1   :  { %v11_v0 = vstv %s3386_s5 }
   0x2   :  { %12 = vst [vmem:[#allocation3] sm:$0x1] %v11_v0 }
   0x3   :  { %13 = vsyncpa [#allocation5], 0  ;;  %s22_s25 = sshll.u32 %s3383_s2, 4  ;;  %s2853_s26 = smov [#allocation4]   ;;  %s23_s25 = int_to_ptr.hbm [resolvable:$true] %s22_s25 }
   0x4   :  { %s24_s27 = sshll.u32 %s2853_s26, 4  ;;  %s2854_s28 = smov 128   ;;  %s25_s27 = int_to_ptr.vmem [resolvable:$true] %s24_s27 }
   0x5   :  { %s2855_s29 = smov 8  }
   0x6   :  { %30 = dma.hbm_to_vmem [thread:$0]  %s23_s25, 1024, %s25_s27, [#allocation5], %s2854_s28, %s2854_s28, %s2855_s29  }
   0x7   :  { %2851 = dma.done.wait [#allocation5], 1024  }
   0x8   :  { %2852 = vsyncadd [#allocation5], 4294966272  ;;  %v2903_v1 = vld [vmem:[#allocation4 + $0x18] sm:$0xff]  ;;  %v2905_v2 = vld [vmem:[#allocation4 + $0x10] sm:$0xff]  ;;  %vm55_vm0 = vcmask 1040384   ;;  %vm48_vm1 = vcmask 7168  }
   0x9   :  { %137 = vmatpush.msra.mxu3 %v2903_v1  ;;  %v2908_v3 = vld [vmem:[#allocation4 + $0x8] sm:$0xff]  ;;  %v2910_v4 = vld [vmem:[#allocation4] sm:$0xff]  ;;  %v2920_v7 = vld [vmem:[#allocation4 + $0x38] sm:$0xff]  ;;  %v2856_v9 = vmov 0.0   ;;  %s2858_s9 = smov 32   ;;  %s2859_s10 = smov 48  }
   0xa   :  { %v2912_v5 = vld [vmem:[#allocation4 + $0x28] sm:$0xff]  ;;  %111 = vmatpush.msra.mxu1 %v2908_v3  ;;  %395 = vmatpush.msra.mxu2 %v2908_v3  ;;  %v2925_v10 = vld [vmem:[#allocation4 + $0x20] sm:$0xff]  ;;  %v2929_v11 = vld [vmem:[#allocation4 + $0x30] sm:$0xff]  ;;  %s2860_s13 = smov 96  }
   0xb   :  { %v43_v6 = vld [vmem:[%s3382_s1] sm:$0x1]  ;;  %138 = vmatpush.msra.mxu3 %v2905_v2  ;;  %v42_v12 = vld [vmem:[%s3381_s0 + $0x8] sm:$0xff] }
   0xc   :  { %2471 = vmatpush.msk.msra.mxu0 %vm55_vm0, %v43_v6  ;;  %v41_v8 = vld [vmem:[%s3381_s0] sm:$0xff]  ;;  %139 = vmatmul.f32.vlgmr.msra.gmra.mxu3 %v2856_v9  ;;  %s2857_s0 = smov 16  }
   0xd   :  { %112 = vmatpush.msra.mxu1 %v2910_v4  ;;  %167 = vmatpush.msrb.mxu3 %v2912_v5  ;;  %v2561_v21 = vld [vmem:[%s3384_s3] ss:$0 sm:$0xff]  ;;  %s2861_s3 = smov 80  }
   0xe   :  { %113 = vmatmul.f32.vlgmr.msra.gmra.mxu1 %v2856_v9  ;;  %2472 = vmatmul.msk.f32.vlgmr.msra.gmra.mxu0 %vm48_vm1, %v41_v8 }
   0xf   :  { %197 = vmatpush.msrb.mxu1 %v2920_v7  ;;  %168 = vmatpush.msrb.mxu3 %v2925_v10 }
  0x10   :  { %451 = vmatpush.msrb.mxu0 %v2912_v5  ;;  %396 = vmatpush.msra.mxu2 %v2910_v4 }
  0x11   :  { %198 = vmatpush.msrb.mxu1 %v2929_v11  ;;  %421 = vmatpush.msra.mxu3 %v2903_v1 }
  0x12   :  { %452 = vmatpush.msrb.mxu0 %v2925_v10  ;;  %684 = vmatpush.msrb.mxu2 %v2908_v3 }
  0x13   :  { %481 = vmatpush.msra.mxu1 %v2920_v7  ;;  %422 = vmatpush.msra.mxu3 %v2905_v2 }
  0x14   :  { %742 = vmatpush.msra.mxu0 %v2912_v5  ;;  %169 = vmatmul.f32.vlgmr.msrb.gmra.mxu3 %v2856_v9 }
  0x15   :  { %482 = vmatpush.msra.mxu1 %v2929_v11  ;;  %711 = vmatpush.msrb.mxu3 %v2903_v1 }
  0x16   :  { %199 = vmatmul.f32.vlgmr.msrb.gmra.mxu1 %v2856_v9  ;;  %743 = vmatpush.msra.mxu0 %v2925_v10 }
  0x17   :  { %2473 = vmatmul.msk.f32.gmra.mxu0 %vm48_vm1, %v42_v12  ;;  %773 = vmatpush.msrb.mxu1 %v2920_v7 }
  0x18   :  { %685 = vmatpush.msrb.mxu2 %v2910_v4  ;;  %712 = vmatpush.msrb.mxu3 %v2905_v2 }
  0x19   :  { %774 = vmatpush.msrb.mxu1 %v2929_v11 }
  0x8b   :  { %v114_v15 = vpop.f32.mrf.mxu1  ;;  %v76_v20 = vpop.f32.mrf.mxu0 }
  0x8c   :  { %v2968_v26 = vadd.f32 %v2561_v21, %v76_v20  ;;  %v118_v31 = vrot.slane %v114_v15, 1 }
  0x8e   :  { %v121_v34 = vadd.f32 %v114_v15, %v2968_v26 }
  0x8f   :  { %v140_v13 = vpop.f32.mrf.mxu3 }
  0x90   :  { %v144_v14 = vrot.slane %v140_v13, 1  ;;  %v2474_v35 = vmul.f32 -1.442695, %v121_v34 }
  0x92   :  { %147 = vrot.lane.b32.xlu2 %v144_v14, %s2857_s0 }
  0x93   :  { %v2957_v18 = vpop.f32.mrf.mxu1 }
  0x94   :  { %v204_v19 = vrot.slane %v2957_v18, 1  ;;  %v79_v22 = vpop.f32.mrf.mxu0 }
  0x95   :  { %v2965_v23 = vadd.f32 %v2561_v21, %v79_v22 }
  0x97   :  { %v170_v16 = vpop.f32.mrf.mxu3  ;;  %v122_v32 = vadd.f32 %v118_v31, %v2965_v23 }
  0x98   :  { %v174_v17 = vrot.slane %v170_v16, 1 }
  0x99   :  { %v2475_v33 = vmul.f32 -1.442695, %v122_v32 }
  0x9a   :  { %177 = vrot.lane.b32.xlu0 %v174_v17, %s2858_s9  ;;  %145 = vrot.lane.b32.xlu2 %v140_v13, %s2857_s0 }
  0xa2   :  { %175 = vrot.lane.b32.xlu0 %v170_v16, %s2858_s9  ;;  %207 = vrot.lane.b32.xlu2 %v204_v19, %s2859_s10 }
  0xec   :  { %v148_v0 = vpop.permute.xlu2 %147 }
  0xed   :  { %v152_v6 = vadd.f32 %v148_v0, %v2965_v23 }
  0xef   :  { %v2477_v8 = vmul.f32 -1.442695, %v152_v6 }
  0xf4   :  { %v146_v9 = vpop.permute.xlu2 %145 }
  0xf5   :  { %v151_v12 = vadd.f32 %v146_v9, %v2968_v26 }
  0xf7   :  { %v2476_v13 = vmul.f32 -1.442695, %v151_v12 }
 0x10c   :  { %v178_v24 = vpop.permute.xlu0 %177 }
 0x10d   :  { %v182_v25 = vadd.f32 %v178_v24, %v2965_v23 }
 0x10f   :  { %2563 = vtanh.f32 %v182_v25 }
 0x114   :  { %v176_v27 = vpop.permute.xlu0 %175 }
 0x115   :  { %v2564_v28 = vpop.eup %2563  ;;  %v181_v29 = vadd.f32 %v176_v27, %v2968_v26 }
 0x116   :  { %335 = vrot.lane.b32.xlu1 %v2564_v28, %s2860_s13 }
 0x117   :  { %2565 = vtanh.f32 %v181_v29 }
 0x118   :  { %2567 = vpow2.f32 %v2475_v33 }
 0x119   :  { %2569 = vpow2.f32 %v2474_v35 }
 0x11d   :  { %v2566_v30 = vpop.eup %2565 }
 0x11e   :  { %333 = vrot.lane.b32.xlu1 %v2566_v30, %s2860_s13  ;;  %v2568_v36 = vpop.eup %2567 }
 0x11f   :  { %v220_v37 = vadd.f32 1.0, %v2568_v36  ;;  %v2570_v38 = vpop.eup %2569 }
 0x120   :  { %v219_v39 = vadd.f32 1.0, %v2570_v38 }
 0x121   :  { %2571 = vrcp.f32 %v220_v37  ;;  %vm241_vm2 = vweird.f32 %v220_v37  ;;  %v247_v46 = vand.u32 2147483648, %v220_v37  ;;  %v245_v48 = vand.u32 2147483647, %v220_v37 }
 0x122   :  { %2573 = vrcp.f32 %v219_v39  ;;  %vm226_vm6 = vweird.f32 %v219_v39  ;;  %v232_v55 = vand.u32 2147483648, %v219_v39  ;;  %v230_v58 = vand.u32 2147483647, %v219_v39 }
 0x123   :  { %v248_v50 = vor.u32 1.1754944e-38, %v247_v46  ;;  %vm246_vm5 = vcmp.eq.f32.partialorder %v245_v48, 8.507059e+37  ;;  %2575 = vpow2.f32 %v2477_v8  ;;  %v208_v48 = vpop.permute.xlu2 %207 }
 0x124   :  { %v233_v59 = vor.u32 1.1754944e-38, %v232_v55  ;;  %vm231_vm9 = vcmp.eq.f32.partialorder %v230_v58, 8.507059e+37  ;;  %2577 = vpow2.f32 %v2476_v13 }
 0x127   :  { %v2572_v40 = vpop.eup %2571 }
 0x128   :  { %v237_v41 = vmul.f32 %v2572_v40, %v220_v37  ;;  %v2574_v43 = vpop.eup %2573  ;;  %vm242_vm3 = vweird.f32 %v2572_v40 }
 0x129   :  { %v222_v45 = vmul.f32 %v2574_v43, %v219_v39  ;;  %vm243_vm4 = vmor %vm241_vm2, %vm242_vm3  ;;  %vm227_vm7 = vweird.f32 %v2574_v43  ;;  %v2576_v14 = vpop.eup %2575 }
 0x12a   :  { %v238_v42 = vsub.f32 1.0, %v237_v41  ;;  %vm228_vm8 = vmor %vm226_vm6, %vm227_vm7  ;;  %v258_v15 = vadd.f32 1.0, %v2576_v14  ;;  %v2578_v16 = vpop.eup %2577 }
 0x12b   :  { %v223_v49 = vsub.f32 1.0, %v222_v45  ;;  %v257_v17 = vadd.f32 1.0, %v2578_v16 }
 0x12c   :  { %v239_v44 = vmul.f32 %v2572_v40, %v238_v42  ;;  %2579 = vrcp.f32 %v258_v15  ;;  %v285_v28 = vand.u32 2147483648, %v258_v15  ;;  %vm279_vm11 = vweird.f32 %v258_v15 }
 0x12d   :  { %v224_v52 = vmul.f32 %v2574_v43, %v223_v49  ;;  %2581 = vrcp.f32 %v257_v17  ;;  %v283_v29 = vand.u32 2147483647, %v258_v15  ;;  %v270_v35 = vand.u32 2147483648, %v257_v17 }
 0x12e   :  { %v240_v47 = vadd.f32 %v2572_v40, %v239_v44  ;;  %v286_v32 = vor.u32 1.1754944e-38, %v285_v28  ;;  %vm264_vm15 = vweird.f32 %v257_v17  ;;  %v268_v37 = vand.u32 2147483647, %v257_v17 }
 0x12f   :  { %v225_v57 = vadd.f32 %v2574_v43, %v224_v52  ;;  %vm284_vm13 = vcmp.eq.f32.partialorder %v283_v29, 8.507059e+37  ;;  %v271_v41 = vor.u32 1.1754944e-38, %v270_v35 }
 0x130   :  { %v244_v51 = vsel %vm243_vm4, %v2572_v40, %v240_v47  ;;  %vm269_vm2 = vcmp.eq.f32.partialorder %v268_v37, 8.507059e+37 }
 0x131   :  { %v249_v54 = vsel %vm246_vm5, %v248_v50, %v244_v51  ;;  %v229_v60 = vsel %vm228_vm8, %v2574_v43, %v225_v57  ;;  %v212_v50 = vadd.f32 %v208_v48, %v2965_v23 }
 0x132   :  { %v234_v62 = vsel %vm231_vm9, %v233_v59, %v229_v60  ;;  %v2580_v19 = vpop.eup %2579 }
 0x133   :  { %v2582_v21 = vpop.eup %2581  ;;  %vm280_vm10 = vweird.f32 %v2580_v19  ;;  %v2479_v52 = vmul.f32 -1.442695, %v212_v50 }
 0x134   :  { %v260_v24 = vmul.f32 %v2582_v21, %v257_v17  ;;  %vm281_vm12 = vmor %vm279_vm11, %vm280_vm10  ;;  %vm265_vm14 = vweird.f32 %v2582_v21  ;;  %vm375_vm11 = vcmask 1041409  }
 0x135   :  { %vm266_vm0 = vmor %vm264_vm15, %vm265_vm14 }
 0x136   :  { %v261_v27 = vsub.f32 1.0, %v260_v24 }
 0x138   :  { %v262_v31 = vmul.f32 %v2582_v21, %v261_v27 }
 0x13a   :  { %v263_v34 = vadd.f32 %v2582_v21, %v262_v31 }
 0x13c   :  { %v267_v40 = vsel %vm266_vm0, %v2582_v21, %v263_v34 }
 0x13d   :  { %v272_v42 = vsel %vm269_vm2, %v271_v41, %v267_v40 }
 0x13e   :  { %v329_v43 = vmul.f32 0.0, %v272_v42 }
 0x188   :  { %v336_v53 = vpop.permute.xlu1 %335 }
 0x189   :  { %v340_v56 = vmul.f32 %v336_v53, %v249_v54 }
 0x18b   :  { %345 = vrot.lane.b32.xlu0 %v340_v56, %s2857_s0 }
 0x190   :  { %v334_v61 = vpop.permute.xlu1 %333 }
 0x191   :  { %v339_v63 = vmul.f32 %v334_v61, %v234_v62 }
 0x193   :  { %205 = vrot.lane.b32.xlu0 %v2957_v18, %s2859_s10  ;;  %343 = vrot.lane.b32.xlu1 %v339_v63, %s2857_s0  ;;  %v275_v18 = vmul.f32 %v2580_v19, %v258_v15 }
 0x195   :  { %v276_v20 = vsub.f32 1.0, %v275_v18 }
 0x197   :  { %v277_v22 = vmul.f32 %v2580_v19, %v276_v20 }
 0x199   :  { %v278_v25 = vadd.f32 %v2580_v19, %v277_v22 }
 0x19b   :  { %v282_v30 = vsel %vm281_vm12, %v2580_v19, %v278_v25  ;;  %vm93_vm12 = vcmask 130048  }
 0x19c   :  { %v287_v33 = vsel %vm284_vm13, %v286_v32, %v282_v30 }
 0x19d   :  { %v330_v36 = vmul.f32 0.0, %v287_v33 }
 0x1fd   :  { %v346_v38 = vpop.permute.xlu0 %345 }
 0x1fe   :  { %v2981_v39 = vadd.f32 %v346_v38, %v330_v36 }
 0x200   :  { %2583 = vtanh.f32 %v2981_v39 }
 0x205   :  { %v344_v44 = vpop.permute.xlu1 %343  ;;  %v206_v49 = vpop.permute.xlu0 %205 }
 0x206   :  { %v2584_v45 = vpop.eup %2583  ;;  %v2984_v46 = vadd.f32 %v344_v44, %v329_v43  ;;  %v211_v51 = vadd.f32 %v206_v49, %v2968_v26 }
 0x207   :  { %357 = vrot.lane.b32.xlu1 %v2584_v45, %s2858_s9 }
 0x208   :  { %2585 = vtanh.f32 %v2984_v46  ;;  %v2478_v53 = vmul.f32 -1.442695, %v211_v51 }
 0x209   :  { %2587 = vpow2.f32 %v2479_v52 }
 0x20a   :  { %2589 = vpow2.f32 %v2478_v53 }
 0x20e   :  { %v2586_v47 = vpop.eup %2585 }
 0x20f   :  { %355 = vrot.lane.b32.xlu2 %v2586_v47, %s2858_s9  ;;  %v2588_v54 = vpop.eup %2587 }
 0x210   :  { %v2590_v55 = vpop.eup %2589  ;;  %v298_v56 = vadd.f32 1.0, %v2588_v54 }
 0x211   :  { %v297_v57 = vadd.f32 1.0, %v2590_v55 }
 0x212   :  { %2591 = vrcp.f32 %v298_v56  ;;  %vm319_vm3 = vweird.f32 %v298_v56  ;;  %v325_v8 = vand.u32 2147483648, %v298_v56  ;;  %v323_v12 = vand.u32 2147483647, %v298_v56 }
 0x213   :  { %2593 = vrcp.f32 %v297_v57  ;;  %v310_v14 = vand.u32 2147483648, %v297_v57  ;;  %vm304_vm7 = vweird.f32 %v297_v57  ;;  %v308_v16 = vand.u32 2147483647, %v297_v57 }
 0x214   :  { %v326_v15 = vor.u32 1.1754944e-38, %v325_v8  ;;  %vm324_vm8 = vcmp.eq.f32.partialorder %v323_v12, 8.507059e+37 }
 0x215   :  { %v311_v18 = vor.u32 1.1754944e-38, %v310_v14  ;;  %vm309_vm10 = vcmp.eq.f32.partialorder %v308_v16, 8.507059e+37 }
 0x218   :  { %v2592_v58 = vpop.eup %2591 }
 0x219   :  { %v2594_v59 = vpop.eup %2593  ;;  %v315_v60 = vmul.f32 %v2592_v58, %v298_v56  ;;  %vm320_vm4 = vweird.f32 %v2592_v58 }
 0x21a   :  { %v300_v61 = vmul.f32 %v2594_v59, %v297_v57  ;;  %vm321_vm5 = vmor %vm319_vm3, %vm320_vm4  ;;  %vm305_vm6 = vweird.f32 %v2594_v59 }
 0x21b   :  { %v316_v62 = vsub.f32 1.0, %v315_v60  ;;  %vm306_vm9 = vmor %vm304_vm7, %vm305_vm6 }
 0x21c   :  { %v301_v63 = vsub.f32 1.0, %v300_v61 }
 0x21d   :  { %v317_v0 = vmul.f32 %v2592_v58, %v316_v62 }
 0x21e   :  { %v302_v6 = vmul.f32 %v2594_v59, %v301_v63 }
 0x21f   :  { %v318_v9 = vadd.f32 %v2592_v58, %v317_v0 }
 0x220   :  { %v303_v13 = vadd.f32 %v2594_v59, %v302_v6 }
 0x221   :  { %v322_v17 = vsel %vm321_vm5, %v2592_v58, %v318_v9 }
 0x222   :  { %v307_v19 = vsel %vm306_vm9, %v2594_v59, %v303_v13  ;;  %v327_v21 = vsel %vm324_vm8, %v326_v15, %v322_v17 }
 0x223   :  { %v312_v25 = vsel %vm309_vm10, %v311_v18, %v307_v19 }
 0x269   :  { %v356_v20 = vpop.permute.xlu2 %355 }
 0x26a   :  { %v2993_v27 = vmul.f32 %v356_v20, %v312_v25 }
 0x279   :  { %v358_v22 = vpop.permute.xlu1 %357 }
 0x27a   :  { %v2991_v24 = vmul.f32 %v358_v22, %v327_v21 }
 0x27c   :  { %v374_v28 = vrot.slane %v2991_v24, 7 }
 0x27e   :  { %v376_v29 = vsel %vm375_vm11, %v374_v28, %v2993_v27 }
 0x27f   :  { %377 = vrot.lane.b32.xlu0 %v376_v29, %s2861_s3 }
 0x2f1   :  { %v378_v30 = vpop.permute.xlu0 %377 }
 0x2f2   :  { %2480 = vmatmul.msk.f32.vlgmr.msra.gmra.mxu2 %vm93_vm12, %v378_v30  ;;  %2481 = vmatmul.msk.f32.vlgmr.msra.gmra.mxu3 %vm93_vm12, %v378_v30 }
 0x2f3   :  { %2482 = vmatmul.msk.f32.vlgmr.msrb.gmra.mxu0 %vm93_vm12, %v378_v30  ;;  %2483 = vmatmul.msk.f32.vlgmr.msra.gmra.mxu1 %vm93_vm12, %v378_v30 }
 0x2f4   :  { %1036 = vmatpush.msrb.mxu0 %v2912_v5  ;;  %978 = vmatpush.msra.mxu2 %v2908_v3 }
 0x2f5   :  { %1005 = vmatpush.msra.mxu3 %v2903_v1  ;;  %1067 = vmatpush.msra.mxu1 %v2920_v7 }
 0x2f6   :  { %1037 = vmatpush.msrb.mxu0 %v2925_v10  ;;  %979 = vmatpush.msra.mxu2 %v2910_v4 }
 0x2f7   :  { %1006 = vmatpush.msra.mxu3 %v2905_v2  ;;  %1068 = vmatpush.msra.mxu1 %v2929_v11 }
 0x370   :  { %v454_v31 = vpop.f32.mrf.mxu0  ;;  %v484_v42 = vpop.f32.mrf.mxu1 }
 0x371   :  { %v458_v32 = vrot.slane %v454_v31, 7  ;;  %461 = vrot.lane.b32.xlu2 %v454_v31, %s2858_s9  ;;  %v488_v43 = vrot.slane %v484_v42, 7 }
 0x373   :  { %459 = vrot.lane.b32.xlu1 %v458_v32, %s2858_s9 }
 0x375   :  { %v424_v33 = vpop.f32.mrf.mxu3  ;;  %v398_v44 = vpop.f32.mrf.mxu2 }
 0x376   :  { %v428_v34 = vrot.slane %v424_v33, 7  ;;  %v406_v45 = vadd.f32 %v398_v44, %v2965_v23  ;;  %v402_v50 = vrot.slane %v398_v44, 7  ;;  %v616_v44 = vrot.slane %v2981_v39, 7 }
 0x378   :  { %v2485_v47 = vmul.f32 -1.442695, %v406_v45  ;;  %v405_v51 = vadd.f32 %v402_v50, %v2968_v26 }
 0x379   :  { %429 = vrot.lane.b32.xlu2 %v428_v34, %s2857_s0 }
 0x37a   :  { %v2484_v53 = vmul.f32 -1.442695, %v405_v51 }
 0x3cb   :  { %v462_v35 = vpop.permute.xlu2 %461 }
 0x3cc   :  { %v466_v36 = vadd.f32 %v462_v35, %v2965_v23 }
 0x3ce   :  { %2595 = vtanh.f32 %v466_v36 }
 0x3d4   :  { %v2596_v37 = vpop.eup %2595 }
 0x3d5   :  { %625 = vrot.lane.b32.xlu1 %v2596_v37, %s2860_s13 }
 0x3e5   :  { %v460_v38 = vpop.permute.xlu1 %459 }
 0x3e6   :  { %v465_v40 = vadd.f32 %v460_v38, %v2968_v26 }
 0x3e8   :  { %2597 = vtanh.f32 %v465_v40  ;;  %v430_v40 = vpop.permute.xlu2 %429 }
 0x3e9   :  { %2599 = vpow2.f32 %v2485_v47  ;;  %v435_v45 = vadd.f32 %v430_v40, %v2968_v26 }
 0x3ee   :  { %v2598_v41 = vpop.eup %2597 }
 0x3ef   :  { %623 = vrot.lane.b32.xlu0 %v2598_v41, %s2860_s13  ;;  %v2600_v48 = vpop.eup %2599 }
 0x3f0   :  { %v504_v49 = vadd.f32 1.0, %v2600_v48 }
 0x3f2   :  { %2601 = vrcp.f32 %v504_v49  ;;  %v531_v60 = vand.u32 2147483648, %v504_v49  ;;  %vm525_vm14 = vweird.f32 %v504_v49  ;;  %v529_v61 = vand.u32 2147483647, %v504_v49 }
 0x3f3   :  { %2603 = vpow2.f32 %v2484_v53 }
 0x3f4   :  { %v532_v63 = vor.u32 1.1754944e-38, %v531_v60  ;;  %vm530_vm0 = vcmp.eq.f32.partialorder %v529_v61, 8.507059e+37 }
 0x3f7   :  { %431 = vrot.lane.b32.xlu0 %v424_v33, %s2857_s0 }
 0x3f8   :  { %v2602_v52 = vpop.eup %2601 }
 0x3f9   :  { %v521_v54 = vmul.f32 %v2602_v52, %v504_v49  ;;  %v2604_v57 = vpop.eup %2603  ;;  %vm526_vm13 = vweird.f32 %v2602_v52  ;;  %v2486_v49 = vmul.f32 -1.442695, %v435_v45 }
 0x3fa   :  { %v503_v59 = vadd.f32 1.0, %v2604_v57  ;;  %vm527_vm15 = vmor %vm525_vm14, %vm526_vm13 }
 0x3fb   :  { %v522_v55 = vsub.f32 1.0, %v521_v54 }
 0x3fc   :  { %2605 = vrcp.f32 %v503_v59  ;;  %v516_v16 = vand.u32 2147483648, %v503_v59  ;;  %vm510_vm3 = vweird.f32 %v503_v59  ;;  %v514_v17 = vand.u32 2147483647, %v503_v59 }
 0x3fd   :  { %v523_v56 = vmul.f32 %v2602_v52, %v522_v55 }
 0x3fe   :  { %v517_v18 = vor.u32 1.1754944e-38, %v516_v16  ;;  %vm515_vm5 = vcmp.eq.f32.partialorder %v514_v17, 8.507059e+37 }
 0x3ff   :  { %489 = vrot.lane.b32.xlu0 %v488_v43, %s2859_s10  ;;  %v524_v58 = vadd.f32 %v2602_v52, %v523_v56 }
 0x401   :  { %v528_v62 = vsel %vm527_vm15, %v2602_v52, %v524_v58 }
 0x402   :  { %v533_v6 = vsel %vm530_vm0, %v532_v63, %v528_v62  ;;  %v2606_v9 = vpop.eup %2605  ;;  %v615_v63 = vrot.slane %v2984_v46, 7 }
 0x403   :  { %v506_v12 = vmul.f32 %v2606_v9, %v503_v59  ;;  %vm511_vm2 = vweird.f32 %v2606_v9 }
 0x404   :  { %vm512_vm4 = vmor %vm510_vm3, %vm511_vm2 }
 0x405   :  { %v507_v13 = vsub.f32 1.0, %v506_v12 }
 0x407   :  { %v508_v14 = vmul.f32 %v2606_v9, %v507_v13 }
 0x409   :  { %v509_v15 = vadd.f32 %v2606_v9, %v508_v14 }
 0x40b   :  { %v513_v19 = vsel %vm512_vm4, %v2606_v9, %v509_v15 }
 0x40c   :  { %v518_v21 = vsel %vm515_vm5, %v517_v18, %v513_v19 }
 0x447   :  { %v626_v0 = vpop.permute.xlu1 %625 }
 0x448   :  { %v630_v8 = vmul.f32 %v626_v0, %v533_v6 }
 0x44a   :  { %635 = vrot.lane.b32.xlu2 %v630_v8, %s2857_s0 }
 0x461   :  { %v624_v20 = vpop.permute.xlu0 %623 }
 0x462   :  { %v629_v22 = vmul.f32 %v624_v20, %v518_v21 }
 0x464   :  { %633 = vrot.lane.b32.xlu1 %v629_v22, %s2857_s0 }
 0x469   :  { %v432_v25 = vpop.permute.xlu0 %431 }
 0x46a   :  { %v436_v28 = vadd.f32 %v432_v25, %v2965_v23 }
 0x46c   :  { %491 = vrot.lane.b32.xlu1 %v484_v42, %s2859_s10  ;;  %v2487_v29 = vmul.f32 -1.442695, %v436_v28 }
 0x46e   :  { %2607 = vpow2.f32 %v2487_v29 }
 0x471   :  { %v490_v12 = vpop.permute.xlu0 %489 }
 0x472   :  { %v495_v14 = vadd.f32 %v490_v12, %v2968_v26 }
 0x474   :  { %v2608_v30 = vpop.eup %2607  ;;  %v2488_v16 = vmul.f32 -1.442695, %v495_v14 }
 0x475   :  { %v542_v31 = vadd.f32 1.0, %v2608_v30 }
 0x477   :  { %2609 = vrcp.f32 %v542_v31  ;;  %v569_v37 = vand.u32 2147483648, %v542_v31  ;;  %vm563_vm7 = vweird.f32 %v542_v31  ;;  %v567_v38 = vand.u32 2147483647, %v542_v31 }
 0x479   :  { %v570_v42 = vor.u32 1.1754944e-38, %v569_v37  ;;  %vm568_vm9 = vcmp.eq.f32.partialorder %v567_v38, 8.507059e+37 }
 0x47d   :  { %v2610_v32 = vpop.eup %2609 }
 0x47e   :  { %v559_v33 = vmul.f32 %v2610_v32, %v542_v31  ;;  %vm564_vm6 = vweird.f32 %v2610_v32 }
 0x47f   :  { %vm565_vm8 = vmor %vm563_vm7, %vm564_vm6 }
 0x480   :  { %v560_v34 = vsub.f32 1.0, %v559_v33 }
 0x482   :  { %v561_v35 = vmul.f32 %v2610_v32, %v560_v34 }
 0x484   :  { %v562_v36 = vadd.f32 %v2610_v32, %v561_v35 }
 0x486   :  { %v566_v41 = vsel %vm565_vm8, %v2610_v32, %v562_v36 }
 0x487   :  { %v571_v43 = vsel %vm568_vm9, %v570_v42, %v566_v41 }
 0x488   :  { %v620_v47 = vmul.f32 %v616_v44, %v571_v43 }
 0x4a4   :  { %v636_v48 = vpop.permute.xlu2 %635 }
 0x4a5   :  { %v3028_v50 = vadd.f32 %v636_v48, %v620_v47 }
 0x4a7   :  { %2611 = vtanh.f32 %v3028_v50 }
 0x4a8   :  { %2613 = vpow2.f32 %v2486_v49 }
 0x4ad   :  { %v2612_v51 = vpop.eup %2611 }
 0x4ae   :  { %647 = vrot.lane.b32.xlu0 %v2612_v51, %s2858_s9  ;;  %v2614_v52 = vpop.eup %2613 }
 0x4af   :  { %v541_v53 = vadd.f32 1.0, %v2614_v52 }
 0x4b1   :  { %2615 = vrcp.f32 %v541_v53  ;;  %v554_v58 = vand.u32 2147483648, %v541_v53  ;;  %vm548_vm13 = vweird.f32 %v541_v53  ;;  %v552_v59 = vand.u32 2147483647, %v541_v53 }
 0x4b3   :  { %v555_v61 = vor.u32 1.1754944e-38, %v554_v58  ;;  %vm553_vm15 = vcmp.eq.f32.partialorder %v552_v59, 8.507059e+37 }
 0x4b7   :  { %v2616_v54 = vpop.eup %2615 }
 0x4b8   :  { %v544_v55 = vmul.f32 %v2616_v54, %v541_v53  ;;  %vm549_vm10 = vweird.f32 %v2616_v54 }
 0x4b9   :  { %vm550_vm14 = vmor %vm548_vm13, %vm549_vm10 }
 0x4ba   :  { %v545_v56 = vsub.f32 1.0, %v544_v55 }
 0x4bc   :  { %v546_v39 = vmul.f32 %v2616_v54, %v545_v56 }
 0x4be   :  { %v547_v57 = vadd.f32 %v2616_v54, %v546_v39 }
 0x4c0   :  { %v551_v60 = vsel %vm550_vm14, %v2616_v54, %v547_v57 }
 0x4c1   :  { %v556_v62 = vsel %vm553_vm15, %v555_v61, %v551_v60 }
 0x4c2   :  { %v619_v0 = vmul.f32 %v615_v63, %v556_v62 }
 0x4d6   :  { %v634_v6 = vpop.permute.xlu1 %633 }
 0x4d7   :  { %v3033_v8 = vadd.f32 %v634_v6, %v619_v0 }
 0x4d9   :  { %2617 = vtanh.f32 %v3033_v8 }
 0x4da   :  { %2619 = vpow2.f32 %v2488_v16 }
 0x4de   :  { %v492_v13 = vpop.permute.xlu1 %491 }
 0x4df   :  { %v2618_v9 = vpop.eup %2617  ;;  %v496_v15 = vadd.f32 %v492_v13, %v2965_v23 }
 0x4e0   :  { %645 = vrot.lane.b32.xlu2 %v2618_v9, %s2858_s9  ;;  %v2620_v46 = vpop.eup %2619 }
 0x4e1   :  { %v2489_v17 = vmul.f32 -1.442695, %v496_v15  ;;  %v581_v18 = vadd.f32 1.0, %v2620_v46 }
 0x4e3   :  { %2621 = vpow2.f32 %v2489_v17  ;;  %v594_v34 = vand.u32 2147483648, %v581_v18  ;;  %vm588_vm3 = vweird.f32 %v581_v18  ;;  %v592_v36 = vand.u32 2147483647, %v581_v18 }
 0x4e4   :  { %2623 = vrcp.f32 %v581_v18 }
 0x4e5   :  { %v595_v41 = vor.u32 1.1754944e-38, %v594_v34  ;;  %vm593_vm7 = vcmp.eq.f32.partialorder %v592_v36, 8.507059e+37 }
 0x4e9   :  { %v2622_v19 = vpop.eup %2621 }
 0x4ea   :  { %v582_v20 = vadd.f32 1.0, %v2622_v19  ;;  %v2624_v21 = vpop.eup %2623 }
 0x4eb   :  { %v584_v25 = vmul.f32 %v2624_v21, %v581_v18  ;;  %vm589_vm0 = vweird.f32 %v2624_v21 }
 0x4ec   :  { %2625 = vrcp.f32 %v582_v20  ;;  %v609_v37 = vand.u32 2147483648, %v582_v20  ;;  %vm590_vm4 = vmor %vm588_vm3, %vm589_vm0  ;;  %vm603_vm5 = vweird.f32 %v582_v20  ;;  %v607_v38 = vand.u32 2147483647, %v582_v20 }
 0x4ed   :  { %v585_v29 = vsub.f32 1.0, %v584_v25 }
 0x4ee   :  { %v610_v44 = vor.u32 1.1754944e-38, %v609_v37  ;;  %vm608_vm8 = vcmp.eq.f32.partialorder %v607_v38, 8.507059e+37 }
 0x4ef   :  { %v586_v31 = vmul.f32 %v2624_v21, %v585_v29 }
 0x4f1   :  { %v587_v33 = vadd.f32 %v2624_v21, %v586_v31 }
 0x4f2   :  { %v2626_v22 = vpop.eup %2625 }
 0x4f3   :  { %v599_v28 = vmul.f32 %v2626_v22, %v582_v20  ;;  %vm604_vm2 = vweird.f32 %v2626_v22  ;;  %v591_v40 = vsel %vm590_vm4, %v2624_v21, %v587_v33 }
 0x4f4   :  { %vm605_vm6 = vmor %vm603_vm5, %vm604_vm2  ;;  %v596_v45 = vsel %vm593_vm7, %v595_v41, %v591_v40 }
 0x4f5   :  { %v600_v30 = vsub.f32 1.0, %v599_v28 }
 0x4f7   :  { %v601_v32 = vmul.f32 %v2626_v22, %v600_v30 }
 0x4f9   :  { %v602_v35 = vadd.f32 %v2626_v22, %v601_v32 }
 0x4fb   :  { %v606_v42 = vsel %vm605_vm6, %v2626_v22, %v602_v35 }
 0x4fc   :  { %v611_v49 = vsel %vm608_vm8, %v610_v44, %v606_v42 }
 0x520   :  { %v648_v43 = vpop.permute.xlu0 %647 }
 0x521   :  { %v3041_v51 = vmul.f32 %v648_v43, %v611_v49 }
 0x53a   :  { %v646_v47 = vpop.permute.xlu2 %645 }
 0x53b   :  { %v3039_v48 = vmul.f32 %v646_v47, %v596_v45 }
 0x53d   :  { %v664_v52 = vrot.slane %v3039_v48, 1 }
 0x53f   :  { %v665_v53 = vsel %vm375_vm11, %v3041_v51, %v664_v52 }
 0x540   :  { %666 = vrot.lane.b32.xlu1 %v665_v53, %s2861_s3 }
 0x5b2   :  { %v667_v54 = vpop.permute.xlu1 %666 }
 0x5b3   :  { %2490 = vmatmul.msk.f32.vlgmr.msrb.gmra.mxu2 %vm93_vm12, %v667_v54  ;;  %2491 = vmatmul.msk.f32.vlgmr.msrb.gmra.mxu3 %vm93_vm12, %v667_v54 }
 0x5b4   :  { %2492 = vmatmul.msk.f32.vlgmr.msra.gmra.mxu0 %vm93_vm12, %v667_v54  ;;  %2493 = vmatmul.msk.f32.vlgmr.msrb.gmra.mxu1 %vm93_vm12, %v667_v54 }
 0x5b5   :  { %1330 = vmatpush.msra.mxu0 %v2912_v5  ;;  %1272 = vmatpush.msrb.mxu2 %v2908_v3 }
 0x5b6   :  { %1299 = vmatpush.msrb.mxu3 %v2903_v1  ;;  %1361 = vmatpush.msrb.mxu1 %v2920_v7 }
 0x5b7   :  { %1331 = vmatpush.msra.mxu0 %v2925_v10  ;;  %1273 = vmatpush.msrb.mxu2 %v2910_v4 }
 0x5b8   :  { %1300 = vmatpush.msrb.mxu3 %v2905_v2  ;;  %1362 = vmatpush.msrb.mxu1 %v2929_v11 }
 0x631   :  { %v745_v55 = vpop.f32.mrf.mxu0  ;;  %v776_v10 = vpop.f32.mrf.mxu1 }
 0x632   :  { %v749_v56 = vrot.slane %v745_v55, 6  ;;  %v750_v39 = vrot.slane %v745_v55, 7  ;;  %v780_v11 = vrot.slane %v776_v10, 6  ;;  %v781_v44 = vrot.slane %v776_v10, 7 }
 0x634   :  { %753 = vrot.lane.b32.xlu0 %v750_v39, %s2858_s9  ;;  %751 = vrot.lane.b32.xlu2 %v749_v56, %s2858_s9 }
 0x636   :  { %v714_v3 = vpop.f32.mrf.mxu3  ;;  %v687_v60 = vpop.f32.mrf.mxu2 }
 0x637   :  { %v718_v5 = vrot.slane %v714_v3, 6  ;;  %v719_v2 = vrot.slane %v714_v3, 7  ;;  %v691_v61 = vrot.slane %v687_v60, 6  ;;  %v692_v62 = vrot.slane %v687_v60, 7 }
 0x638   :  { %v908_v60 = vrot.slane %v3033_v8, 7 }
 0x639   :  { %v695_v63 = vadd.f32 %v691_v61, %v2968_v26  ;;  %v696_v0 = vadd.f32 %v692_v62, %v2965_v23 }
 0x63b   :  { %v2494_v6 = vmul.f32 -1.442695, %v695_v63  ;;  %v2495_v9 = vmul.f32 -1.442695, %v696_v0 }
 0x63c   :  { %720 = vrot.lane.b32.xlu0 %v718_v5, %s2857_s0 }
 0x68e   :  { %v752_v1 = vpop.permute.xlu2 %751 }
 0x68f   :  { %v757_v7 = vadd.f32 %v752_v1, %v2968_v26 }
 0x691   :  { %2627 = vtanh.f32 %v757_v7 }
 0x697   :  { %v2628_v4 = vpop.eup %2627 }
 0x698   :  { %916 = vrot.lane.b32.xlu1 %v2628_v4, %s2860_s13 }
 0x6a0   :  { %722 = vrot.lane.b32.xlu1 %v719_v2, %s2857_s0 }
 0x6a6   :  { %v754_v57 = vpop.permute.xlu0 %753 }
 0x6a7   :  { %v758_v58 = vadd.f32 %v754_v57, %v2965_v23 }
 0x6a8   :  { %782 = vrot.lane.b32.xlu1 %v780_v11, %s2859_s10 }
 0x6a9   :  { %2629 = vtanh.f32 %v758_v58 }
 0x6aa   :  { %2631 = vpow2.f32 %v2494_v6 }
 0x6ab   :  { %2633 = vpow2.f32 %v2495_v9 }
 0x6ae   :  { %v721_v45 = vpop.permute.xlu0 %720 }
 0x6af   :  { %v2630_v59 = vpop.eup %2629  ;;  %v726_v47 = vadd.f32 %v721_v45, %v2968_v26 }
 0x6b0   :  { %918 = vrot.lane.b32.xlu2 %v2630_v59, %s2860_s13  ;;  %v2632_v12 = vpop.eup %2631 }
 0x6b1   :  { %v2634_v13 = vpop.eup %2633  ;;  %v796_v14 = vadd.f32 1.0, %v2632_v12  ;;  %v2496_v49 = vmul.f32 -1.442695, %v726_v47 }
 0x6b2   :  { %v797_v15 = vadd.f32 1.0, %v2634_v13 }
 0x6b3   :  { %2635 = vrcp.f32 %v796_v14  ;;  %vm803_vm13 = vweird.f32 %v796_v14  ;;  %v809_v29 = vand.u32 2147483648, %v796_v14  ;;  %v807_v31 = vand.u32 2147483647, %v796_v14 }
 0x6b4   :  { %2637 = vrcp.f32 %v797_v15  ;;  %v824_v30 = vand.u32 2147483648, %v797_v15  ;;  %vm818_vm15 = vweird.f32 %v797_v15  ;;  %v822_v32 = vand.u32 2147483647, %v797_v15 }
 0x6b5   :  { %v810_v35 = vor.u32 1.1754944e-38, %v809_v29  ;;  %vm808_vm2 = vcmp.eq.f32.partialorder %v807_v31, 8.507059e+37  ;;  %2639 = vpow2.f32 %v2496_v49 }
 0x6b6   :  { %v825_v36 = vor.u32 1.1754944e-38, %v824_v30  ;;  %vm823_vm3 = vcmp.eq.f32.partialorder %v822_v32, 8.507059e+37 }
 0x6b9   :  { %v2636_v16 = vpop.eup %2635 }
 0x6ba   :  { %v2638_v17 = vpop.eup %2637  ;;  %v799_v46 = vmul.f32 %v2636_v16, %v796_v14  ;;  %vm804_vm9 = vweird.f32 %v2636_v16 }
 0x6bb   :  { %v814_v19 = vmul.f32 %v2638_v17, %v797_v15  ;;  %vm819_vm10 = vweird.f32 %v2638_v17  ;;  %vm805_vm14 = vmor %vm803_vm13, %vm804_vm9  ;;  %v2640_v52 = vpop.eup %2639 }
 0x6bc   :  { %v800_v18 = vsub.f32 1.0, %v799_v46  ;;  %vm820_vm0 = vmor %vm818_vm15, %vm819_vm10  ;;  %v834_v53 = vadd.f32 1.0, %v2640_v52 }
 0x6bd   :  { %v815_v20 = vsub.f32 1.0, %v814_v19  ;;  %v909_v19 = vrot.slane %v3028_v50, 7 }
 0x6be   :  { %v801_v21 = vmul.f32 %v2636_v16, %v800_v18  ;;  %2641 = vrcp.f32 %v834_v53  ;;  %v847_v10 = vand.u32 2147483648, %v834_v53  ;;  %vm841_vm5 = vweird.f32 %v834_v53 }
 0x6bf   :  { %v816_v22 = vmul.f32 %v2638_v17, %v815_v20  ;;  %v845_v11 = vand.u32 2147483647, %v834_v53 }
 0x6c0   :  { %v802_v25 = vadd.f32 %v2636_v16, %v801_v21  ;;  %v848_v58 = vor.u32 1.1754944e-38, %v847_v10 }
 0x6c1   :  { %v817_v28 = vadd.f32 %v2638_v17, %v816_v22  ;;  %vm846_vm7 = vcmp.eq.f32.partialorder %v845_v11, 8.507059e+37 }
 0x6c2   :  { %v806_v33 = vsel %vm805_vm14, %v2636_v16, %v802_v25 }
 0x6c3   :  { %v821_v34 = vsel %vm820_vm0, %v2638_v17, %v817_v28  ;;  %v811_v38 = vsel %vm808_vm2, %v810_v35, %v806_v33 }
 0x6c4   :  { %v826_v41 = vsel %vm823_vm3, %v825_v36, %v821_v34  ;;  %v2642_v56 = vpop.eup %2641 }
 0x6c5   :  { %v837_v3 = vmul.f32 %v2642_v56, %v834_v53  ;;  %vm842_vm4 = vweird.f32 %v2642_v56 }
 0x6c6   :  { %vm843_vm6 = vmor %vm841_vm5, %vm842_vm4 }
 0x6c7   :  { %v838_v5 = vsub.f32 1.0, %v837_v3 }
 0x6c9   :  { %v839_v7 = vmul.f32 %v2642_v56, %v838_v5 }
 0x6cb   :  { %v840_v2 = vadd.f32 %v2642_v56, %v839_v7 }
 0x6cd   :  { %v844_v57 = vsel %vm843_vm6, %v2642_v56, %v840_v2 }
 0x6ce   :  { %v849_v59 = vsel %vm846_vm7, %v848_v58, %v844_v57 }
 0x6cf   :  { %v912_v62 = vmul.f32 %v908_v60, %v849_v59  ;;  %v3099_v60 = vld [vmem:[#allocation4 + $0x28] sm:$0xff] }
 0x70a   :  { %v917_v37 = vpop.permute.xlu1 %916  ;;  %v919_v40 = vpop.permute.xlu2 %918 }
 0x70b   :  { %v922_v42 = vmul.f32 %v917_v37, %v811_v38  ;;  %v923_v43 = vmul.f32 %v919_v40, %v826_v41 }
 0x70d   :  { %928 = vrot.lane.b32.xlu0 %v923_v43, %s2857_s0  ;;  %926 = vrot.lane.b32.xlu2 %v922_v42, %s2857_s0 }
 0x712   :  { %v723_v54 = vpop.permute.xlu1 %722 }
 0x713   :  { %v727_v55 = vadd.f32 %v723_v54, %v2965_v23 }
 0x715   :  { %784 = vrot.lane.b32.xlu2 %v781_v44, %s2859_s10  ;;  %v2497_v39 = vmul.f32 -1.442695, %v727_v55 }
 0x717   :  { %2643 = vpow2.f32 %v2497_v39 }
 0x71a   :  { %v783_v25 = vpop.permute.xlu1 %782 }
 0x71b   :  { %v788_v29 = vadd.f32 %v783_v25, %v2968_v26 }
 0x71d   :  { %v2644_v1 = vpop.eup %2643  ;;  %v2498_v31 = vmul.f32 -1.442695, %v788_v29 }
 0x71e   :  { %v835_v4 = vadd.f32 1.0, %v2644_v1 }
 0x720   :  { %2645 = vrcp.f32 %v835_v4  ;;  %v862_v15 = vand.u32 2147483648, %v835_v4  ;;  %vm856_vm9 = vweird.f32 %v835_v4  ;;  %v860_v16 = vand.u32 2147483647, %v835_v4 }
 0x722   :  { %v863_v17 = vor.u32 1.1754944e-38, %v862_v15  ;;  %vm861_vm13 = vcmp.eq.f32.partialorder %v860_v16, 8.507059e+37 }
 0x726   :  { %v2646_v61 = vpop.eup %2645 }
 0x727   :  { %v852_v6 = vmul.f32 %v2646_v61, %v835_v4  ;;  %vm857_vm8 = vweird.f32 %v2646_v61 }
 0x728   :  { %vm858_vm10 = vmor %vm856_vm9, %vm857_vm8 }
 0x729   :  { %v853_v9 = vsub.f32 1.0, %v852_v6  ;;  %v3111_v6 = vld [vmem:[#allocation4 + $0x20] sm:$0xff] }
 0x72b   :  { %v854_v13 = vmul.f32 %v2646_v61, %v853_v9  ;;  %v3114_v9 = vld [vmem:[#allocation4] sm:$0xff] }
 0x72d   :  { %v855_v14 = vadd.f32 %v2646_v61, %v854_v13  ;;  %v3120_v13 = vld [vmem:[#allocation4 + $0x30] sm:$0xff] }
 0x72f   :  { %v859_v8 = vsel %vm858_vm10, %v2646_v61, %v855_v14  ;;  %v3102_v61 = vld [vmem:[#allocation4 + $0x8] sm:$0xff] }
 0x730   :  { %v864_v46 = vsel %vm861_vm13, %v863_v17, %v859_v8 }
 0x731   :  { %v913_v18 = vmul.f32 %v909_v19, %v864_v46 }
 0x767   :  { %v927_v63 = vpop.permute.xlu2 %926 }
 0x768   :  { %v3076_v0 = vadd.f32 %v927_v63, %v912_v62  ;;  %v3105_v62 = vld [vmem:[#allocation4 + $0x18] sm:$0xff] }
 0x769   :  { %v3108_v63 = vld [vmem:[#allocation4 + $0x38] sm:$0xff] }
 0x76a   :  { %2647 = vtanh.f32 %v3076_v0 }
 0x76f   :  { %v785_v28 = vpop.permute.xlu2 %784 }
 0x770   :  { %v2648_v12 = vpop.eup %2647  ;;  %v789_v30 = vadd.f32 %v785_v28, %v2965_v23 }
 0x771   :  { %938 = vrot.lane.b32.xlu0 %v2648_v12, %s2858_s9  ;;  %v3117_v12 = vld [vmem:[#allocation4 + $0x10] sm:$0xff] }
 0x772   :  { %v2499_v32 = vmul.f32 -1.442695, %v789_v30 }
 0x77f   :  { %v929_v20 = vpop.permute.xlu0 %928 }
 0x780   :  { %v3081_v21 = vadd.f32 %v929_v20, %v913_v18 }
 0x782   :  { %2649 = vtanh.f32 %v3081_v21 }
 0x783   :  { %2651 = vpow2.f32 %v2498_v31 }
 0x784   :  { %2653 = vpow2.f32 %v2499_v32 }
 0x788   :  { %v2650_v22 = vpop.eup %2649 }
 0x789   :  { %940 = vrot.lane.b32.xlu1 %v2650_v22, %s2858_s9  ;;  %v2652_v50 = vpop.eup %2651 }
 0x78a   :  { %v2654_v33 = vpop.eup %2653  ;;  %v874_v34 = vadd.f32 1.0, %v2652_v50 }
 0x78b   :  { %v875_v35 = vadd.f32 1.0, %v2654_v33 }
 0x78c   :  { %2655 = vrcp.f32 %v874_v34  ;;  %v887_v47 = vand.u32 2147483648, %v874_v34  ;;  %vm881_vm15 = vweird.f32 %v874_v34  ;;  %v885_v49 = vand.u32 2147483647, %v874_v34 }
 0x78d   :  { %2657 = vrcp.f32 %v875_v35  ;;  %v902_v53 = vand.u32 2147483648, %v875_v35  ;;  %vm896_vm3 = vweird.f32 %v875_v35  ;;  %v900_v55 = vand.u32 2147483647, %v875_v35 }
 0x78e   :  { %v888_v56 = vor.u32 1.1754944e-38, %v887_v47  ;;  %vm886_vm5 = vcmp.eq.f32.partialorder %v885_v49, 8.507059e+37 }
 0x78f   :  { %v903_v1 = vor.u32 1.1754944e-38, %v902_v53  ;;  %vm901_vm6 = vcmp.eq.f32.partialorder %v900_v55, 8.507059e+37 }
 0x792   :  { %v2656_v36 = vpop.eup %2655 }
 0x793   :  { %v2658_v37 = vpop.eup %2657  ;;  %v877_v38 = vmul.f32 %v2656_v36, %v874_v34  ;;  %vm882_vm14 = vweird.f32 %v2656_v36 }
 0x794   :  { %v892_v40 = vmul.f32 %v2658_v37, %v875_v35  ;;  %vm897_vm0 = vweird.f32 %v2658_v37  ;;  %vm883_vm2 = vmor %vm881_vm15, %vm882_vm14 }
 0x795   :  { %v878_v41 = vsub.f32 1.0, %v877_v38  ;;  %vm898_vm4 = vmor %vm896_vm3, %vm897_vm0 }
 0x796   :  { %v893_v42 = vsub.f32 1.0, %v892_v40 }
 0x797   :  { %v879_v43 = vmul.f32 %v2656_v36, %v878_v41 }
 0x798   :  { %v894_v44 = vmul.f32 %v2658_v37, %v893_v42 }
 0x799   :  { %v880_v45 = vadd.f32 %v2656_v36, %v879_v43 }
 0x79a   :  { %v895_v52 = vadd.f32 %v2658_v37, %v894_v44 }
 0x79b   :  { %v884_v54 = vsel %vm883_vm2, %v2656_v36, %v880_v45 }
 0x79c   :  { %v899_v3 = vsel %vm898_vm4, %v2658_v37, %v895_v52  ;;  %v889_v5 = vsel %vm886_vm5, %v888_v56, %v884_v54 }
 0x79d   :  { %v904_v2 = vsel %vm901_vm6, %v903_v1, %v899_v3 }
 0x7e3   :  { %v939_v39 = vpop.permute.xlu0 %938 }
 0x7e4   :  { %v3087_v7 = vmul.f32 %v939_v39, %v889_v5 }
 0x7e6   :  { %v957_v11 = vrot.slane %v3087_v7, 2 }
 0x7fb   :  { %v941_v4 = vpop.permute.xlu1 %940 }
 0x7fc   :  { %v3089_v10 = vmul.f32 %v941_v4, %v904_v2 }
 0x7fe   :  { %v958_v57 = vrot.slane %v3089_v10, 1 }
 0x800   :  { %v959_v58 = vsel %vm375_vm11, %v958_v57, %v957_v11 }
 0x801   :  { %960 = vrot.lane.b32.xlu2 %v959_v58, %s2861_s3 }
 0x85b   :  { %v961_v59 = vpop.permute.xlu2 %960 }
 0x85c   :  { %2500 = vmatmul.msk.f32.vlgmr.msra.gmra.mxu2 %vm93_vm12, %v961_v59  ;;  %2501 = vmatmul.msk.f32.vlgmr.msra.gmra.mxu3 %vm93_vm12, %v961_v59 }
 0x85d   :  { %2502 = vmatmul.msk.f32.vlgmr.msrb.gmra.mxu0 %vm93_vm12, %v961_v59  ;;  %2503 = vmatmul.msk.f32.vlgmr.msra.gmra.mxu1 %vm93_vm12, %v961_v59 }
 0x85e   :  { %1624 = vmatpush.msrb.mxu0 %v3099_v60  ;;  %1566 = vmatpush.msra.mxu2 %v3102_v61 }
 0x85f   :  { %1593 = vmatpush.msra.mxu3 %v3105_v62  ;;  %1655 = vmatpush.msra.mxu1 %v3108_v63 }
 0x860   :  { %1625 = vmatpush.msrb.mxu0 %v3111_v6  ;;  %1567 = vmatpush.msra.mxu2 %v3114_v9 }
 0x861   :  { %1594 = vmatpush.msra.mxu3 %v3117_v12  ;;  %1656 = vmatpush.msra.mxu1 %v3120_v13 }
 0x8da   :  { %v1039_v14 = vpop.f32.mrf.mxu0  ;;  %v1070_v29 = vpop.f32.mrf.mxu1 }
 0x8db   :  { %v1043_v15 = vrot.slane %v1039_v14, 5  ;;  %v1044_v16 = vrot.slane %v1039_v14, 6  ;;  %v1074_v30 = vrot.slane %v1070_v29, 5  ;;  %v1075_v4 = vrot.slane %v1070_v29, 6 }
 0x8dd   :  { %1047 = vrot.lane.b32.xlu1 %v1044_v16, %s2858_s9  ;;  %1045 = vrot.lane.b32.xlu0 %v1043_v15, %s2858_s9 }
 0x8df   :  { %v1008_v8 = vpop.f32.mrf.mxu3  ;;  %v981_v31 = vpop.f32.mrf.mxu2 }
 0x8e0   :  { %v1012_v17 = vrot.slane %v1008_v8, 5  ;;  %v1013_v28 = vrot.slane %v1008_v8, 6  ;;  %v985_v32 = vrot.slane %v981_v31, 5  ;;  %v986_v36 = vrot.slane %v981_v31, 6 }
 0x8e2   :  { %v989_v50 = vadd.f32 %v985_v32, %v2968_v26  ;;  %v990_v37 = vadd.f32 %v986_v36, %v2965_v23 }
 0x8e4   :  { %v2504_v33 = vmul.f32 -1.442695, %v989_v50  ;;  %v2505_v40 = vmul.f32 -1.442695, %v990_v37 }
 0x8e5   :  { %1014 = vrot.lane.b32.xlu1 %v1012_v17, %s2857_s0 }
 0x94f   :  { %v1048_v46 = vpop.permute.xlu1 %1047  ;;  %v1046_v19 = vpop.permute.xlu0 %1045 }
 0x950   :  { %v1052_v18 = vadd.f32 %v1048_v46, %v2965_v23  ;;  %v1051_v20 = vadd.f32 %v1046_v19, %v2968_v26 }
 0x952   :  { %2659 = vtanh.f32 %v1052_v18 }
 0x953   :  { %2661 = vtanh.f32 %v1051_v20 }
 0x954   :  { %2663 = vpow2.f32 %v2504_v33 }
 0x957   :  { %v1015_v17 = vpop.permute.xlu1 %1014 }
 0x958   :  { %v2660_v22 = vpop.eup %2659  ;;  %v1020_v46 = vadd.f32 %v1015_v17, %v2968_v26 }
 0x959   :  { %v2662_v25 = vpop.eup %2661  ;;  %1212 = vrot.lane.b32.xlu0 %v2660_v22, %s2860_s13 }
 0x95a   :  { %1210 = vrot.lane.b32.xlu2 %v2662_v25, %s2860_s13  ;;  %v2664_v34 = vpop.eup %2663  ;;  %v2506_v19 = vmul.f32 -1.442695, %v1020_v46 }
 0x95b   :  { %v1090_v35 = vadd.f32 1.0, %v2664_v34 }
 0x95d   :  { %2665 = vrcp.f32 %v1090_v35  ;;  %v1103_v49 = vand.u32 2147483648, %v1090_v35  ;;  %vm1097_vm8 = vweird.f32 %v1090_v35  ;;  %v1101_v52 = vand.u32 2147483647, %v1090_v35 }
 0x95e   :  { %2667 = vpow2.f32 %v2505_v40 }
 0x95f   :  { %v1104_v54 = vor.u32 1.1754944e-38, %v1103_v49  ;;  %vm1102_vm10 = vcmp.eq.f32.partialorder %v1101_v52, 8.507059e+37 }
 0x962   :  { %1016 = vrot.lane.b32.xlu2 %v1013_v28, %s2857_s0 }
 0x963   :  { %v2666_v38 = vpop.eup %2665 }
 0x964   :  { %v1093_v41 = vmul.f32 %v2666_v38, %v1090_v35  ;;  %v2668_v43 = vpop.eup %2667  ;;  %vm1098_vm7 = vweird.f32 %v2666_v38 }
 0x965   :  { %v1091_v45 = vadd.f32 1.0, %v2668_v43  ;;  %vm1099_vm9 = vmor %vm1097_vm8, %vm1098_vm7 }
 0x966   :  { %v1094_v42 = vsub.f32 1.0, %v1093_v41 }
 0x967   :  { %2669 = vrcp.f32 %v1091_v45  ;;  %v1118_v57 = vand.u32 2147483648, %v1091_v45  ;;  %vm1112_vm14 = vweird.f32 %v1091_v45  ;;  %v1116_v58 = vand.u32 2147483647, %v1091_v45 }
 0x968   :  { %v1095_v44 = vmul.f32 %v2666_v38, %v1094_v42  ;;  %2671 = vpow2.f32 %v2506_v19  ;;  %v1202_v42 = vrot.slane %v3076_v0, 7 }
 0x969   :  { %v1119_v14 = vor.u32 1.1754944e-38, %v1118_v57  ;;  %vm1117_vm0 = vcmp.eq.f32.partialorder %v1116_v58, 8.507059e+37 }
 0x96a   :  { %1076 = vrot.lane.b32.xlu2 %v1074_v30, %s2859_s10  ;;  %v1096_v47 = vadd.f32 %v2666_v38, %v1095_v44 }
 0x96c   :  { %v1100_v53 = vsel %vm1099_vm9, %v2666_v38, %v1096_v47 }
 0x96d   :  { %v1105_v56 = vsel %vm1102_vm10, %v1104_v54, %v1100_v53  ;;  %v2670_v39 = vpop.eup %2669 }
 0x96e   :  { %v1108_v5 = vmul.f32 %v2670_v39, %v1091_v45  ;;  %vm1113_vm13 = vweird.f32 %v2670_v39  ;;  %v2672_v18 = vpop.eup %2671 }
 0x96f   :  { %vm1114_vm15 = vmor %vm1112_vm14, %vm1113_vm13  ;;  %v1128_v20 = vadd.f32 1.0, %v2672_v18 }
 0x970   :  { %v1109_v1 = vsub.f32 1.0, %v1108_v5  ;;  %v1203_v5 = vrot.slane %v3081_v21, 7 }
 0x971   :  { %2673 = vrcp.f32 %v1128_v20  ;;  %v1141_v35 = vand.u32 2147483648, %v1128_v20  ;;  %vm1135_vm3 = vweird.f32 %v1128_v20  ;;  %v1139_v36 = vand.u32 2147483647, %v1128_v20 }
 0x972   :  { %v1110_v2 = vmul.f32 %v2670_v39, %v1109_v1 }
 0x973   :  { %v1142_v38 = vor.u32 1.1754944e-38, %v1141_v35  ;;  %vm1140_vm5 = vcmp.eq.f32.partialorder %v1139_v36, 8.507059e+37 }
 0x974   :  { %v1111_v11 = vadd.f32 %v2670_v39, %v1110_v2 }
 0x976   :  { %v1115_v59 = vsel %vm1114_vm15, %v2670_v39, %v1111_v11 }
 0x977   :  { %v1120_v16 = vsel %vm1117_vm0, %v1119_v14, %v1115_v59  ;;  %v2674_v28 = vpop.eup %2673 }
 0x978   :  { %v1131_v30 = vmul.f32 %v2674_v28, %v1128_v20  ;;  %vm1136_vm2 = vweird.f32 %v2674_v28 }
 0x979   :  { %vm1137_vm4 = vmor %vm1135_vm3, %vm1136_vm2 }
 0x97a   :  { %v1132_v31 = vsub.f32 1.0, %v1131_v30 }
 0x97c   :  { %v1133_v50 = vmul.f32 %v2674_v28, %v1132_v31 }
 0x97e   :  { %v1134_v34 = vadd.f32 %v2674_v28, %v1133_v50 }
 0x980   :  { %v1138_v37 = vsel %vm1137_vm4, %v2674_v28, %v1134_v34 }
 0x981   :  { %v1143_v40 = vsel %vm1140_vm5, %v1142_v38, %v1138_v37 }
 0x982   :  { %v1206_v43 = vmul.f32 %v1202_v42, %v1143_v40 }
 0x9b4   :  { %v1211_v55 = vpop.permute.xlu2 %1210 }
 0x9b5   :  { %v1216_v3 = vmul.f32 %v1211_v55, %v1105_v56 }
 0x9b7   :  { %1220 = vrot.lane.b32.xlu0 %v1216_v3, %s2857_s0 }
 0x9bc   :  { %v1017_v22 = vpop.permute.xlu2 %1016 }
 0x9bd   :  { %v1021_v25 = vadd.f32 %v1017_v22, %v2965_v23 }
 0x9bf   :  { %1078 = vrot.lane.b32.xlu0 %v1075_v4, %s2859_s10  ;;  %v2507_v29 = vmul.f32 -1.442695, %v1021_v25 }
 0x9c1   :  { %2675 = vpow2.f32 %v2507_v29 }
 0x9c4   :  { %v1077_v58 = vpop.permute.xlu2 %1076 }
 0x9c5   :  { %v1082_v14 = vadd.f32 %v1077_v58, %v2968_v26 }
 0x9c7   :  { %v2676_v32 = vpop.eup %2675 }
 0x9c8   :  { %v1129_v33 = vadd.f32 1.0, %v2676_v32 }
 0x9ca   :  { %2677 = vrcp.f32 %v1129_v33  ;;  %v1156_v55 = vand.u32 2147483648, %v1129_v33  ;;  %vm1150_vm7 = vweird.f32 %v1129_v33  ;;  %v1154_v56 = vand.u32 2147483647, %v1129_v33 }
 0x9cb   :  { %v1213_v15 = vpop.permute.xlu0 %1212 }
 0x9cc   :  { %v1217_v8 = vmul.f32 %v1213_v15, %v1120_v16  ;;  %v1157_v0 = vor.u32 1.1754944e-38, %v1156_v55  ;;  %vm1155_vm9 = vcmp.eq.f32.partialorder %v1154_v56, 8.507059e+37  ;;  %v2508_v16 = vmul.f32 -1.442695, %v1082_v14 }
 0x9ce   :  { %1222 = vrot.lane.b32.xlu1 %v1217_v8, %s2857_s0 }
 0x9d0   :  { %v2678_v41 = vpop.eup %2677 }
 0x9d1   :  { %v1146_v45 = vmul.f32 %v2678_v41, %v1129_v33  ;;  %vm1151_vm6 = vweird.f32 %v2678_v41 }
 0x9d2   :  { %vm1152_vm8 = vmor %vm1150_vm7, %vm1151_vm6 }
 0x9d3   :  { %v1147_v49 = vsub.f32 1.0, %v1146_v45 }
 0x9d5   :  { %v1148_v52 = vmul.f32 %v2678_v41, %v1147_v49 }
 0x9d7   :  { %v1149_v54 = vadd.f32 %v2678_v41, %v1148_v52 }
 0x9d9   :  { %v1153_v39 = vsel %vm1152_vm8, %v2678_v41, %v1149_v54 }
 0x9da   :  { %v1158_v3 = vsel %vm1155_vm9, %v1157_v0, %v1153_v39 }
 0x9db   :  { %v1207_v1 = vmul.f32 %v1203_v5, %v1158_v3 }
 0xa29   :  { %v1221_v44 = vpop.permute.xlu0 %1220 }
 0xa2a   :  { %v3140_v47 = vadd.f32 %v1221_v44, %v1206_v43 }
 0xa2c   :  { %2679 = vtanh.f32 %v3140_v47 }
 0xa31   :  { %v1079_v57 = vpop.permute.xlu0 %1078 }
 0xa32   :  { %v2680_v53 = vpop.eup %2679  ;;  %v1083_v59 = vadd.f32 %v1079_v57, %v2965_v23 }
 0xa33   :  { %1232 = vrot.lane.b32.xlu1 %v2680_v53, %s2858_s9 }
 0xa34   :  { %v2509_v15 = vmul.f32 -1.442695, %v1083_v59 }
 0xa40   :  { %v1223_v4 = vpop.permute.xlu1 %1222 }
 0xa41   :  { %v3145_v2 = vadd.f32 %v1223_v4, %v1207_v1 }
 0xa43   :  { %2681 = vtanh.f32 %v3145_v2 }
 0xa44   :  { %2683 = vpow2.f32 %v2509_v15 }
 0xa45   :  { %2685 = vpow2.f32 %v2508_v16 }
 0xa49   :  { %v2682_v11 = vpop.eup %2681 }
 0xa4a   :  { %1234 = vrot.lane.b32.xlu2 %v2682_v11, %s2858_s9  ;;  %v2684_v21 = vpop.eup %2683 }
 0xa4b   :  { %v2686_v8 = vpop.eup %2685  ;;  %v1169_v17 = vadd.f32 1.0, %v2684_v21 }
 0xa4c   :  { %v1168_v46 = vadd.f32 1.0, %v2686_v8 }
 0xa4d   :  { %2687 = vrcp.f32 %v1169_v17  ;;  %v1196_v32 = vand.u32 2147483648, %v1169_v17  ;;  %vm1190_vm14 = vweird.f32 %v1169_v17  ;;  %v1194_v33 = vand.u32 2147483647, %v1169_v17 }
 0xa4e   :  { %2689 = vrcp.f32 %v1168_v46  ;;  %v1181_v34 = vand.u32 2147483648, %v1168_v46  ;;  %vm1175_vm0 = vweird.f32 %v1168_v46  ;;  %v1179_v35 = vand.u32 2147483647, %v1168_v46 }
 0xa4f   :  { %v1197_v37 = vor.u32 1.1754944e-38, %v1196_v32  ;;  %vm1195_vm3 = vcmp.eq.f32.partialorder %v1194_v33, 8.507059e+37 }
 0xa50   :  { %v1182_v40 = vor.u32 1.1754944e-38, %v1181_v34  ;;  %vm1180_vm4 = vcmp.eq.f32.partialorder %v1179_v35, 8.507059e+37 }
 0xa53   :  { %v2688_v19 = vpop.eup %2687 }
 0xa54   :  { %v2690_v18 = vpop.eup %2689  ;;  %v1186_v20 = vmul.f32 %v2688_v19, %v1169_v17  ;;  %vm1191_vm10 = vweird.f32 %v2688_v19 }
 0xa55   :  { %v1171_v22 = vmul.f32 %v2690_v18, %v1168_v46  ;;  %vm1176_vm13 = vweird.f32 %v2690_v18  ;;  %vm1192_vm15 = vmor %vm1190_vm14, %vm1191_vm10 }
 0xa56   :  { %v1187_v25 = vsub.f32 1.0, %v1186_v20  ;;  %vm1177_vm2 = vmor %vm1175_vm0, %vm1176_vm13 }
 0xa57   :  { %v1172_v28 = vsub.f32 1.0, %v1171_v22 }
 0xa58   :  { %v1188_v29 = vmul.f32 %v2688_v19, %v1187_v25 }
 0xa59   :  { %v1173_v30 = vmul.f32 %v2690_v18, %v1172_v28 }
 0xa5a   :  { %v1189_v31 = vadd.f32 %v2688_v19, %v1188_v29 }
 0xa5b   :  { %v1174_v50 = vadd.f32 %v2690_v18, %v1173_v30 }
 0xa5c   :  { %v1193_v36 = vsel %vm1192_vm15, %v2688_v19, %v1189_v31 }
 0xa5d   :  { %v1178_v38 = vsel %vm1177_vm2, %v2690_v18, %v1174_v50  ;;  %v1198_v42 = vsel %vm1195_vm3, %v1197_v37, %v1193_v36 }
 0xa5e   :  { %v1183_v44 = vsel %vm1180_vm4, %v1182_v40, %v1178_v38 }
 0xaa4   :  { %v1235_v41 = vpop.permute.xlu2 %1234 }
 0xaa5   :  { %v3151_v43 = vmul.f32 %v1235_v41, %v1198_v42  ;;  %v1233_v45 = vpop.permute.xlu1 %1232 }
 0xaa6   :  { %v3153_v49 = vmul.f32 %v1233_v45, %v1183_v44 }
 0xaa7   :  { %v1252_v52 = vrot.slane %v3151_v43, 2 }
 0xaa8   :  { %v1251_v53 = vrot.slane %v3153_v49, 3 }
 0xaaa   :  { %v1253_v54 = vsel %vm375_vm11, %v1252_v52, %v1251_v53 }
 0xaab   :  { %1254 = vrot.lane.b32.xlu0 %v1253_v54, %s2861_s3 }
 0xb1d   :  { %v1255_v55 = vpop.permute.xlu0 %1254 }
 0xb1e   :  { %2510 = vmatmul.msk.f32.vlgmr.msrb.gmra.mxu2 %vm93_vm12, %v1255_v55  ;;  %2511 = vmatmul.msk.f32.vlgmr.msrb.gmra.mxu3 %vm93_vm12, %v1255_v55 }
 0xb1f   :  { %2512 = vmatmul.msk.f32.vlgmr.msra.gmra.mxu0 %vm93_vm12, %v1255_v55  ;;  %2513 = vmatmul.msk.f32.vlgmr.msrb.gmra.mxu1 %vm93_vm12, %v1255_v55 }
 0xb20   :  { %1918 = vmatpush.msra.mxu0 %v3099_v60  ;;  %1860 = vmatpush.msrb.mxu2 %v3102_v61 }
 0xb21   :  { %1887 = vmatpush.msrb.mxu3 %v3105_v62  ;;  %1949 = vmatpush.msrb.mxu1 %v3108_v63 }
 0xb22   :  { %1919 = vmatpush.msra.mxu0 %v3111_v6  ;;  %1861 = vmatpush.msrb.mxu2 %v3114_v9 }
 0xb23   :  { %1888 = vmatpush.msrb.mxu3 %v3117_v12  ;;  %1950 = vmatpush.msrb.mxu1 %v3120_v13 }
 0xb9c   :  { %v1333_v56 = vpop.f32.mrf.mxu0  ;;  %v1364_v15 = vpop.f32.mrf.mxu1 }
 0xb9d   :  { %v1337_v39 = vrot.slane %v1333_v56, 4  ;;  %v1338_v0 = vrot.slane %v1333_v56, 5  ;;  %v1368_v16 = vrot.slane %v1364_v15, 4 }
 0xb9f   :  { %1341 = vrot.lane.b32.xlu2 %v1338_v0, %s2858_s9  ;;  %1339 = vrot.lane.b32.xlu1 %v1337_v39, %s2858_s9 }
 0xba1   :  { %v1302_v3 = vpop.f32.mrf.mxu3  ;;  %v1275_v21 = vpop.f32.mrf.mxu2 }
 0xba2   :  { %v1306_v5 = vrot.slane %v1302_v3, 4  ;;  %v1307_v14 = vrot.slane %v1302_v3, 5  ;;  %v1280_v8 = vrot.slane %v1275_v21, 5  ;;  %v1279_v20 = vrot.slane %v1275_v21, 4 }
 0xba4   :  { %v1284_v17 = vadd.f32 %v1280_v8, %v2965_v23  ;;  %v1283_v22 = vadd.f32 %v1279_v20, %v2968_v26 }
 0xba6   :  { %v2515_v46 = vmul.f32 -1.442695, %v1284_v17  ;;  %v2514_v28 = vmul.f32 -1.442695, %v1283_v22 }
 0xba7   :  { %1308 = vrot.lane.b32.xlu2 %v1306_v5, %s2857_s0 }
 0xbf9   :  { %v1342_v1 = vpop.permute.xlu2 %1341 }
 0xbfa   :  { %v1346_v4 = vadd.f32 %v1342_v1, %v2965_v23  ;;  %v1369_v1 = vrot.slane %v1364_v15, 5 }
 0xbfc   :  { %2691 = vtanh.f32 %v1346_v4 }
 0xc02   :  { %v2692_v11 = vpop.eup %2691 }
 0xc03   :  { %1506 = vrot.lane.b32.xlu1 %v2692_v11, %s2860_s13 }
 0xc11   :  { %v1340_v57 = vpop.permute.xlu1 %1339 }
 0xc12   :  { %v1345_v58 = vadd.f32 %v1340_v57, %v2968_v26 }
 0xc14   :  { %2693 = vtanh.f32 %v1345_v58 }
 0xc15   :  { %2695 = vpow2.f32 %v2515_v46 }
 0xc1a   :  { %v2694_v59 = vpop.eup %2693 }
 0xc1b   :  { %1504 = vrot.lane.b32.xlu0 %v2694_v59, %s2860_s13  ;;  %v2696_v19 = vpop.eup %2695 }
 0xc1c   :  { %v1385_v18 = vadd.f32 1.0, %v2696_v19  ;;  %v1309_v19 = vpop.permute.xlu2 %1308 }
 0xc1d   :  { %v1314_v20 = vadd.f32 %v1309_v19, %v2968_v26 }
 0xc1e   :  { %2697 = vrcp.f32 %v1385_v18  ;;  %v1412_v34 = vand.u32 2147483648, %v1385_v18  ;;  %vm1406_vm6 = vweird.f32 %v1385_v18  ;;  %v1410_v35 = vand.u32 2147483647, %v1385_v18 }
 0xc1f   :  { %2699 = vpow2.f32 %v2514_v28  ;;  %v1497_v28 = vrot.slane %v3145_v2, 7 }
 0xc20   :  { %v1413_v37 = vor.u32 1.1754944e-38, %v1412_v34  ;;  %vm1411_vm8 = vcmp.eq.f32.partialorder %v1410_v35, 8.507059e+37 }
 0xc23   :  { %1310 = vrot.lane.b32.xlu0 %v1307_v14, %s2857_s0 }
 0xc24   :  { %v2698_v25 = vpop.eup %2697 }
 0xc25   :  { %v1402_v29 = vmul.f32 %v2698_v25, %v1385_v18  ;;  %v2700_v31 = vpop.eup %2699  ;;  %vm1407_vm5 = vweird.f32 %v2698_v25 }
 0xc26   :  { %v1384_v50 = vadd.f32 1.0, %v2700_v31  ;;  %vm1408_vm7 = vmor %vm1406_vm6, %vm1407_vm5 }
 0xc27   :  { %v1403_v30 = vsub.f32 1.0, %v1402_v29  ;;  %v2516_v29 = vmul.f32 -1.442695, %v1314_v20 }
 0xc28   :  { %2701 = vrcp.f32 %v1384_v50  ;;  %v1397_v54 = vand.u32 2147483648, %v1384_v50  ;;  %vm1391_vm10 = vweird.f32 %v1384_v50  ;;  %v1395_v55 = vand.u32 2147483647, %v1384_v50 }
 0xc29   :  { %v1404_v32 = vmul.f32 %v2698_v25, %v1403_v30 }
 0xc2a   :  { %v1398_v39 = vor.u32 1.1754944e-38, %v1397_v54  ;;  %vm1396_vm14 = vcmp.eq.f32.partialorder %v1395_v55, 8.507059e+37 }
 0xc2b   :  { %1370 = vrot.lane.b32.xlu0 %v1368_v16, %s2859_s10  ;;  %v1405_v33 = vadd.f32 %v2698_v25, %v1404_v32 }
 0xc2d   :  { %v1409_v36 = vsel %vm1408_vm7, %v2698_v25, %v1405_v33 }
 0xc2e   :  { %v1414_v40 = vsel %vm1411_vm8, %v1413_v37, %v1409_v36  ;;  %v2702_v42 = vpop.eup %2701 }
 0xc2f   :  { %v1387_v44 = vmul.f32 %v2702_v42, %v1384_v50  ;;  %vm1392_vm9 = vweird.f32 %v2702_v42 }
 0xc30   :  { %vm1393_vm13 = vmor %vm1391_vm10, %vm1392_vm9 }
 0xc31   :  { %v1388_v45 = vsub.f32 1.0, %v1387_v44 }
 0xc33   :  { %v1389_v52 = vmul.f32 %v2702_v42, %v1388_v45 }
 0xc35   :  { %v1390_v53 = vadd.f32 %v2702_v42, %v1389_v52  ;;  %v1496_v52 = vrot.slane %v3140_v47, 7 }
 0xc37   :  { %v1394_v56 = vsel %vm1393_vm13, %v2702_v42, %v1390_v53 }
 0xc38   :  { %v1399_v3 = vsel %vm1396_vm14, %v1398_v39, %v1394_v56 }
 0xc75   :  { %v1507_v38 = vpop.permute.xlu1 %1506 }
 0xc76   :  { %v1511_v41 = vmul.f32 %v1507_v38, %v1414_v40 }
 0xc78   :  { %1516 = vrot.lane.b32.xlu2 %v1511_v41, %s2857_s0 }
 0xc8d   :  { %v1505_v0 = vpop.permute.xlu0 %1504 }
 0xc8e   :  { %v1510_v5 = vmul.f32 %v1505_v0, %v1399_v3 }
 0xc90   :  { %1514 = vrot.lane.b32.xlu1 %v1510_v5, %s2857_s0 }
 0xc95   :  { %v1311_v4 = vpop.permute.xlu0 %1310 }
 0xc96   :  { %v1315_v11 = vadd.f32 %v1311_v4, %v2965_v23 }
 0xc98   :  { %1372 = vrot.lane.b32.xlu1 %v1369_v1, %s2859_s10  ;;  %v2517_v57 = vmul.f32 -1.442695, %v1315_v11 }
 0xc9a   :  { %2703 = vpow2.f32 %v2517_v57 }
 0xc9d   :  { %v1371_v0 = vpop.permute.xlu0 %1370 }
 0xc9e   :  { %v1376_v5 = vadd.f32 %v1371_v0, %v2968_v26 }
 0xca0   :  { %v2704_v58 = vpop.eup %2703  ;;  %v2518_v4 = vmul.f32 -1.442695, %v1376_v5 }
 0xca1   :  { %v1423_v59 = vadd.f32 1.0, %v2704_v58 }
 0xca3   :  { %2705 = vrcp.f32 %v1423_v59  ;;  %v1450_v46 = vand.u32 2147483648, %v1423_v59  ;;  %vm1444_vm0 = vweird.f32 %v1423_v59  ;;  %v1448_v15 = vand.u32 2147483647, %v1423_v59 }
 0xca4   :  { %2707 = vpow2.f32 %v2516_v29 }
 0xca5   :  { %v1451_v22 = vor.u32 1.1754944e-38, %v1450_v46  ;;  %vm1449_vm3 = vcmp.eq.f32.partialorder %v1448_v15, 8.507059e+37 }
 0xca9   :  { %v2706_v14 = vpop.eup %2705 }
 0xcaa   :  { %v1440_v16 = vmul.f32 %v2706_v14, %v1423_v59  ;;  %vm1445_vm15 = vweird.f32 %v2706_v14  ;;  %v2708_v50 = vpop.eup %2707 }
 0xcab   :  { %vm1446_vm2 = vmor %vm1444_vm0, %vm1445_vm15  ;;  %v1422_v34 = vadd.f32 1.0, %v2708_v50 }
 0xcac   :  { %v1441_v21 = vsub.f32 1.0, %v1440_v16 }
 0xcad   :  { %v1435_v2 = vand.u32 2147483648, %v1422_v34  ;;  %vm1429_vm5 = vweird.f32 %v1422_v34  ;;  %v1433_v41 = vand.u32 2147483647, %v1422_v34 }
 0xcae   :  { %v1442_v8 = vmul.f32 %v2706_v14, %v1441_v21 }
 0xcaf   :  { %v1436_v44 = vor.u32 1.1754944e-38, %v1435_v2  ;;  %vm1434_vm7 = vcmp.eq.f32.partialorder %v1433_v41, 8.507059e+37 }
 0xcb0   :  { %v1443_v17 = vadd.f32 %v2706_v14, %v1442_v8 }
 0xcb2   :  { %v1447_v18 = vsel %vm1446_vm2, %v2706_v14, %v1443_v17 }
 0xcb3   :  { %v1452_v25 = vsel %vm1449_vm3, %v1451_v22, %v1447_v18 }
 0xcb4   :  { %v1501_v30 = vmul.f32 %v1497_v28, %v1452_v25 }
 0xcd2   :  { %v1517_v31 = vpop.permute.xlu2 %1516 }
 0xcd3   :  { %v3188_v32 = vadd.f32 %v1517_v31, %v1501_v30 }
 0xcd5   :  { %2709 = vtanh.f32 %v3188_v32 }
 0xcd6   :  { %2711 = vrcp.f32 %v1422_v34 }
 0xcdb   :  { %v2710_v33 = vpop.eup %2709 }
 0xcdc   :  { %1528 = vrot.lane.b32.xlu0 %v2710_v33, %s2858_s9  ;;  %v2712_v35 = vpop.eup %2711 }
 0xcdd   :  { %v1425_v36 = vmul.f32 %v2712_v35, %v1422_v34  ;;  %vm1430_vm4 = vweird.f32 %v2712_v35 }
 0xcde   :  { %vm1431_vm6 = vmor %vm1429_vm5, %vm1430_vm4 }
 0xcdf   :  { %v1426_v37 = vsub.f32 1.0, %v1425_v36 }
 0xce1   :  { %v1427_v38 = vmul.f32 %v2712_v35, %v1426_v37 }
 0xce3   :  { %v1428_v40 = vadd.f32 %v2712_v35, %v1427_v38 }
 0xce5   :  { %v1432_v42 = vsel %vm1431_vm6, %v2712_v35, %v1428_v40 }
 0xce6   :  { %v1437_v45 = vsel %vm1434_vm7, %v1436_v44, %v1432_v42 }
 0xce7   :  { %v1500_v53 = vmul.f32 %v1496_v52, %v1437_v45 }
 0xd02   :  { %v1515_v54 = vpop.permute.xlu1 %1514 }
 0xd03   :  { %v3193_v55 = vadd.f32 %v1515_v54, %v1500_v53 }
 0xd05   :  { %2713 = vtanh.f32 %v3193_v55 }
 0xd0a   :  { %v1373_v39 = vpop.permute.xlu1 %1372 }
 0xd0b   :  { %v2714_v56 = vpop.eup %2713  ;;  %v1377_v3 = vadd.f32 %v1373_v39, %v2965_v23 }
 0xd0c   :  { %1526 = vrot.lane.b32.xlu2 %v2714_v56, %s2858_s9 }
 0xd0d   :  { %v2519_v1 = vmul.f32 -1.442695, %v1377_v3 }
 0xd0f   :  { %2715 = vpow2.f32 %v2519_v1 }
 0xd10   :  { %2717 = vpow2.f32 %v2518_v4 }
 0xd15   :  { %v2716_v47 = vpop.eup %2715 }
 0xd16   :  { %v2718_v11 = vpop.eup %2717  ;;  %v1463_v57 = vadd.f32 1.0, %v2716_v47 }
 0xd17   :  { %v1462_v58 = vadd.f32 1.0, %v2718_v11 }
 0xd18   :  { %2719 = vrcp.f32 %v1463_v57  ;;  %v1490_v18 = vand.u32 2147483648, %v1463_v57  ;;  %vm1484_vm9 = vweird.f32 %v1463_v57  ;;  %v1488_v20 = vand.u32 2147483647, %v1463_v57 }
 0xd19   :  { %2721 = vrcp.f32 %v1462_v58  ;;  %v1475_v25 = vand.u32 2147483648, %v1462_v58  ;;  %vm1469_vm14 = vweird.f32 %v1462_v58  ;;  %v1473_v29 = vand.u32 2147483647, %v1462_v58 }
 0xd1a   :  { %v1491_v31 = vor.u32 1.1754944e-38, %v1490_v18  ;;  %vm1489_vm0 = vcmp.eq.f32.partialorder %v1488_v20, 8.507059e+37 }
 0xd1b   :  { %v1476_v34 = vor.u32 1.1754944e-38, %v1475_v25  ;;  %vm1474_vm2 = vcmp.eq.f32.partialorder %v1473_v29, 8.507059e+37 }
 0xd1e   :  { %v2720_v59 = vpop.eup %2719 }
 0xd1f   :  { %v2722_v14 = vpop.eup %2721  ;;  %v1480_v16 = vmul.f32 %v2720_v59, %v1463_v57  ;;  %vm1485_vm8 = vweird.f32 %v2720_v59 }
 0xd20   :  { %v1465_v21 = vmul.f32 %v2722_v14, %v1462_v58  ;;  %vm1470_vm10 = vweird.f32 %v2722_v14  ;;  %vm1486_vm13 = vmor %vm1484_vm9, %vm1485_vm8 }
 0xd21   :  { %v1481_v8 = vsub.f32 1.0, %v1480_v16  ;;  %vm1471_vm15 = vmor %vm1469_vm14, %vm1470_vm10 }
 0xd22   :  { %v1466_v17 = vsub.f32 1.0, %v1465_v21 }
 0xd23   :  { %v1482_v46 = vmul.f32 %v2720_v59, %v1481_v8 }
 0xd24   :  { %v1467_v19 = vmul.f32 %v2722_v14, %v1466_v17 }
 0xd25   :  { %v1483_v15 = vadd.f32 %v2720_v59, %v1482_v46 }
 0xd26   :  { %v1468_v22 = vadd.f32 %v2722_v14, %v1467_v19 }
 0xd27   :  { %v1487_v28 = vsel %vm1486_vm13, %v2720_v59, %v1483_v15 }
 0xd28   :  { %v1472_v50 = vsel %vm1471_vm15, %v2722_v14, %v1468_v22  ;;  %v1492_v33 = vsel %vm1489_vm0, %v1491_v31, %v1487_v28 }
 0xd29   :  { %v1477_v36 = vsel %vm1474_vm2, %v1476_v34, %v1472_v50 }
 0xd4e   :  { %v1529_v30 = vpop.permute.xlu0 %1528 }
 0xd4f   :  { %v3199_v35 = vmul.f32 %v1529_v30, %v1492_v33 }
 0xd51   :  { %v1546_v40 = vrot.slane %v3199_v35, 3 }
 0xd66   :  { %v1527_v37 = vpop.permute.xlu2 %1526 }
 0xd67   :  { %v3201_v38 = vmul.f32 %v1527_v37, %v1477_v36 }
 0xd69   :  { %v1545_v2 = vrot.slane %v3201_v38, 4 }
 0xd6b   :  { %v1547_v41 = vsel %vm375_vm11, %v1546_v40, %v1545_v2 }
 0xd6c   :  { %1548 = vrot.lane.b32.xlu1 %v1547_v41, %s2861_s3 }
 0xdde   :  { %v1549_v42 = vpop.permute.xlu1 %1548 }
 0xddf   :  { %2520 = vmatmul.msk.f32.vlgmr.msra.gmra.mxu2 %vm93_vm12, %v1549_v42  ;;  %2521 = vmatmul.msk.f32.vlgmr.msra.gmra.mxu3 %vm93_vm12, %v1549_v42 }
 0xde0   :  { %2522 = vmatmul.msk.f32.vlgmr.msrb.gmra.mxu0 %vm93_vm12, %v1549_v42  ;;  %2523 = vmatmul.msk.f32.vlgmr.msra.gmra.mxu1 %vm93_vm12, %v1549_v42 }
 0xde1   :  { %2212 = vmatpush.msrb.mxu0 %v3099_v60  ;;  %2154 = vmatpush.msra.mxu2 %v3102_v61 }
 0xde2   :  { %2181 = vmatpush.msra.mxu3 %v3105_v62  ;;  %2243 = vmatpush.msra.mxu1 %v3108_v63 }
 0xde3   :  { %2213 = vmatpush.msrb.mxu0 %v3111_v6  ;;  %2155 = vmatpush.msra.mxu2 %v3114_v9 }
 0xde4   :  { %2182 = vmatpush.msra.mxu3 %v3117_v12  ;;  %2244 = vmatpush.msra.mxu1 %v3120_v13 }
 0xe5d   :  { %v1627_v44 = vpop.f32.mrf.mxu0  ;;  %v1658_v12 = vpop.f32.mrf.mxu1 }
 0xe5e   :  { %v1631_v45 = vrot.slane %v1627_v44, 3  ;;  %v1632_v52 = vrot.slane %v1627_v44, 4  ;;  %v1662_v13 = vrot.slane %v1658_v12, 3  ;;  %v1663_v42 = vrot.slane %v1658_v12, 4 }
 0xe60   :  { %1635 = vrot.lane.b32.xlu0 %v1632_v52, %s2858_s9  ;;  %1633 = vrot.lane.b32.xlu2 %v1631_v45, %s2858_s9 }
 0xe62   :  { %v1596_v60 = vpop.f32.mrf.mxu3  ;;  %v1569_v39 = vpop.f32.mrf.mxu2 }
 0xe63   :  { %v1600_v61 = vrot.slane %v1596_v60, 3  ;;  %v1601_v9 = vrot.slane %v1596_v60, 4  ;;  %v1573_v0 = vrot.slane %v1569_v39, 3  ;;  %v1574_v3 = vrot.slane %v1569_v39, 4 }
 0xe65   :  { %v1577_v5 = vadd.f32 %v1573_v0, %v2968_v26  ;;  %v1578_v1 = vadd.f32 %v1574_v3, %v2965_v23 }
 0xe67   :  { %v2524_v4 = vmul.f32 -1.442695, %v1577_v5  ;;  %v2525_v47 = vmul.f32 -1.442695, %v1578_v1 }
 0xe68   :  { %1602 = vrot.lane.b32.xlu0 %v1600_v61, %s2857_s0 }
 0xeba   :  { %v1634_v62 = vpop.permute.xlu2 %1633 }
 0xebb   :  { %v1639_v63 = vadd.f32 %v1634_v62, %v2968_v26 }
 0xebd   :  { %2723 = vtanh.f32 %v1639_v63 }
 0xec3   :  { %v2724_v6 = vpop.eup %2723 }
 0xec4   :  { %1798 = vrot.lane.b32.xlu1 %v2724_v6, %s2860_s13 }
 0xecc   :  { %1604 = vrot.lane.b32.xlu1 %v1601_v9, %s2857_s0 }
 0xed2   :  { %v1636_v53 = vpop.permute.xlu0 %1635 }
 0xed3   :  { %v1640_v54 = vadd.f32 %v1636_v53, %v2965_v23 }
 0xed4   :  { %1664 = vrot.lane.b32.xlu1 %v1662_v13, %s2859_s10 }
 0xed5   :  { %2725 = vtanh.f32 %v1640_v54 }
 0xed6   :  { %2727 = vpow2.f32 %v2524_v4 }
 0xed7   :  { %2729 = vpow2.f32 %v2525_v47  ;;  %v1790_v47 = vrot.slane %v3193_v55, 7 }
 0xeda   :  { %v1603_v44 = vpop.permute.xlu0 %1602 }
 0xedb   :  { %v2726_v56 = vpop.eup %2725  ;;  %v1608_v45 = vadd.f32 %v1603_v44, %v2968_v26 }
 0xedc   :  { %1800 = vrot.lane.b32.xlu2 %v2726_v56, %s2860_s13  ;;  %v2728_v11 = vpop.eup %2727 }
 0xedd   :  { %v2730_v57 = vpop.eup %2729  ;;  %v1678_v58 = vadd.f32 1.0, %v2728_v11  ;;  %v2526_v52 = vmul.f32 -1.442695, %v1608_v45 }
 0xede   :  { %v1679_v59 = vadd.f32 1.0, %v2730_v57 }
 0xedf   :  { %2731 = vrcp.f32 %v1678_v58  ;;  %vm1685_vm5 = vweird.f32 %v1678_v58  ;;  %v1691_v22 = vand.u32 2147483648, %v1678_v58  ;;  %v1689_v28 = vand.u32 2147483647, %v1678_v58 }
 0xee0   :  { %2733 = vrcp.f32 %v1679_v59  ;;  %v1706_v25 = vand.u32 2147483648, %v1679_v59  ;;  %vm1700_vm7 = vweird.f32 %v1679_v59  ;;  %v1704_v29 = vand.u32 2147483647, %v1679_v59 }
 0xee1   :  { %v1692_v50 = vor.u32 1.1754944e-38, %v1691_v22  ;;  %vm1690_vm9 = vcmp.eq.f32.partialorder %v1689_v28, 8.507059e+37  ;;  %2735 = vpow2.f32 %v2526_v52 }
 0xee2   :  { %v1707_v33 = vor.u32 1.1754944e-38, %v1706_v25  ;;  %vm1705_vm10 = vcmp.eq.f32.partialorder %v1704_v29, 8.507059e+37 }
 0xee5   :  { %v2732_v14 = vpop.eup %2731 }
 0xee6   :  { %v2734_v16 = vpop.eup %2733  ;;  %v1681_v21 = vmul.f32 %v2732_v14, %v1678_v58  ;;  %vm1686_vm3 = vweird.f32 %v2732_v14 }
 0xee7   :  { %v1696_v8 = vmul.f32 %v2734_v16, %v1679_v59  ;;  %vm1701_vm4 = vweird.f32 %v2734_v16  ;;  %vm1687_vm6 = vmor %vm1685_vm5, %vm1686_vm3  ;;  %v2736_v60 = vpop.eup %2735 }
 0xee8   :  { %v1682_v17 = vsub.f32 1.0, %v1681_v21  ;;  %vm1702_vm8 = vmor %vm1700_vm7, %vm1701_vm4  ;;  %v1716_v61 = vadd.f32 1.0, %v2736_v60 }
 0xee9   :  { %v1697_v46 = vsub.f32 1.0, %v1696_v8 }
 0xeea   :  { %v1683_v19 = vmul.f32 %v2732_v14, %v1682_v17  ;;  %2737 = vrcp.f32 %v1716_v61  ;;  %v1729_v0 = vand.u32 2147483648, %v1716_v61  ;;  %vm1723_vm14 = vweird.f32 %v1716_v61 }
 0xeeb   :  { %v1698_v15 = vmul.f32 %v2734_v16, %v1697_v46  ;;  %v1727_v3 = vand.u32 2147483647, %v1716_v61 }
 0xeec   :  { %v1684_v18 = vadd.f32 %v2732_v14, %v1683_v19  ;;  %v1730_v1 = vor.u32 1.1754944e-38, %v1729_v0 }
 0xeed   :  { %v1699_v20 = vadd.f32 %v2734_v16, %v1698_v15  ;;  %vm1728_vm0 = vcmp.eq.f32.partialorder %v1727_v3, 8.507059e+37 }
 0xeee   :  { %v1688_v30 = vsel %vm1687_vm6, %v2732_v14, %v1684_v18 }
 0xeef   :  { %v1703_v31 = vsel %vm1702_vm8, %v2734_v16, %v1699_v20  ;;  %v1693_v36 = vsel %vm1690_vm9, %v1692_v50, %v1688_v30  ;;  %v1791_v20 = vrot.slane %v3188_v32, 7 }
 0xef0   :  { %v1708_v40 = vsel %vm1705_vm10, %v1707_v33, %v1703_v31  ;;  %v2738_v6 = vpop.eup %2737 }
 0xef1   :  { %v1719_v13 = vmul.f32 %v2738_v6, %v1716_v61  ;;  %vm1724_vm13 = vweird.f32 %v2738_v6 }
 0xef2   :  { %vm1725_vm15 = vmor %vm1723_vm14, %vm1724_vm13 }
 0xef3   :  { %v1720_v53 = vsub.f32 1.0, %v1719_v13 }
 0xef5   :  { %v1721_v12 = vmul.f32 %v2738_v6, %v1720_v53 }
 0xef7   :  { %v1722_v39 = vadd.f32 %v2738_v6, %v1721_v12 }
 0xef9   :  { %v1726_v5 = vsel %vm1725_vm15, %v2738_v6, %v1722_v39 }
 0xefa   :  { %v1731_v4 = vsel %vm1728_vm0, %v1730_v1, %v1726_v5 }
 0xefb   :  { %v1794_v57 = vmul.f32 %v1790_v47, %v1731_v4 }
 0xf36   :  { %v1799_v34 = vpop.permute.xlu1 %1798  ;;  %v1801_v37 = vpop.permute.xlu2 %1800 }
 0xf37   :  { %v1804_v2 = vmul.f32 %v1799_v34, %v1693_v36  ;;  %v1805_v41 = vmul.f32 %v1801_v37, %v1708_v40 }
 0xf39   :  { %1810 = vrot.lane.b32.xlu0 %v1805_v41, %s2857_s0  ;;  %1808 = vrot.lane.b32.xlu2 %v1804_v2, %s2857_s0 }
 0xf3e   :  { %v1605_v62 = vpop.permute.xlu1 %1604 }
 0xf3f   :  { %v1609_v63 = vadd.f32 %v1605_v62, %v2965_v23 }
 0xf41   :  { %1666 = vrot.lane.b32.xlu2 %v1663_v42, %s2859_s10  ;;  %v2527_v9 = vmul.f32 -1.442695, %v1609_v63 }
 0xf43   :  { %2739 = vpow2.f32 %v2527_v9 }
 0xf46   :  { %v1665_v30 = vpop.permute.xlu1 %1664 }
 0xf47   :  { %v1670_v50 = vadd.f32 %v1665_v30, %v2968_v26 }
 0xf49   :  { %v2740_v54 = vpop.eup %2739  ;;  %v2528_v34 = vmul.f32 -1.442695, %v1670_v50 }
 0xf4a   :  { %v1717_v56 = vadd.f32 1.0, %v2740_v54 }
 0xf4c   :  { %2741 = vrcp.f32 %v1717_v56  ;;  %v1744_v46 = vand.u32 2147483648, %v1717_v56  ;;  %vm1738_vm3 = vweird.f32 %v1717_v56  ;;  %v1742_v19 = vand.u32 2147483647, %v1717_v56 }
 0xf4e   :  { %v1745_v15 = vor.u32 1.1754944e-38, %v1744_v46  ;;  %vm1743_vm5 = vcmp.eq.f32.partialorder %v1742_v19, 8.507059e+37 }
 0xf52   :  { %v2742_v11 = vpop.eup %2741 }
 0xf53   :  { %v1734_v14 = vmul.f32 %v2742_v11, %v1717_v56  ;;  %vm1739_vm2 = vweird.f32 %v2742_v11 }
 0xf54   :  { %vm1740_vm4 = vmor %vm1738_vm3, %vm1739_vm2 }
 0xf55   :  { %v1735_v16 = vsub.f32 1.0, %v1734_v14 }
 0xf57   :  { %v1736_v8 = vmul.f32 %v2742_v11, %v1735_v16 }
 0xf59   :  { %v1737_v17 = vadd.f32 %v2742_v11, %v1736_v8 }
 0xf5b   :  { %v1741_v55 = vsel %vm1740_vm4, %v2742_v11, %v1737_v17 }
 0xf5c   :  { %v1746_v18 = vsel %vm1743_vm5, %v1745_v15, %v1741_v55 }
 0xf5d   :  { %v1795_v22 = vmul.f32 %v1791_v20, %v1746_v18 }
 0xf93   :  { %v1809_v58 = vpop.permute.xlu2 %1808 }
 0xf94   :  { %v3236_v59 = vadd.f32 %v1809_v58, %v1794_v57 }
 0xf96   :  { %2743 = vtanh.f32 %v3236_v59 }
 0xf9b   :  { %v1667_v31 = vpop.permute.xlu2 %1666 }
 0xf9c   :  { %v2744_v21 = vpop.eup %2743  ;;  %v1671_v33 = vadd.f32 %v1667_v31, %v2965_v23 }
 0xf9d   :  { %1820 = vrot.lane.b32.xlu0 %v2744_v21, %s2858_s9 }
 0xf9e   :  { %v2529_v36 = vmul.f32 -1.442695, %v1671_v33 }
 0xfab   :  { %v1811_v25 = vpop.permute.xlu0 %1810 }
 0xfac   :  { %v3241_v28 = vadd.f32 %v1811_v25, %v1795_v22 }
 0xfae   :  { %2745 = vtanh.f32 %v3241_v28 }
 0xfaf   :  { %2747 = vpow2.f32 %v2528_v34 }
 0xfb0   :  { %2749 = vpow2.f32 %v2529_v36 }
 0xfb4   :  { %v2746_v29 = vpop.eup %2745 }
 0xfb5   :  { %1822 = vrot.lane.b32.xlu1 %v2746_v29, %s2858_s9  ;;  %v2748_v32 = vpop.eup %2747 }
 0xfb6   :  { %v2750_v37 = vpop.eup %2749  ;;  %v1756_v40 = vadd.f32 1.0, %v2748_v32 }
 0xfb7   :  { %v1757_v2 = vadd.f32 1.0, %v2750_v37 }
 0xfb8   :  { %2751 = vrcp.f32 %v1756_v40  ;;  %v1769_v6 = vand.u32 2147483648, %v1756_v40  ;;  %vm1763_vm7 = vweird.f32 %v1756_v40  ;;  %v1767_v9 = vand.u32 2147483647, %v1756_v40 }
 0xfb9   :  { %2753 = vrcp.f32 %v1757_v2  ;;  %v1784_v53 = vand.u32 2147483648, %v1757_v2  ;;  %vm1778_vm10 = vweird.f32 %v1757_v2  ;;  %v1782_v12 = vand.u32 2147483647, %v1757_v2 }
 0xfba   :  { %v1770_v56 = vor.u32 1.1754944e-38, %v1769_v6  ;;  %vm1768_vm14 = vcmp.eq.f32.partialorder %v1767_v9, 8.507059e+37 }
 0xfbb   :  { %v1785_v5 = vor.u32 1.1754944e-38, %v1784_v53  ;;  %vm1783_vm15 = vcmp.eq.f32.partialorder %v1782_v12, 8.507059e+37 }
 0xfbe   :  { %v2752_v41 = vpop.eup %2751 }
 0xfbf   :  { %v2754_v42 = vpop.eup %2753  ;;  %v1759_v44 = vmul.f32 %v2752_v41, %v1756_v40  ;;  %vm1764_vm6 = vweird.f32 %v2752_v41 }
 0xfc0   :  { %v1774_v45 = vmul.f32 %v2754_v42, %v1757_v2  ;;  %vm1779_vm8 = vweird.f32 %v2754_v42  ;;  %vm1765_vm9 = vmor %vm1763_vm7, %vm1764_vm6 }
 0xfc1   :  { %v1760_v52 = vsub.f32 1.0, %v1759_v44  ;;  %vm1780_vm13 = vmor %vm1778_vm10, %vm1779_vm8 }
 0xfc2   :  { %v1775_v60 = vsub.f32 1.0, %v1774_v45 }
 0xfc3   :  { %v1761_v61 = vmul.f32 %v2752_v41, %v1760_v52 }
 0xfc4   :  { %v1776_v62 = vmul.f32 %v2754_v42, %v1775_v60 }
 0xfc5   :  { %v1762_v63 = vadd.f32 %v2752_v41, %v1761_v61 }
 0xfc6   :  { %v1777_v13 = vadd.f32 %v2754_v42, %v1776_v62 }
 0xfc7   :  { %v1766_v54 = vsel %vm1765_vm9, %v2752_v41, %v1762_v63 }
 0xfc8   :  { %v1781_v0 = vsel %vm1780_vm13, %v2754_v42, %v1777_v13  ;;  %v1771_v3 = vsel %vm1768_vm14, %v1770_v56, %v1766_v54 }
 0xfc9   :  { %v1786_v47 = vsel %vm1783_vm15, %v1785_v5, %v1781_v0 }
0x100f   :  { %v1821_v39 = vpop.permute.xlu0 %1820 }
0x1010   :  { %v3247_v1 = vmul.f32 %v1821_v39, %v1771_v3 }
0x1012   :  { %v1839_v57 = vrot.slane %v3247_v1, 5 }
0x1027   :  { %v1823_v4 = vpop.permute.xlu1 %1822 }
0x1028   :  { %v3249_v11 = vmul.f32 %v1823_v4, %v1786_v47 }
0x102a   :  { %v1840_v58 = vrot.slane %v3249_v11, 4 }
0x102c   :  { %v1841_v14 = vsel %vm375_vm11, %v1840_v58, %v1839_v57 }
0x102d   :  { %1842 = vrot.lane.b32.xlu2 %v1841_v14, %s2861_s3 }
0x1087   :  { %v1843_v16 = vpop.permute.xlu2 %1842 }
0x1088   :  { %2530 = vmatmul.msk.f32.vlgmr.msrb.gmra.mxu2 %vm93_vm12, %v1843_v16  ;;  %2531 = vmatmul.msk.f32.vlgmr.msrb.gmra.mxu3 %vm93_vm12, %v1843_v16 }
0x1089   :  { %2532 = vmatmul.msk.f32.vlgmr.msra.gmra.mxu0 %vm93_vm12, %v1843_v16  ;;  %2533 = vmatmul.msk.f32.vlgmr.msrb.gmra.mxu1 %vm93_vm12, %v1843_v16 }
0x1106   :  { %v1921_v21 = vpop.f32.mrf.mxu0  ;;  %v1952_v30 = vpop.f32.mrf.mxu1 }
0x1107   :  { %v1925_v8 = vrot.slane %v1921_v21, 2  ;;  %v1926_v17 = vrot.slane %v1921_v21, 3  ;;  %v1956_v31 = vrot.slane %v1952_v30, 2  ;;  %v1957_v3 = vrot.slane %v1952_v30, 3 }
0x1109   :  { %1929 = vrot.lane.b32.xlu1 %v1926_v17, %s2858_s9  ;;  %1927 = vrot.lane.b32.xlu0 %v1925_v8, %s2858_s9 }
0x110b   :  { %v1890_v46 = vpop.f32.mrf.mxu3  ;;  %v1863_v50 = vpop.f32.mrf.mxu2 }
0x110c   :  { %v1894_v19 = vrot.slane %v1890_v46, 2  ;;  %v1895_v29 = vrot.slane %v1890_v46, 3  ;;  %v1867_v33 = vrot.slane %v1863_v50, 2  ;;  %v1868_v40 = vrot.slane %v1863_v50, 3 }
0x110e   :  { %v1871_v34 = vadd.f32 %v1867_v33, %v2968_v26  ;;  %v1872_v2 = vadd.f32 %v1868_v40, %v2965_v23 }
0x1110   :  { %v2534_v36 = vmul.f32 -1.442695, %v1871_v34  ;;  %v2535_v42 = vmul.f32 -1.442695, %v1872_v2 }
0x1111   :  { %1896 = vrot.lane.b32.xlu1 %v1894_v19, %s2857_s0 }
0x117b   :  { %v1930_v55 = vpop.permute.xlu1 %1929  ;;  %v1928_v15 = vpop.permute.xlu0 %1927 }
0x117c   :  { %v1934_v18 = vadd.f32 %v1930_v55, %v2965_v23  ;;  %v1933_v20 = vadd.f32 %v1928_v15, %v2968_v26 }
0x117e   :  { %2755 = vtanh.f32 %v1934_v18 }
0x117f   :  { %2757 = vtanh.f32 %v1933_v20 }
0x1180   :  { %2759 = vpow2.f32 %v2534_v36 }
0x1183   :  { %v1897_v17 = vpop.permute.xlu1 %1896 }
0x1184   :  { %v2756_v22 = vpop.eup %2755  ;;  %v1902_v46 = vadd.f32 %v1897_v17, %v2968_v26 }
0x1185   :  { %v2758_v25 = vpop.eup %2757  ;;  %2094 = vrot.lane.b32.xlu0 %v2756_v22, %s2860_s13 }
0x1186   :  { %2092 = vrot.lane.b32.xlu2 %v2758_v25, %s2860_s13  ;;  %v2760_v32 = vpop.eup %2759  ;;  %v2536_v19 = vmul.f32 -1.442695, %v1902_v46 }
0x1187   :  { %v1972_v37 = vadd.f32 1.0, %v2760_v32 }
0x1189   :  { %2761 = vrcp.f32 %v1972_v37  ;;  %v1985_v63 = vand.u32 2147483648, %v1972_v37  ;;  %vm1979_vm2 = vweird.f32 %v1972_v37  ;;  %v1983_v6 = vand.u32 2147483647, %v1972_v37 }
0x118a   :  { %2763 = vpow2.f32 %v2535_v42  ;;  %v2084_v42 = vrot.slane %v3236_v59, 7 }
0x118b   :  { %v1986_v13 = vor.u32 1.1754944e-38, %v1985_v63  ;;  %vm1984_vm4 = vcmp.eq.f32.partialorder %v1983_v6, 8.507059e+37 }
0x118e   :  { %1898 = vrot.lane.b32.xlu2 %v1895_v29, %s2857_s0 }
0x118f   :  { %v2762_v41 = vpop.eup %2761 }
0x1190   :  { %v1975_v44 = vmul.f32 %v2762_v41, %v1972_v37  ;;  %v2764_v52 = vpop.eup %2763  ;;  %vm1980_vm0 = vweird.f32 %v2762_v41 }
0x1191   :  { %v1973_v61 = vadd.f32 1.0, %v2764_v52  ;;  %vm1981_vm3 = vmor %vm1979_vm2, %vm1980_vm0 }
0x1192   :  { %v1976_v45 = vsub.f32 1.0, %v1975_v44 }
0x1193   :  { %2765 = vrcp.f32 %v1973_v61  ;;  %v2000_v47 = vand.u32 2147483648, %v1973_v61  ;;  %vm1994_vm6 = vweird.f32 %v1973_v61  ;;  %v1998_v57 = vand.u32 2147483647, %v1973_v61 }
0x1194   :  { %v1977_v60 = vmul.f32 %v2762_v41, %v1976_v45  ;;  %2767 = vpow2.f32 %v2536_v19 }
0x1195   :  { %v2001_v14 = vor.u32 1.1754944e-38, %v2000_v47  ;;  %vm1999_vm8 = vcmp.eq.f32.partialorder %v1998_v57, 8.507059e+37 }
0x1196   :  { %1958 = vrot.lane.b32.xlu2 %v1956_v31, %s2859_s10  ;;  %v1978_v62 = vadd.f32 %v2762_v41, %v1977_v60 }
0x1198   :  { %v1982_v9 = vsel %vm1981_vm3, %v2762_v41, %v1978_v62 }
0x1199   :  { %v1987_v54 = vsel %vm1984_vm4, %v1986_v13, %v1982_v9  ;;  %v2766_v12 = vpop.eup %2765 }
0x119a   :  { %v1990_v39 = vmul.f32 %v2766_v12, %v1973_v61  ;;  %vm1995_vm5 = vweird.f32 %v2766_v12  ;;  %v2768_v55 = vpop.eup %2767 }
0x119b   :  { %vm1996_vm7 = vmor %vm1994_vm6, %vm1995_vm5  ;;  %v2010_v15 = vadd.f32 1.0, %v2768_v55 }
0x119c   :  { %v1991_v0 = vsub.f32 1.0, %v1990_v39 }
0x119d   :  { %2769 = vrcp.f32 %v2010_v15  ;;  %v2023_v36 = vand.u32 2147483648, %v2010_v15  ;;  %vm2017_vm10 = vweird.f32 %v2010_v15  ;;  %v2021_v32 = vand.u32 2147483647, %v2010_v15 }
0x119e   :  { %v1992_v5 = vmul.f32 %v2766_v12, %v1991_v0 }
0x119f   :  { %v2024_v40 = vor.u32 1.1754944e-38, %v2023_v36  ;;  %vm2022_vm14 = vcmp.eq.f32.partialorder %v2021_v32, 8.507059e+37 }
0x11a0   :  { %v1993_v4 = vadd.f32 %v2766_v12, %v1992_v5 }
0x11a2   :  { %v1997_v58 = vsel %vm1996_vm7, %v2766_v12, %v1993_v4  ;;  %v2085_v12 = vrot.slane %v3241_v28, 7 }
0x11a3   :  { %v2002_v21 = vsel %vm1999_vm8, %v2001_v14, %v1997_v58  ;;  %v2770_v22 = vpop.eup %2769 }
0x11a4   :  { %v2013_v29 = vmul.f32 %v2770_v22, %v2010_v15  ;;  %vm2018_vm9 = vweird.f32 %v2770_v22 }
0x11a5   :  { %vm2019_vm13 = vmor %vm2017_vm10, %vm2018_vm9 }
0x11a6   :  { %v2014_v30 = vsub.f32 1.0, %v2013_v29 }
0x11a8   :  { %v2015_v50 = vmul.f32 %v2770_v22, %v2014_v30 }
0x11aa   :  { %v2016_v34 = vadd.f32 %v2770_v22, %v2015_v50 }
0x11ac   :  { %v2020_v37 = vsel %vm2019_vm13, %v2770_v22, %v2016_v34 }
0x11ad   :  { %v2025_v2 = vsel %vm2022_vm14, %v2024_v40, %v2020_v37 }
0x11ae   :  { %v2088_v44 = vmul.f32 %v2084_v42, %v2025_v2 }
0x11e0   :  { %v2093_v53 = vpop.permute.xlu2 %2092 }
0x11e1   :  { %v2098_v56 = vmul.f32 %v2093_v53, %v1987_v54 }
0x11e3   :  { %2102 = vrot.lane.b32.xlu0 %v2098_v56, %s2857_s0 }
0x11e8   :  { %v1899_v18 = vpop.permute.xlu2 %1898 }
0x11e9   :  { %v1903_v20 = vadd.f32 %v1899_v18, %v2965_v23 }
0x11eb   :  { %1960 = vrot.lane.b32.xlu0 %v1957_v3, %s2859_s10  ;;  %v2537_v25 = vmul.f32 -1.442695, %v1903_v20 }
0x11ed   :  { %2771 = vpow2.f32 %v2537_v25 }
0x11f0   :  { %v1959_v4 = vpop.permute.xlu2 %1958 }
0x11f1   :  { %v1964_v57 = vadd.f32 %v1959_v4, %v2968_v26 }
0x11f3   :  { %v2772_v31 = vpop.eup %2771  ;;  %v2538_v14 = vmul.f32 -1.442695, %v1964_v57 }
0x11f4   :  { %v2011_v33 = vadd.f32 1.0, %v2772_v31 }
0x11f6   :  { %2773 = vrcp.f32 %v2011_v33  ;;  %v2038_v9 = vand.u32 2147483648, %v2011_v33  ;;  %vm2032_vm0 = vweird.f32 %v2011_v33  ;;  %v2036_v13 = vand.u32 2147483647, %v2011_v33 }
0x11f7   :  { %v2095_v16 = vpop.permute.xlu0 %2094 }
0x11f8   :  { %v2099_v8 = vmul.f32 %v2095_v16, %v2002_v21  ;;  %v2039_v59 = vor.u32 1.1754944e-38, %v2038_v9  ;;  %vm2037_vm3 = vcmp.eq.f32.partialorder %v2036_v13, 8.507059e+37 }
0x11fa   :  { %2104 = vrot.lane.b32.xlu1 %v2099_v8, %s2857_s0 }
0x11fc   :  { %v2774_v41 = vpop.eup %2773 }
0x11fd   :  { %v2028_v52 = vmul.f32 %v2774_v41, %v2011_v33  ;;  %vm2033_vm15 = vweird.f32 %v2774_v41 }
0x11fe   :  { %vm2034_vm2 = vmor %vm2032_vm0, %vm2033_vm15 }
0x11ff   :  { %v2029_v61 = vsub.f32 1.0, %v2028_v52 }
0x1201   :  { %v2030_v62 = vmul.f32 %v2774_v41, %v2029_v61 }
0x1203   :  { %v2031_v6 = vadd.f32 %v2774_v41, %v2030_v62 }
0x1205   :  { %v2035_v53 = vsel %vm2034_vm2, %v2774_v41, %v2031_v6 }
0x1206   :  { %v2040_v54 = vsel %vm2037_vm3, %v2039_v59, %v2035_v53 }
0x1207   :  { %v2089_v56 = vmul.f32 %v2085_v12, %v2040_v54 }
0x1255   :  { %v2103_v45 = vpop.permute.xlu0 %2102 }
0x1256   :  { %v3276_v60 = vadd.f32 %v2103_v45, %v2088_v44 }
0x1258   :  { %2775 = vtanh.f32 %v3276_v60 }
0x125d   :  { %v1961_v5 = vpop.permute.xlu0 %1960 }
0x125e   :  { %v2776_v63 = vpop.eup %2775  ;;  %v1965_v47 = vadd.f32 %v1961_v5, %v2965_v23 }
0x125f   :  { %2114 = vrot.lane.b32.xlu1 %v2776_v63, %s2858_s9 }
0x1260   :  { %v2539_v58 = vmul.f32 -1.442695, %v1965_v47 }
0x126c   :  { %v2105_v39 = vpop.permute.xlu1 %2104 }
0x126d   :  { %v3281_v0 = vadd.f32 %v2105_v39, %v2089_v56 }
0x126f   :  { %2777 = vtanh.f32 %v3281_v0 }
0x1270   :  { %2779 = vpow2.f32 %v2539_v58 }
0x1271   :  { %2781 = vpow2.f32 %v2538_v14 }
0x1275   :  { %v2778_v3 = vpop.eup %2777 }
0x1276   :  { %2116 = vrot.lane.b32.xlu2 %v2778_v3, %s2858_s9  ;;  %v2780_v28 = vpop.eup %2779 }
0x1277   :  { %v2782_v16 = vpop.eup %2781  ;;  %v2051_v21 = vadd.f32 1.0, %v2780_v28 }
0x1278   :  { %v2050_v8 = vadd.f32 1.0, %v2782_v16 }
0x1279   :  { %2783 = vrcp.f32 %v2051_v21  ;;  %v2078_v29 = vand.u32 2147483648, %v2051_v21  ;;  %vm2072_vm6 = vweird.f32 %v2051_v21  ;;  %v2076_v31 = vand.u32 2147483647, %v2051_v21 }
0x127a   :  { %2785 = vrcp.f32 %v2050_v8  ;;  %v2063_v50 = vand.u32 2147483648, %v2050_v8  ;;  %vm2057_vm8 = vweird.f32 %v2050_v8  ;;  %v2061_v33 = vand.u32 2147483647, %v2050_v8 }
0x127b   :  { %v2079_v36 = vor.u32 1.1754944e-38, %v2078_v29  ;;  %vm2077_vm10 = vcmp.eq.f32.partialorder %v2076_v31, 8.507059e+37 }
0x127c   :  { %v2064_v37 = vor.u32 1.1754944e-38, %v2063_v50  ;;  %vm2062_vm13 = vcmp.eq.f32.partialorder %v2061_v33, 8.507059e+37 }
0x127f   :  { %v2784_v17 = vpop.eup %2783 }
0x1280   :  { %v2786_v46 = vpop.eup %2785  ;;  %v2068_v19 = vmul.f32 %v2784_v17, %v2051_v21  ;;  %vm2073_vm4 = vweird.f32 %v2784_v17 }
0x1281   :  { %v2053_v55 = vmul.f32 %v2786_v46, %v2050_v8  ;;  %vm2058_vm5 = vweird.f32 %v2786_v46  ;;  %vm2074_vm7 = vmor %vm2072_vm6, %vm2073_vm4 }
0x1282   :  { %v2069_v15 = vsub.f32 1.0, %v2068_v19  ;;  %vm2059_vm9 = vmor %vm2057_vm8, %vm2058_vm5 }
0x1283   :  { %v2054_v18 = vsub.f32 1.0, %v2053_v55 }
0x1284   :  { %v2070_v20 = vmul.f32 %v2784_v17, %v2069_v15 }
0x1285   :  { %v2055_v22 = vmul.f32 %v2786_v46, %v2054_v18 }
0x1286   :  { %v2071_v25 = vadd.f32 %v2784_v17, %v2070_v20 }
0x1287   :  { %v2056_v30 = vadd.f32 %v2786_v46, %v2055_v22 }
0x1288   :  { %v2075_v34 = vsel %vm2074_vm7, %v2784_v17, %v2071_v25 }
0x1289   :  { %v2060_v32 = vsel %vm2059_vm9, %v2786_v46, %v2056_v30  ;;  %v2080_v2 = vsel %vm2077_vm10, %v2079_v36, %v2075_v34 }
0x128a   :  { %v2065_v42 = vsel %vm2062_vm13, %v2064_v37, %v2060_v32 }
0x12d0   :  { %v2117_v40 = vpop.permute.xlu2 %2116 }
0x12d1   :  { %v3287_v41 = vmul.f32 %v2117_v40, %v2080_v2  ;;  %v2115_v44 = vpop.permute.xlu1 %2114 }
0x12d2   :  { %v3289_v45 = vmul.f32 %v2115_v44, %v2065_v42 }
0x12d3   :  { %v2134_v52 = vrot.slane %v3287_v41, 5 }
0x12d4   :  { %v2133_v61 = vrot.slane %v3289_v45, 6 }
0x12d6   :  { %v2135_v62 = vsel %vm375_vm11, %v2134_v52, %v2133_v61 }
0x12d7   :  { %2136 = vrot.lane.b32.xlu0 %v2135_v62, %s2861_s3 }
0x1349   :  { %v2137_v63 = vpop.permute.xlu0 %2136 }
0x134a   :  { %2540 = vmatmul.msk.f32.vlgmr.msra.gmra.mxu2 %vm93_vm12, %v2137_v63  ;;  %2541 = vmatmul.msk.f32.vlgmr.msra.gmra.mxu3 %vm93_vm12, %v2137_v63 }
0x134b   :  { %2542 = vmatmul.msk.f32.vlgmr.msrb.gmra.mxu0 %vm93_vm12, %v2137_v63  ;;  %2543 = vmatmul.msk.f32.vlgmr.msra.gmra.mxu1 %vm93_vm12, %v2137_v63 }
0x13c8   :  { %v2215_v6 = vpop.f32.mrf.mxu0  ;;  %v2246_v47 = vpop.f32.mrf.mxu1 }
0x13c9   :  { %v2219_v9 = vrot.slane %v2215_v6, 1  ;;  %v2220_v13 = vrot.slane %v2215_v6, 2  ;;  %v2250_v57 = vrot.slane %v2246_v47, 1 }
0x13cb   :  { %2223 = vrot.lane.b32.xlu2 %v2220_v13, %s2858_s9  ;;  %2221 = vrot.lane.b32.xlu1 %v2219_v9, %s2858_s9 }
0x13cd   :  { %v2184_v53 = vpop.f32.mrf.mxu3  ;;  %v2157_v58 = vpop.f32.mrf.mxu2 }
0x13ce   :  { %v2188_v59 = vrot.slane %v2184_v53, 1  ;;  %v2189_v4 = vrot.slane %v2184_v53, 2  ;;  %v2162_v14 = vrot.slane %v2157_v58, 2  ;;  %v2161_v17 = vrot.slane %v2157_v58, 1 }
0x13cf   :  { %v2251_v53 = vrot.slane %v2246_v47, 2 }
0x13d0   :  { %v2166_v28 = vadd.f32 %v2162_v14, %v2965_v23  ;;  %v2165_v46 = vadd.f32 %v2161_v17, %v2968_v26 }
0x13d2   :  { %v2545_v16 = vmul.f32 -1.442695, %v2166_v28  ;;  %v2544_v55 = vmul.f32 -1.442695, %v2165_v46 }
0x13d3   :  { %2190 = vrot.lane.b32.xlu2 %v2188_v59, %s2857_s0 }
0x1425   :  { %v2224_v54 = vpop.permute.xlu2 %2223 }
0x1426   :  { %v2228_v12 = vadd.f32 %v2224_v54, %v2965_v23 }
0x1428   :  { %2787 = vtanh.f32 %v2228_v12 }
0x142e   :  { %v2788_v56 = vpop.eup %2787 }
0x142f   :  { %2388 = vrot.lane.b32.xlu1 %v2788_v56, %s2860_s13 }
0x143d   :  { %v2222_v39 = vpop.permute.xlu1 %2221 }
0x143e   :  { %v2227_v3 = vadd.f32 %v2222_v39, %v2968_v26 }
0x1440   :  { %2789 = vtanh.f32 %v2227_v3 }
0x1441   :  { %2791 = vpow2.f32 %v2545_v16 }
0x1446   :  { %v2790_v5 = vpop.eup %2789 }
0x1447   :  { %2386 = vrot.lane.b32.xlu0 %v2790_v5, %s2860_s13  ;;  %v2792_v21 = vpop.eup %2791 }
0x1448   :  { %v2267_v8 = vadd.f32 1.0, %v2792_v21 }
0x144a   :  { %2793 = vrcp.f32 %v2267_v8  ;;  %v2294_v30 = vand.u32 2147483648, %v2267_v8  ;;  %vm2288_vm14 = vweird.f32 %v2267_v8  ;;  %v2292_v31 = vand.u32 2147483647, %v2267_v8 }
0x144b   :  { %2795 = vpow2.f32 %v2544_v55 }
0x144c   :  { %v2295_v33 = vor.u32 1.1754944e-38, %v2294_v30  ;;  %vm2293_vm0 = vcmp.eq.f32.partialorder %v2292_v31, 8.507059e+37 }
0x144f   :  { %2192 = vrot.lane.b32.xlu0 %v2189_v4, %s2857_s0 }
0x1450   :  { %v2794_v19 = vpop.eup %2793 }
0x1451   :  { %v2284_v15 = vmul.f32 %v2794_v19, %v2267_v8  ;;  %v2796_v20 = vpop.eup %2795  ;;  %vm2289_vm11 = vweird.f32 %v2794_v19 }
0x1452   :  { %v2266_v25 = vadd.f32 1.0, %v2796_v20  ;;  %vm2290_vm15 = vmor %vm2288_vm14, %vm2289_vm11 }
0x1453   :  { %v2285_v18 = vsub.f32 1.0, %v2284_v15 }
0x1454   :  { %2797 = vrcp.f32 %v2266_v25  ;;  %v2279_v52 = vand.u32 2147483648, %v2266_v25  ;;  %vm2273_vm3 = vweird.f32 %v2266_v25  ;;  %v2277_v61 = vand.u32 2147483647, %v2266_v25 }
0x1455   :  { %v2286_v22 = vmul.f32 %v2794_v19, %v2285_v18 }
0x1456   :  { %v2280_v63 = vor.u32 1.1754944e-38, %v2279_v52  ;;  %vm2278_vm5 = vcmp.eq.f32.partialorder %v2277_v61, 8.507059e+37 }
0x1457   :  { %2252 = vrot.lane.b32.xlu0 %v2250_v57, %s2859_s10  ;;  %v2287_v29 = vadd.f32 %v2794_v19, %v2286_v22 }
0x1459   :  { %v2291_v50 = vsel %vm2290_vm15, %v2794_v19, %v2287_v29  ;;  %vm371_vm15 = vcmask 122880  }
0x145a   :  { %v2296_v36 = vsel %vm2293_vm0, %v2295_v33, %v2291_v50  ;;  %v2798_v37 = vpop.eup %2797  ;;  %vm1248_vm0 = vcmask 125955  }
0x145b   :  { %v2269_v40 = vmul.f32 %v2798_v37, %v2266_v25  ;;  %vm2274_vm2 = vweird.f32 %v2798_v37 }
0x145c   :  { %vm2275_vm4 = vmor %vm2273_vm3, %vm2274_vm2  ;;  %vm2130_vm2 = vcmask 129030   ;;  %vm661_vm3 = vcmask 123905  }
0x145d   :  { %v2270_v2 = vsub.f32 1.0, %v2269_v40 }
0x145f   :  { %v2271_v42 = vmul.f32 %v2798_v37, %v2270_v2 }
0x1461   :  { %v2272_v44 = vadd.f32 %v2798_v37, %v2271_v42 }
0x1463   :  { %v2276_v62 = vsel %vm2275_vm4, %v2798_v37, %v2272_v44  ;;  %vm1542_vm4 = vcmask 126980  }
0x1464   :  { %v2281_v9 = vsel %vm2278_vm5, %v2280_v63, %v2276_v62 }
0x14a1   :  { %v2389_v34 = vpop.permute.xlu1 %2388 }
0x14a2   :  { %v2393_v32 = vmul.f32 %v2389_v34, %v2296_v36 }
0x14a4   :  { %2398 = vrot.lane.b32.xlu2 %v2393_v32, %s2857_s0 }
0x14b9   :  { %v2387_v6 = vpop.permute.xlu0 %2386 }
0x14ba   :  { %v2392_v13 = vmul.f32 %v2387_v6, %v2281_v9 }
0x14bc   :  { %2396 = vrot.lane.b32.xlu1 %v2392_v13, %s2857_s0 }
0x14c1   :  { %v2193_v59 = vpop.permute.xlu0 %2192 }
0x14c2   :  { %v2197_v54 = vadd.f32 %v2193_v59, %v2965_v23 }
0x14c4   :  { %2254 = vrot.lane.b32.xlu1 %v2251_v53, %s2859_s10  ;;  %v2547_v12 = vmul.f32 -1.442695, %v2197_v54 }
0x14c6   :  { %2799 = vpow2.f32 %v2547_v12 }
0x14c9   :  { %v2253_v42 = vpop.permute.xlu0 %2252 }
0x14cc   :  { %365 = vrot.lane.b32.xlu1 %v2993_v27, %s2861_s3  ;;  %v2800_v56 = vpop.eup %2799 }
0x14cd   :  { %v2305_v39 = vadd.f32 1.0, %v2800_v56 }
0x14cf   :  { %2801 = vrcp.f32 %v2305_v39  ;;  %v2332_v57 = vand.u32 2147483648, %v2305_v39  ;;  %vm2326_vm7 = vweird.f32 %v2305_v39  ;;  %v2330_v58 = vand.u32 2147483647, %v2305_v39 }
0x14d1   :  { %v2333_v28 = vor.u32 1.1754944e-38, %v2332_v57  ;;  %vm2331_vm9 = vcmp.eq.f32.partialorder %v2330_v58, 8.507059e+37 }
0x14d4   :  { %1242 = vrot.lane.b32.xlu1 %v3153_v49, %s2861_s3  ;;  %v2191_v49 = vpop.permute.xlu2 %2190 }
0x14d5   :  { %v2802_v3 = vpop.eup %2801 }
0x14d6   :  { %v2322_v5 = vmul.f32 %v2802_v3, %v2305_v39  ;;  %vm2327_vm6 = vweird.f32 %v2802_v3 }
0x14d7   :  { %vm2328_vm8 = vmor %vm2326_vm7, %vm2327_vm6 }
0x14d8   :  { %v2323_v4 = vsub.f32 1.0, %v2322_v5 }
0x14da   :  { %v2324_v27 = vmul.f32 %v2802_v3, %v2323_v4 }
0x14dc   :  { %2124 = vrot.lane.b32.xlu1 %v3289_v45, %s2861_s3  ;;  %v2325_v47 = vadd.f32 %v2802_v3, %v2324_v27  ;;  %v2196_v45 = vadd.f32 %v2191_v49, %v2968_v26 }
0x14de   :  { %v2329_v14 = vsel %vm2328_vm8, %v2802_v3, %v2325_v47  ;;  %v2546_v21 = vmul.f32 -1.442695, %v2196_v45 }
0x14df   :  { %v2334_v16 = vsel %vm2331_vm9, %v2333_v28, %v2329_v14  ;;  %vm954_vm9 = vcmask 124930  }
0x14e0   :  { %2803 = vpow2.f32 %v2546_v21 }
0x14e4   :  { %657 = vrot.lane.b32.xlu1 %v3041_v51, %s2861_s3  ;;  %v2379_v51 = vrot.slane %v3281_v0, 7 }
0x14e6   :  { %v2383_v8 = vmul.f32 %v2379_v51, %v2334_v16  ;;  %v2804_v46 = vpop.eup %2803 }
0x14e7   :  { %v2304_v55 = vadd.f32 1.0, %v2804_v46 }
0x14e9   :  { %v2317_v25 = vand.u32 2147483648, %v2304_v55  ;;  %vm2311_vm13 = vweird.f32 %v2304_v55  ;;  %v2315_v29 = vand.u32 2147483647, %v2304_v55 }
0x14eb   :  { %vm2316_vm14 = vcmp.eq.f32.partialorder %v2315_v29, 8.507059e+37 }
0x14ec   :  { %1538 = vrot.lane.b32.xlu1 %v3199_v35, %s2861_s3 }
0x14fe   :  { %v2399_v17 = vpop.permute.xlu2 %2398 }
0x14ff   :  { %v2403_v35 = vadd.f32 %v2399_v17, %v2383_v8 }
0x1501   :  { %2805 = vtanh.f32 %v2403_v35 }
0x1502   :  { %2807 = vrcp.f32 %v2304_v55 }
0x1507   :  { %v2806_v19 = vpop.eup %2805 }
0x1508   :  { %2410 = vrot.lane.b32.xlu0 %v2806_v19, %s2858_s9  ;;  %v2808_v15 = vpop.eup %2807 }
0x1509   :  { %v2307_v18 = vmul.f32 %v2808_v15, %v2304_v55  ;;  %vm2312_vm10 = vweird.f32 %v2808_v15  ;;  %v2430_v55 = vld [vmem:[%s3385_s4 + $0x8] sm:$0xff] }
0x150a   :  { %vm2313_vm11 = vmor %vm2311_vm13, %vm2312_vm10  ;;  %vm1836_vm10 = vcmask 128005   ;;  %2455 = vmatpush.msrb.mxu2 %v2430_v55 }
0x150b   :  { %v2308_v0 = vsub.f32 1.0, %v2307_v18 }
0x150d   :  { %v2309_v20 = vmul.f32 %v2808_v15, %v2308_v0 }
0x150f   :  { %v2310_v22 = vadd.f32 %v2808_v15, %v2309_v20 }
0x1510   :  { %948 = vrot.lane.b32.xlu0 %v3087_v7, %s2861_s3  ;;  %v2318_v7 = vor.u32 1.1754944e-38, %v2317_v25  ;;  %v2562_v25 = vld [vmem:[#allocation3] ss:$0 sm:$0xff] }
0x1511   :  { %v2314_v30 = vsel %vm2313_vm11, %v2808_v15, %v2310_v22  ;;  %v2429_v15 = vld [vmem:[%s3385_s4] sm:$0xff] }
0x1512   :  { %v2319_v31 = vsel %vm2316_vm14, %v2318_v7, %v2314_v30  ;;  %2456 = vmatpush.msrb.mxu2 %v2429_v15 }
0x1518   :  { %1830 = vrot.lane.b32.xlu0 %v3247_v1, %s2861_s3  ;;  %v2378_v1 = vrot.slane %v3276_v60, 7 }
0x151a   :  { %v2382_v50 = vmul.f32 %v2378_v1, %v2319_v31 }
0x1520   :  { %367 = vrot.lane.b32.xlu0 %v2991_v24, %s2861_s3 }
0x1528   :  { %1244 = vrot.lane.b32.xlu0 %v3151_v43, %s2861_s3 }
0x152e   :  { %v2397_v33 = vpop.permute.xlu1 %2396 }
0x152f   :  { %v2402_v34 = vadd.f32 %v2397_v33, %v2382_v50 }
0x1530   :  { %2126 = vrot.lane.b32.xlu0 %v3287_v41, %s2861_s3 }
0x1531   :  { %2809 = vtanh.f32 %v2402_v34 }
0x1536   :  { %v2255_v24 = vpop.permute.xlu1 %2254 }
0x1537   :  { %v2810_v36 = vpop.eup %2809  ;;  %v2259_v60 = vadd.f32 %v2255_v24, %v2965_v23  ;;  %v2258_v23 = vadd.f32 %v2253_v42, %v2968_v26 }
0x1538   :  { %2408 = vrot.lane.b32.xlu2 %v2810_v36, %s2858_s9 }
0x1539   :  { %v2549_v41 = vmul.f32 -1.442695, %v2259_v60  ;;  %v2548_v52 = vmul.f32 -1.442695, %v2258_v23 }
0x153b   :  { %2811 = vpow2.f32 %v2549_v41 }
0x153e   :  { %v366_v32 = vpop.permute.xlu1 %365 }
0x153f   :  { %372 = vst.msk [vmem:[#allocation2] sm:$0x1] %vm371_vm15, %v366_v32 }
0x1540   :  { %655 = vrot.lane.b32.xlu2 %v3039_v48, %s2861_s3 }
0x1541   :  { %v2812_v40 = vpop.eup %2811 }
0x1542   :  { %v2345_v2 = vadd.f32 1.0, %v2812_v40 }
0x1544   :  { %2813 = vrcp.f32 %v2345_v2  ;;  %v2372_v13 = vand.u32 2147483648, %v2345_v2  ;;  %vm2366_vm6 = vweird.f32 %v2345_v2  ;;  %v2370_v53 = vand.u32 2147483647, %v2345_v2 }
0x1545   :  { %2815 = vpow2.f32 %v2548_v52 }
0x1546   :  { %v1243_v43 = vpop.permute.xlu1 %1242  ;;  %v2373_v54 = vor.u32 1.1754944e-38, %v2372_v13  ;;  %vm2371_vm8 = vcmp.eq.f32.partialorder %v2370_v53, 8.507059e+37 }
0x1547   :  { %1249 = vst.msk [vmem:[#allocation2] sm:$0x8] %vm1248_vm0, %v1243_v43 }
0x1548   :  { %1536 = vrot.lane.b32.xlu2 %v3201_v38, %s2861_s3 }
0x154a   :  { %v2814_v44 = vpop.eup %2813 }
0x154b   :  { %v2362_v61 = vmul.f32 %v2814_v44, %v2345_v2  ;;  %v2816_v62 = vpop.eup %2815  ;;  %vm2367_vm5 = vweird.f32 %v2814_v44 }
0x154c   :  { %v2344_v6 = vadd.f32 1.0, %v2816_v62  ;;  %vm2368_vm7 = vmor %vm2366_vm6, %vm2367_vm5 }
0x154e   :  { %v2125_v37 = vpop.permute.xlu1 %2124  ;;  %2817 = vrcp.f32 %v2344_v6  ;;  %v2357_v49 = vand.u32 2147483648, %v2344_v6  ;;  %vm2351_vm11 = vweird.f32 %v2344_v6  ;;  %v2355_v58 = vand.u32 2147483647, %v2344_v6 }
0x154f   :  { %2131 = vst.msk [vmem:[#allocation2] sm:$0x40] %vm2130_vm2, %v2125_v37 }
0x1550   :  { %950 = vrot.lane.b32.xlu2 %v3089_v10, %s2861_s3  ;;  %v2363_v10 = vsub.f32 1.0, %v2362_v61  ;;  %v2358_v45 = vor.u32 1.1754944e-38, %v2357_v49  ;;  %vm2356_vm5 = vcmp.eq.f32.partialorder %v2355_v58, 8.507059e+37 }
0x1552   :  { %v2364_v63 = vmul.f32 %v2814_v44, %v2363_v10 }
0x1554   :  { %v2365_v9 = vadd.f32 %v2814_v44, %v2364_v63  ;;  %v2818_v39 = vpop.eup %2817 }
0x1555   :  { %v2347_v3 = vmul.f32 %v2818_v39, %v2344_v6  ;;  %vm2352_vm13 = vweird.f32 %v2818_v39 }
0x1556   :  { %v658_v48 = vpop.permute.xlu1 %657  ;;  %v2369_v59 = vsel %vm2368_vm7, %v2814_v44, %v2365_v9  ;;  %vm2353_vm14 = vmor %vm2351_vm11, %vm2352_vm13 }
0x1557   :  { %663 = vst.msk [vmem:[#allocation2 + $0x8] sm:$0x2] %vm661_vm3, %v658_v48  ;;  %v2374_v26 = vsel %vm2371_vm8, %v2373_v54, %v2369_v59  ;;  %v2348_v4 = vsub.f32 1.0, %v2347_v3 }
0x1559   :  { %v2349_v27 = vmul.f32 %v2818_v39, %v2348_v4 }
0x155b   :  { %v2350_v57 = vadd.f32 %v2818_v39, %v2349_v27 }
0x155d   :  { %v2354_v14 = vsel %vm2353_vm14, %v2818_v39, %v2350_v57 }
0x155e   :  { %v1539_v38 = vpop.permute.xlu1 %1538  ;;  %v2359_v16 = vsel %vm2356_vm5, %v2358_v45, %v2354_v14 }
0x155f   :  { %1544 = vst.msk [vmem:[#allocation2 + $0x8] sm:$0x10] %vm1542_vm4, %v1539_v38 }
0x157a   :  { %v2411_v12 = vpop.permute.xlu0 %2410 }
0x157b   :  { %v2415_v56 = vmul.f32 %v2411_v12, %v2374_v26 }
0x157d   :  { %2420 = vrot.lane.b32.xlu1 %v2415_v56, %s2861_s3 }
0x1582   :  { %v949_v5 = vpop.permute.xlu0 %948 }
0x1583   :  { %955 = vst.msk [vmem:[#allocation2] sm:$0x4] %vm954_vm9, %v949_v5 }
0x158a   :  { %v1831_v47 = vpop.permute.xlu0 %1830 }
0x158b   :  { %1837 = vst.msk [vmem:[#allocation2] sm:$0x20] %vm1836_vm10, %v1831_v47 }
0x1592   :  { %v368_v28 = vpop.permute.xlu0 %367  ;;  %v2409_v51 = vpop.permute.xlu2 %2408 }
0x1593   :  { %373 = vst.msk [vmem:[#allocation2 + $0x8] sm:$0x1] %vm371_vm15, %v368_v28  ;;  %v2414_v21 = vmul.f32 %v2409_v51, %v2359_v16  ;;  %vm2424_vm15 = vcmask 130055  }
0x1595   :  { %2418 = vrot.lane.b32.xlu2 %v2414_v21, %s2861_s3 }
0x159a   :  { %v1245_v8 = vpop.permute.xlu0 %1244  ;;  %v656_v17 = vpop.permute.xlu2 %655 }
0x159b   :  { %1250 = vst.msk [vmem:[#allocation2 + $0x8] sm:$0x8] %vm1248_vm0, %v1245_v8 }
0x159c   :  { %662 = vst.msk [vmem:[#allocation2] sm:$0x2] %vm661_vm3, %v656_v17 }
0x159d   :  { %1832 = vrot.lane.b32.xlu2 %v3249_v11, %s2861_s3 }
0x15a2   :  { %v2127_v35 = vpop.permute.xlu0 %2126  ;;  %v1537_v46 = vpop.permute.xlu2 %1536 }
0x15a3   :  { %2132 = vst.msk [vmem:[#allocation2 + $0x8] sm:$0x40] %vm2130_vm2, %v2127_v35 }
0x15a4   :  { %1543 = vst.msk [vmem:[#allocation2] sm:$0x10] %vm1542_vm4, %v1537_v46 }
0x15aa   :  { %v951_v19 = vpop.permute.xlu2 %950 }
0x15ab   :  { %956 = vst.msk [vmem:[#allocation2 + $0x8] sm:$0x4] %vm954_vm9, %v951_v19 }
0x15ef   :  { %v2419_v11 = vpop.permute.xlu2 %2418  ;;  %v2421_v18 = vpop.permute.xlu1 %2420 }
0x15f0   :  { %2425 = vst.msk [vmem:[#allocation2] sm:$0x80] %vm2424_vm15, %v2419_v11 }
0x15f1   :  { %2426 = vst.msk [vmem:[#allocation2 + $0x8] sm:$0x80] %vm2424_vm15, %v2421_v18 }
0x15f7   :  { %v1833_v0 = vpop.permute.xlu2 %1832  ;;  %v2427_v20 = vld [vmem:[#allocation2] sm:$0xff] }
0x15f8   :  { %1838 = vst.msk [vmem:[#allocation2 + $0x8] sm:$0x20] %vm1836_vm10, %v1833_v0  ;;  %2550 = vmatmul.msk.f32.vlgmr.msrb.gmra.mxu2 %vm93_vm12, %v2427_v20 }
0x15ff   :  { %v2428_v22 = vld [vmem:[#allocation2 + $0x8] sm:$0xff] }
0x1600   :  { %2551 = vmatmul.msk.f32.gmra.mxu2 %vm93_vm12, %v2428_v22 }
0x167b   :  { %v2458_v29 = vpop.f32.mrf.mxu2 }
0x167c   :  { %v2459_v30 = vadd.f32 %v2562_v25, %v2458_v29 }
0x167e   :  { %2464 = vst.msk [vmem:[%s3387_s6] sm:$0xff] %vm48_vm1, %v2459_v30 }
0x1683   :  { %v2461_v7 = vpop.f32.mrf.mxu2 }
0x1684   :  { %v2462_v31 = vadd.f32 %v2562_v25, %v2461_v7 }
0x1686   :  { %2465 = vst.msk [vmem:[%s3387_s6 + $0x8] sm:$0xff] %vm48_vm1, %v2462_v31 }
0x1687   :  { %2470 = vsyncpa [#allocation5], 1 }

</bundles_post_ra>
